<compile_context>
chip_gen: v5e
topology: v5e:2x2
jax: 0.10.0
libtpu: 0.0.40
codegen_flags: <defaults>
</compile_context>

<pallas_src>
import jax
import jax.numpy as jnp
from jax import lax
from jax.experimental import pallas as pl
from jax.experimental.pallas import tpu as pltpu

import numpy as np

_VMEM_SPEC = pl.BlockSpec(memory_space=pltpu.MemorySpace.VMEM)


# ----------------------------------------------------------------------------
# In-kernel helpers
# ----------------------------------------------------------------------------
def _zero_halo(buf):
    """Zero only the 1-pixel border of a padded NHWC VMEM buffer."""
    n, h, w, c = buf.shape
    zr = jnp.zeros((n, 1, w, c), jnp.float32)
    zc = jnp.zeros((n, h, 1, c), jnp.float32)
    buf[:, pl.ds(0, 1), :, :] = zr
    buf[:, pl.ds(h - 1, 1), :, :] = zr
    buf[:, :, pl.ds(0, 1), :] = zc
    buf[:, :, pl.ds(w - 1, 1), :] = zc


def _conv4x4_s2(buf, w_ref, out_hw):
    """4x4 / stride-2 / pad-1 conv as 16 tap matmuls over a padded NHWC buffer.

    buf:   [N, 2*out_hw+2, 2*out_hw+2, Cin] zero-halo VMEM buffer (real Cin).
    w_ref: [4, 4, Cin, Cout] (real channel counts, no zero padding).
    Returns f32 [N*out_hw*out_hw, Cout]; rows ordered (n, oh, ow).
    """
    n, _, _, cin = buf.shape
    cout = w_ref.shape[-1]
    m = n * out_hw * out_hw
    acc = jnp.zeros((m, cout), jnp.float32)
    for kh in range(4):
        for kw in range(4):
            patch = buf[:, pl.ds(kh, out_hw, stride=2),
                           pl.ds(kw, out_hw, stride=2), :]      # [N, oh, ow, Cin]
            acc = acc + jnp.dot(patch.reshape(m, cin), w_ref[kh, kw],
                                preferred_element_type=jnp.float32)
    return acc


def _bn_lrelu(y, gamma, beta):
    """Training-mode BatchNorm (biased var, eps=1e-5) + LeakyReLU(0.2).

    One-pass stats: var = E[y^2] - mean^2 (single reduction sweep each).
    y: [M, C] with rows = (n, oh, ow) -> stats over axis 0 == over (N, H, W).
    """
    mean = jnp.mean(y, axis=0, keepdims=True)
    msq = jnp.mean(y * y, axis=0, keepdims=True)
    var = msq - mean * mean
    yn = (y - mean) * lax.rsqrt(var + 1e-5)
    yn = yn * gamma + beta
    return jnp.maximum(yn, 0.2 * yn)


# ----------------------------------------------------------------------------
# Fused discriminator kernel (entire forward pass, gridless)
# ----------------------------------------------------------------------------
def _disc_fused_kernel(patch_ref,                   # [N*256, 48]  layer-1 im2col
                       w1_ref,                      # [48, 32]
                       w2_ref, g2_ref, b2_ref,      # [4,4,32,64], [1,64] x2
                       w3_ref, g3_ref, b3_ref,      # [4,4,64,128], [1,128] x2
                       w4_ref,                      # [16, 128]
                       out_ref,                     # [N, 128] (lane 0 = prob)
                       buf2, buf3):                 # padded VMEM activations
    n = buf2.shape[0]

    # ---- Layer 1: Conv(3->32, 4, 2, 1) as ONE K=48 dot + LeakyReLU ----------
    y1 = jnp.dot(patch_ref[...], w1_ref[...],
                 preferred_element_type=jnp.float32)            # [n*256, 32]
    y1 = jnp.maximum(y1, 0.2 * y1)

    # ---- Layer 2: Conv(32->64, 4, 2, 1) + BatchNorm + LeakyReLU -------------
    _zero_halo(buf2)
    buf2[:, pl.ds(1, 16), pl.ds(1, 16), :] = y1.reshape(n, 16, 16, 32)
    y2 = _conv4x4_s2(buf2, w2_ref, 8)                           # [n*64, 64]
    y2 = _bn_lrelu(y2, g2_ref[...], b2_ref[...])

    # ---- Layer 3: Conv(64->128, 4, 2, 1) + BatchNorm + LeakyReLU ------------
    _zero_halo(buf3)
    buf3[:, pl.ds(1, 8), pl.ds(1, 8), :] = y2.reshape(n, 8, 8, 64)
    y3 = _conv4x4_s2(buf3, w3_ref, 4)                           # [n*16, 128]
    y3 = _bn_lrelu(y3, g3_ref[...], b3_ref[...])

    # ---- Layer 4: Conv(128->1, 4, 1, 0) + Sigmoid ----------------------------
    # 4x4 valid conv on a 4x4 map == weighted sum over the 16 remaining taps:
    # per-lane multiply-accumulate against the [16,128] weight, then a lane
    # reduction.  No padded matmuls, no extra VMEM buffer.
    zl = jnp.sum(y3.reshape(n, 16, 128) * w4_ref[...][None, :, :], axis=1)  # [n,128]
    z = jnp.sum(zl, axis=-1, keepdims=True)                                  # [n,1]
    prob = 0.5 * (jnp.tanh(0.5 * z) + 1.0)          # numerically stable sigmoid
    out_ref[...] = jnp.broadcast_to(prob, out_ref.shape)        # lane-dense store


# ----------------------------------------------------------------------------
# Parameters: PyTorch-layout init + one-time packing (hoisted out of forward)
# ----------------------------------------------------------------------------
def init_discriminator_params(key):
    k1, k2, k3, k4 = jax.random.split(key, 4)
    return {
        "w1": 0.05 * jax.random.normal(k1, (32, 3, 4, 4), jnp.float32),
        "w2": 0.05 * jax.random.normal(k2, (64, 32, 4, 4), jnp.float32),
        "w3": 0.05 * jax.random.normal(k3, (128, 64, 4, 4), jnp.float32),
        "w4": 0.05 * jax.random.normal(k4, (1, 128, 4, 4), jnp.float32),
        "g2": jnp.ones((64,), jnp.float32),
        "b2": jnp.zeros((64,), jnp.float32),
        "g3": jnp.ones((128,), jnp.float32),
        "b3": jnp.zeros((128,), jnp.float32),
    }


def pack_discriminator_params(params):
    """[Cout,Cin,kh,kw] -> [kh,kw,Cin,Cout] with REAL channel counts (no zeros)."""
    def conv_w(w):
        return jnp.transpose(w, (2, 3, 1, 0)).astype(jnp.float32)

    return {
        "w1": conv_w(params["w1"]).reshape(48, 32),      # (kh,kw,cin) x cout
        "w2": conv_w(params["w2"]),                      # [4,4,32,64]
        "w3": conv_w(params["w3"]),                      # [4,4,64,128]
        "w4": conv_w(params["w4"]).reshape(16, 128),     # (kh,kw) x cin
        "g2": params["g2"].reshape(1, 64),
        "b2": params["b2"].reshape(1, 64),
        "g3": params["g3"].reshape(1, 128),
        "b3": params["b3"].reshape(1, 128),
    }


# ----------------------------------------------------------------------------
# Forward pass (one pallas_call for the whole network)
# ----------------------------------------------------------------------------
def _im2col_layer1(x_nhwc):
    """[n,32,32,3] -> [n*256, 48] patches ordered (n, oh, ow) x (kh, kw, cin)."""
    n = x_nhwc.shape[0]
    xp = jnp.pad(x_nhwc, ((0, 0), (1, 1), (1, 1), (0, 0)))       # [n,34,34,3]
    taps = [xp[:, kh:kh + 32:2, kw:kw + 32:2, :]
            for kh in range(4) for kw in range(4)]
    patches = jnp.concatenate(taps, axis=-1)                     # [n,16,16,48]
    return patches.reshape(n * 256, 48)


def _vmem_limit_bytes(n):
    """Size the scoped-VMEM limit from batch size; stay under v7x's 64 MiB."""
    per_sample = (256 * 48 + 18 * 18 * 32 + 10 * 10 * 64 + 128) * 4
    weights = (48 * 32 + 16 * 32 * 64 + 16 * 64 * 128 + 16 * 128
               + 2 * 64 + 2 * 128) * 4
    need = n * per_sample + weights
    return int(max(16 << 20, min(56 << 20, 4 * need)))


def discriminator_forward(packed, x):
    """x: [bs, 3, 32, 32] NCHW float32 -> [bs]."""
    n = x.shape[0]
    x_nhwc = jnp.transpose(x, (0, 2, 3, 1)).astype(jnp.float32)  # one transpose
    patches = _im2col_layer1(x_nhwc)                             # tiny wrapper op

    out = pl.pallas_call(
        _disc_fused_kernel,
        out_shape=jax.ShapeDtypeStruct((n, 128), jnp.float32),
        in_specs=[_VMEM_SPEC] * 9,
        out_specs=_VMEM_SPEC,
        scratch_shapes=[
            pltpu.VMEM((n, 18, 18, 32), jnp.float32),   # padded layer-2 input
            pltpu.VMEM((n, 10, 10, 64), jnp.float32),   # padded layer-3 input
        ],
        compiler_params=pltpu.CompilerParams(
            vmem_limit_bytes=_vmem_limit_bytes(n)),
    )(patches,
      packed["w1"],
      packed["w2"], packed["g2"], packed["b2"],
      packed["w3"], packed["g3"], packed["b3"],
      packed["w4"])

    return out[:, 0]                                    # probability lane


# ----------------------------------------------------------------------------
# Pure-JAX reference (numerical self-check, matches PyTorch semantics)
# ----------------------------------------------------------------------------
def _reference_forward(params, x):
    def conv(h, w, stride, pad):
        return lax.conv_general_dilated(
            h, w, window_strides=(stride, stride),
            padding=((pad, pad), (pad, pad)),
            dimension_numbers=("NCHW", "OIHW", "NCHW"))

    def bn(h, g, b):
        mean = jnp.mean(h, axis=(0, 2, 3), keepdims=True)
        var = jnp.mean((h - mean) ** 2, axis=(0, 2, 3), keepdims=True)
        hn = (h - mean) * lax.rsqrt(var + 1e-5)
        return hn * g.reshape(1, -1, 1, 1) + b.reshape(1, -1, 1, 1)

    lrelu = lambda t: jnp.where(t > 0, t, 0.2 * t)
    h = lrelu(conv(x, params["w1"], 2, 1))
    h = lrelu(bn(conv(h, params["w2"], 2, 1), params["g2"], params["b2"]))
    h = lrelu(bn(conv(h, params["w3"], 2, 1), params["g3"], params["b3"]))
    h = jax.nn.sigmoid(conv(h, params["w4"], 1, 0))
    return h.reshape(-1)


# ----------------------------------------------------------------------------
# Main
# ----------------------------------------------------------------------------
if __name__ == "__main__":
    key = jax.random.PRNGKey(0)
    pkey, xkey = jax.random.split(key)

    params = init_discriminator_params(pkey)
    packed = pack_discriminator_params(params)        # one-time weight packing
    # The architecture (final 4x4 valid conv) requires 32x32 spatial input.
    x = jax.random.normal(xkey, (2, 3, 32, 32), jnp.float32)

    fwd = jax.jit(discriminator_forward)
    out = jax.block_until_ready(fwd(packed, x))

    ref = jax.block_until_ready(jax.jit(_reference_forward)(params, x))

    assert out.shape == (2,), out.shape
    assert bool(jnp.all(jnp.isfinite(out)))
    assert bool(jnp.all((out >= 0.0) & (out <= 1.0)))   # sigmoid range
    np.testing.assert_allclose(np.asarray(out), np.asarray(ref),
                               atol=5e-3, rtol=5e-3)
    print("KERNEL_OK")
</pallas_src>

<mosaic_0001>
module attributes {stable_mosaic.version = 11 : i64} {
  func.func @_disc_fused_kernel(%arg0: memref<512x48xf32, #tpu.memory_space<vmem>>, %arg1: memref<48x32xf32, #tpu.memory_space<vmem>>, %arg2: memref<4x4x32x64xf32, #tpu.memory_space<vmem>>, %arg3: memref<1x64xf32, #tpu.memory_space<vmem>>, %arg4: memref<1x64xf32, #tpu.memory_space<vmem>>, %arg5: memref<4x4x64x128xf32, #tpu.memory_space<vmem>>, %arg6: memref<1x128xf32, #tpu.memory_space<vmem>>, %arg7: memref<1x128xf32, #tpu.memory_space<vmem>>, %arg8: memref<16x128xf32, #tpu.memory_space<vmem>>, %arg9: memref<2x128xf32, #tpu.memory_space<vmem>>, %arg10: memref<2x18x18x32xf32, #tpu.memory_space<vmem>>, %arg11: memref<2x10x10x64xf32, #tpu.memory_space<vmem>>) attributes {dimension_semantics = [], scalar_prefetch = 0 : i64, scratch_operands = 2 : i64, tpu.core_type = #tpu.core_type<tc>} {
    %c0 = arith.constant 0 : index
    %c0_0 = arith.constant 0 : index
    %0 = vector.load %arg0[%c0, %c0_0] : memref<512x48xf32, #tpu.memory_space<vmem>>, vector<512x48xf32>
    %c0_1 = arith.constant 0 : index
    %c0_2 = arith.constant 0 : index
    %1 = vector.load %arg1[%c0_1, %c0_2] : memref<48x32xf32, #tpu.memory_space<vmem>>, vector<48x32xf32>
    %cst = arith.constant dense<0.000000e+00> : vector<512x32xf32>
    %2 = tpu.matmul %0, %1, %cst {dimension_numbers = #tpu.dot_dimension_numbers<[1], [0], [0], [1], [0, 0, 1, 1], [], []>} : vector<512x48xf32>, vector<48x32xf32>, vector<512x32xf32> -> vector<512x32xf32>
    %cst_3 = arith.constant 2.000000e-01 : f32
    %3 = vector.broadcast %cst_3 : f32 to vector<512x32xf32>
    %4 = arith.mulf %3, %2 : vector<512x32xf32>
    %5 = arith.maximumf %2, %4 : vector<512x32xf32>
    %cst_4 = arith.constant 0.000000e+00 : f32
    %6 = vector.broadcast %cst_4 : f32 to vector<2x1x18x32xf32>
    %cst_5 = arith.constant 0.000000e+00 : f32
    %7 = vector.broadcast %cst_5 : f32 to vector<2x18x1x32xf32>
    %c0_6 = arith.constant 0 : index
    %c0_7 = arith.constant 0 : index
    %c0_8 = arith.constant 0 : index
    %c0_9 = arith.constant 0 : index
    %8 = vector.load %arg10[%c0_6, %c0_7, %c0_8, %c0_9] : memref<2x18x18x32xf32, #tpu.memory_space<vmem>>, vector<2x1x18x32xf32>
    tpu.vector_store %arg10[%c0_6, %c0_7, %c0_8, %c0_9], %6 {strides = array<i32>} : memref<2x18x18x32xf32, #tpu.memory_space<vmem>>, vector<2x1x18x32xf32>,
    %c0_10 = arith.constant 0 : index
    %c17 = arith.constant 17 : index
    %c0_11 = arith.constant 0 : index
    %c0_12 = arith.constant 0 : index
    %9 = vector.load %arg10[%c0_10, %c17, %c0_11, %c0_12] : memref<2x18x18x32xf32, #tpu.memory_space<vmem>>, vector<2x1x18x32xf32>
    tpu.vector_store %arg10[%c0_10, %c17, %c0_11, %c0_12], %6 {strides = array<i32>} : memref<2x18x18x32xf32, #tpu.memory_space<vmem>>, vector<2x1x18x32xf32>,
    %c0_13 = arith.constant 0 : index
    %c0_14 = arith.constant 0 : index
    %c0_15 = arith.constant 0 : index
    %c0_16 = arith.constant 0 : index
    %10 = vector.load %arg10[%c0_13, %c0_14, %c0_15, %c0_16] : memref<2x18x18x32xf32, #tpu.memory_space<vmem>>, vector<2x18x1x32xf32>
    tpu.vector_store %arg10[%c0_13, %c0_14, %c0_15, %c0_16], %7 {strides = array<i32>} : memref<2x18x18x32xf32, #tpu.memory_space<vmem>>, vector<2x18x1x32xf32>,
    %c0_17 = arith.constant 0 : index
    %c0_18 = arith.constant 0 : index
    %c17_19 = arith.constant 17 : index
    %c0_20 = arith.constant 0 : index
    %11 = vector.load %arg10[%c0_17, %c0_18, %c17_19, %c0_20] : memref<2x18x18x32xf32, #tpu.memory_space<vmem>>, vector<2x18x1x32xf32>
    tpu.vector_store %arg10[%c0_17, %c0_18, %c17_19, %c0_20], %7 {strides = array<i32>} : memref<2x18x18x32xf32, #tpu.memory_space<vmem>>, vector<2x18x1x32xf32>,
    %12 = vector.shape_cast %5 : vector<512x32xf32> to vector<2x16x16x32xf32>
    %c0_21 = arith.constant 0 : index
    %c1 = arith.constant 1 : index
    %c1_22 = arith.constant 1 : index
    %c0_23 = arith.constant 0 : index
    %13 = vector.load %arg10[%c0_21, %c1, %c1_22, %c0_23] : memref<2x18x18x32xf32, #tpu.memory_space<vmem>>, vector<2x16x16x32xf32>
    tpu.vector_store %arg10[%c0_21, %c1, %c1_22, %c0_23], %12 {strides = array<i32>} : memref<2x18x18x32xf32, #tpu.memory_space<vmem>>, vector<2x16x16x32xf32>,
    %cst_24 = arith.constant 0.000000e+00 : f32
    %14 = vector.broadcast %cst_24 : f32 to vector<128x64xf32>
    %c0_25 = arith.constant 0 : index
    %c0_26 = arith.constant 0 : index
    %c0_27 = arith.constant 0 : index
    %c0_28 = arith.constant 0 : index
    %15 = tpu.strided_load %arg10[%c0_25, %c0_26, %c0_27, %c0_28] {strides = array<i32: 1, 2, 2, 1>} : memref<2x18x18x32xf32, #tpu.memory_space<vmem>>, vector<2x8x8x32xf32>
    %16 = vector.shape_cast %15 : vector<2x8x8x32xf32> to vector<128x32xf32>
    %c0_29 = arith.constant 0 : index
    %c0_30 = arith.constant 0 : index
    %c0_31 = arith.constant 0 : index
    %c0_32 = arith.constant 0 : index
    %17 = vector.load %arg2[%c0_29, %c0_30, %c0_31, %c0_32] : memref<4x4x32x64xf32, #tpu.memory_space<vmem>>, vector<1x1x32x64xf32>
    %18 = vector.shape_cast %17 : vector<1x1x32x64xf32> to vector<32x64xf32>
    %cst_33 = arith.constant dense<0.000000e+00> : vector<128x64xf32>
    %19 = tpu.matmul %16, %18, %cst_33 {dimension_numbers = #tpu.dot_dimension_numbers<[1], [0], [0], [1], [0, 0, 1, 1], [], []>} : vector<128x32xf32>, vector<32x64xf32>, vector<128x64xf32> -> vector<128x64xf32>
    %20 = arith.addf %14, %19 : vector<128x64xf32>
    %c0_34 = arith.constant 0 : index
    %c0_35 = arith.constant 0 : index
    %c1_36 = arith.constant 1 : index
    %c0_37 = arith.constant 0 : index
    %21 = tpu.strided_load %arg10[%c0_34, %c0_35, %c1_36, %c0_37] {strides = array<i32: 1, 2, 2, 1>} : memref<2x18x18x32xf32, #tpu.memory_space<vmem>>, vector<2x8x8x32xf32>
    %22 = vector.shape_cast %21 : vector<2x8x8x32xf32> to vector<128x32xf32>
    %c0_38 = arith.constant 0 : index
    %c1_39 = arith.constant 1 : index
    %c0_40 = arith.constant 0 : index
    %c0_41 = arith.constant 0 : index
    %23 = vector.load %arg2[%c0_38, %c1_39, %c0_40, %c0_41] : memref<4x4x32x64xf32, #tpu.memory_space<vmem>>, vector<1x1x32x64xf32>
    %24 = vector.shape_cast %23 : vector<1x1x32x64xf32> to vector<32x64xf32>
    %cst_42 = arith.constant dense<0.000000e+00> : vector<128x64xf32>
    %25 = tpu.matmul %22, %24, %cst_42 {dimension_numbers = #tpu.dot_dimension_numbers<[1], [0], [0], [1], [0, 0, 1, 1], [], []>} : vector<128x32xf32>, vector<32x64xf32>, vector<128x64xf32> -> vector<128x64xf32>
    %26 = arith.addf %20, %25 : vector<128x64xf32>
    %c0_43 = arith.constant 0 : index
    %c0_44 = arith.constant 0 : index
    %c2 = arith.constant 2 : index
    %c0_45 = arith.constant 0 : index
    %27 = tpu.strided_load %arg10[%c0_43, %c0_44, %c2, %c0_45] {strides = array<i32: 1, 2, 2, 1>} : memref<2x18x18x32xf32, #tpu.memory_space<vmem>>, vector<2x8x8x32xf32>
    %28 = vector.shape_cast %27 : vector<2x8x8x32xf32> to vector<128x32xf32>
    %c0_46 = arith.constant 0 : index
    %c2_47 = arith.constant 2 : index
    %c0_48 = arith.constant 0 : index
    %c0_49 = arith.constant 0 : index
    %29 = vector.load %arg2[%c0_46, %c2_47, %c0_48, %c0_49] : memref<4x4x32x64xf32, #tpu.memory_space<vmem>>, vector<1x1x32x64xf32>
    %30 = vector.shape_cast %29 : vector<1x1x32x64xf32> to vector<32x64xf32>
    %cst_50 = arith.constant dense<0.000000e+00> : vector<128x64xf32>
    %31 = tpu.matmul %28, %30, %cst_50 {dimension_numbers = #tpu.dot_dimension_numbers<[1], [0], [0], [1], [0, 0, 1, 1], [], []>} : vector<128x32xf32>, vector<32x64xf32>, vector<128x64xf32> -> vector<128x64xf32>
    %32 = arith.addf %26, %31 : vector<128x64xf32>
    %c0_51 = arith.constant 0 : index
    %c0_52 = arith.constant 0 : index
    %c3 = arith.constant 3 : index
    %c0_53 = arith.constant 0 : index
    %33 = tpu.strided_load %arg10[%c0_51, %c0_52, %c3, %c0_53] {strides = array<i32: 1, 2, 2, 1>} : memref<2x18x18x32xf32, #tpu.memory_space<vmem>>, vector<2x8x8x32xf32>
    %34 = vector.shape_cast %33 : vector<2x8x8x32xf32> to vector<128x32xf32>
    %c0_54 = arith.constant 0 : index
    %c3_55 = arith.constant 3 : index
    %c0_56 = arith.constant 0 : index
    %c0_57 = arith.constant 0 : index
    %35 = vector.load %arg2[%c0_54, %c3_55, %c0_56, %c0_57] : memref<4x4x32x64xf32, #tpu.memory_space<vmem>>, vector<1x1x32x64xf32>
    %36 = vector.shape_cast %35 : vector<1x1x32x64xf32> to vector<32x64xf32>
    %cst_58 = arith.constant dense<0.000000e+00> : vector<128x64xf32>
    %37 = tpu.matmul %34, %36, %cst_58 {dimension_numbers = #tpu.dot_dimension_numbers<[1], [0], [0], [1], [0, 0, 1, 1], [], []>} : vector<128x32xf32>, vector<32x64xf32>, vector<128x64xf32> -> vector<128x64xf32>
    %38 = arith.addf %32, %37 : vector<128x64xf32>
    %c0_59 = arith.constant 0 : index
    %c1_60 = arith.constant 1 : index
    %c0_61 = arith.constant 0 : index
    %c0_62 = arith.constant 0 : index
    %39 = tpu.strided_load %arg10[%c0_59, %c1_60, %c0_61, %c0_62] {strides = array<i32: 1, 2, 2, 1>} : memref<2x18x18x32xf32, #tpu.memory_space<vmem>>, vector<2x8x8x32xf32>
    %40 = vector.shape_cast %39 : vector<2x8x8x32xf32> to vector<128x32xf32>
    %c1_63 = arith.constant 1 : index
    %c0_64 = arith.constant 0 : index
    %c0_65 = arith.constant 0 : index
    %c0_66 = arith.constant 0 : index
    %41 = vector.load %arg2[%c1_63, %c0_64, %c0_65, %c0_66] : memref<4x4x32x64xf32, #tpu.memory_space<vmem>>, vector<1x1x32x64xf32>
    %42 = vector.shape_cast %41 : vector<1x1x32x64xf32> to vector<32x64xf32>
    %cst_67 = arith.constant dense<0.000000e+00> : vector<128x64xf32>
    %43 = tpu.matmul %40, %42, %cst_67 {dimension_numbers = #tpu.dot_dimension_numbers<[1], [0], [0], [1], [0, 0, 1, 1], [], []>} : vector<128x32xf32>, vector<32x64xf32>, vector<128x64xf32> -> vector<128x64xf32>
    %44 = arith.addf %38, %43 : vector<128x64xf32>
    %c0_68 = arith.constant 0 : index
    %c1_69 = arith.constant 1 : index
    %c1_70 = arith.constant 1 : index
    %c0_71 = arith.constant 0 : index
    %45 = tpu.strided_load %arg10[%c0_68, %c1_69, %c1_70, %c0_71] {strides = array<i32: 1, 2, 2, 1>} : memref<2x18x18x32xf32, #tpu.memory_space<vmem>>, vector<2x8x8x32xf32>
    %46 = vector.shape_cast %45 : vector<2x8x8x32xf32> to vector<128x32xf32>
    %c1_72 = arith.constant 1 : index
    %c1_73 = arith.constant 1 : index
    %c0_74 = arith.constant 0 : index
    %c0_75 = arith.constant 0 : index
    %47 = vector.load %arg2[%c1_72, %c1_73, %c0_74, %c0_75] : memref<4x4x32x64xf32, #tpu.memory_space<vmem>>, vector<1x1x32x64xf32>
    %48 = vector.shape_cast %47 : vector<1x1x32x64xf32> to vector<32x64xf32>
    %cst_76 = arith.constant dense<0.000000e+00> : vector<128x64xf32>
    %49 = tpu.matmul %46, %48, %cst_76 {dimension_numbers = #tpu.dot_dimension_numbers<[1], [0], [0], [1], [0, 0, 1, 1], [], []>} : vector<128x32xf32>, vector<32x64xf32>, vector<128x64xf32> -> vector<128x64xf32>
    %50 = arith.addf %44, %49 : vector<128x64xf32>
    %c0_77 = arith.constant 0 : index
    %c1_78 = arith.constant 1 : index
    %c2_79 = arith.constant 2 : index
    %c0_80 = arith.constant 0 : index
    %51 = tpu.strided_load %arg10[%c0_77, %c1_78, %c2_79, %c0_80] {strides = array<i32: 1, 2, 2, 1>} : memref<2x18x18x32xf32, #tpu.memory_space<vmem>>, vector<2x8x8x32xf32>
    %52 = vector.shape_cast %51 : vector<2x8x8x32xf32> to vector<128x32xf32>
    %c1_81 = arith.constant 1 : index
    %c2_82 = arith.constant 2 : index
    %c0_83 = arith.constant 0 : index
    %c0_84 = arith.constant 0 : index
    %53 = vector.load %arg2[%c1_81, %c2_82, %c0_83, %c0_84] : memref<4x4x32x64xf32, #tpu.memory_space<vmem>>, vector<1x1x32x64xf32>
    %54 = vector.shape_cast %53 : vector<1x1x32x64xf32> to vector<32x64xf32>
    %cst_85 = arith.constant dense<0.000000e+00> : vector<128x64xf32>
    %55 = tpu.matmul %52, %54, %cst_85 {dimension_numbers = #tpu.dot_dimension_numbers<[1], [0], [0], [1], [0, 0, 1, 1], [], []>} : vector<128x32xf32>, vector<32x64xf32>, vector<128x64xf32> -> vector<128x64xf32>
    %56 = arith.addf %50, %55 : vector<128x64xf32>
    %c0_86 = arith.constant 0 : index
    %c1_87 = arith.constant 1 : index
    %c3_88 = arith.constant 3 : index
    %c0_89 = arith.constant 0 : index
    %57 = tpu.strided_load %arg10[%c0_86, %c1_87, %c3_88, %c0_89] {strides = array<i32: 1, 2, 2, 1>} : memref<2x18x18x32xf32, #tpu.memory_space<vmem>>, vector<2x8x8x32xf32>
    %58 = vector.shape_cast %57 : vector<2x8x8x32xf32> to vector<128x32xf32>
    %c1_90 = arith.constant 1 : index
    %c3_91 = arith.constant 3 : index
    %c0_92 = arith.constant 0 : index
    %c0_93 = arith.constant 0 : index
    %59 = vector.load %arg2[%c1_90, %c3_91, %c0_92, %c0_93] : memref<4x4x32x64xf32, #tpu.memory_space<vmem>>, vector<1x1x32x64xf32>
    %60 = vector.shape_cast %59 : vector<1x1x32x64xf32> to vector<32x64xf32>
    %cst_94 = arith.constant dense<0.000000e+00> : vector<128x64xf32>
    %61 = tpu.matmul %58, %60, %cst_94 {dimension_numbers = #tpu.dot_dimension_numbers<[1], [0], [0], [1], [0, 0, 1, 1], [], []>} : vector<128x32xf32>, vector<32x64xf32>, vector<128x64xf32> -> vector<128x64xf32>
    %62 = arith.addf %56, %61 : vector<128x64xf32>
    %c0_95 = arith.constant 0 : index
    %c2_96 = arith.constant 2 : index
    %c0_97 = arith.constant 0 : index
    %c0_98 = arith.constant 0 : index
    %63 = tpu.strided_load %arg10[%c0_95, %c2_96, %c0_97, %c0_98] {strides = array<i32: 1, 2, 2, 1>} : memref<2x18x18x32xf32, #tpu.memory_space<vmem>>, vector<2x8x8x32xf32>
    %64 = vector.shape_cast %63 : vector<2x8x8x32xf32> to vector<128x32xf32>
    %c2_99 = arith.constant 2 : index
    %c0_100 = arith.constant 0 : index
    %c0_101 = arith.constant 0 : index
    %c0_102 = arith.constant 0 : index
    %65 = vector.load %arg2[%c2_99, %c0_100, %c0_101, %c0_102] : memref<4x4x32x64xf32, #tpu.memory_space<vmem>>, vector<1x1x32x64xf32>
    %66 = vector.shape_cast %65 : vector<1x1x32x64xf32> to vector<32x64xf32>
    %cst_103 = arith.constant dense<0.000000e+00> : vector<128x64xf32>
    %67 = tpu.matmul %64, %66, %cst_103 {dimension_numbers = #tpu.dot_dimension_numbers<[1], [0], [0], [1], [0, 0, 1, 1], [], []>} : vector<128x32xf32>, vector<32x64xf32>, vector<128x64xf32> -> vector<128x64xf32>
    %68 = arith.addf %62, %67 : vector<128x64xf32>
    %c0_104 = arith.constant 0 : index
    %c2_105 = arith.constant 2 : index
    %c1_106 = arith.constant 1 : index
    %c0_107 = arith.constant 0 : index
    %69 = tpu.strided_load %arg10[%c0_104, %c2_105, %c1_106, %c0_107] {strides = array<i32: 1, 2, 2, 1>} : memref<2x18x18x32xf32, #tpu.memory_space<vmem>>, vector<2x8x8x32xf32>
    %70 = vector.shape_cast %69 : vector<2x8x8x32xf32> to vector<128x32xf32>
    %c2_108 = arith.constant 2 : index
    %c1_109 = arith.constant 1 : index
    %c0_110 = arith.constant 0 : index
    %c0_111 = arith.constant 0 : index
    %71 = vector.load %arg2[%c2_108, %c1_109, %c0_110, %c0_111] : memref<4x4x32x64xf32, #tpu.memory_space<vmem>>, vector<1x1x32x64xf32>
    %72 = vector.shape_cast %71 : vector<1x1x32x64xf32> to vector<32x64xf32>
    %cst_112 = arith.constant dense<0.000000e+00> : vector<128x64xf32>
    %73 = tpu.matmul %70, %72, %cst_112 {dimension_numbers = #tpu.dot_dimension_numbers<[1], [0], [0], [1], [0, 0, 1, 1], [], []>} : vector<128x32xf32>, vector<32x64xf32>, vector<128x64xf32> -> vector<128x64xf32>
    %74 = arith.addf %68, %73 : vector<128x64xf32>
    %c0_113 = arith.constant 0 : index
    %c2_114 = arith.constant 2 : index
    %c2_115 = arith.constant 2 : index
    %c0_116 = arith.constant 0 : index
    %75 = tpu.strided_load %arg10[%c0_113, %c2_114, %c2_115, %c0_116] {strides = array<i32: 1, 2, 2, 1>} : memref<2x18x18x32xf32, #tpu.memory_space<vmem>>, vector<2x8x8x32xf32>
    %76 = vector.shape_cast %75 : vector<2x8x8x32xf32> to vector<128x32xf32>
    %c2_117 = arith.constant 2 : index
    %c2_118 = arith.constant 2 : index
    %c0_119 = arith.constant 0 : index
    %c0_120 = arith.constant 0 : index
    %77 = vector.load %arg2[%c2_117, %c2_118, %c0_119, %c0_120] : memref<4x4x32x64xf32, #tpu.memory_space<vmem>>, vector<1x1x32x64xf32>
    %78 = vector.shape_cast %77 : vector<1x1x32x64xf32> to vector<32x64xf32>
    %cst_121 = arith.constant dense<0.000000e+00> : vector<128x64xf32>
    %79 = tpu.matmul %76, %78, %cst_121 {dimension_numbers = #tpu.dot_dimension_numbers<[1], [0], [0], [1], [0, 0, 1, 1], [], []>} : vector<128x32xf32>, vector<32x64xf32>, vector<128x64xf32> -> vector<128x64xf32>
    %80 = arith.addf %74, %79 : vector<128x64xf32>
    %c0_122 = arith.constant 0 : index
    %c2_123 = arith.constant 2 : index
    %c3_124 = arith.constant 3 : index
    %c0_125 = arith.constant 0 : index
    %81 = tpu.strided_load %arg10[%c0_122, %c2_123, %c3_124, %c0_125] {strides = array<i32: 1, 2, 2, 1>} : memref<2x18x18x32xf32, #tpu.memory_space<vmem>>, vector<2x8x8x32xf32>
    %82 = vector.shape_cast %81 : vector<2x8x8x32xf32> to vector<128x32xf32>
    %c2_126 = arith.constant 2 : index
    %c3_127 = arith.constant 3 : index
    %c0_128 = arith.constant 0 : index
    %c0_129 = arith.constant 0 : index
    %83 = vector.load %arg2[%c2_126, %c3_127, %c0_128, %c0_129] : memref<4x4x32x64xf32, #tpu.memory_space<vmem>>, vector<1x1x32x64xf32>
    %84 = vector.shape_cast %83 : vector<1x1x32x64xf32> to vector<32x64xf32>
    %cst_130 = arith.constant dense<0.000000e+00> : vector<128x64xf32>
    %85 = tpu.matmul %82, %84, %cst_130 {dimension_numbers = #tpu.dot_dimension_numbers<[1], [0], [0], [1], [0, 0, 1, 1], [], []>} : vector<128x32xf32>, vector<32x64xf32>, vector<128x64xf32> -> vector<128x64xf32>
    %86 = arith.addf %80, %85 : vector<128x64xf32>
    %c0_131 = arith.constant 0 : index
    %c3_132 = arith.constant 3 : index
    %c0_133 = arith.constant 0 : index
    %c0_134 = arith.constant 0 : index
    %87 = tpu.strided_load %arg10[%c0_131, %c3_132, %c0_133, %c0_134] {strides = array<i32: 1, 2, 2, 1>} : memref<2x18x18x32xf32, #tpu.memory_space<vmem>>, vector<2x8x8x32xf32>
    %88 = vector.shape_cast %87 : vector<2x8x8x32xf32> to vector<128x32xf32>
    %c3_135 = arith.constant 3 : index
    %c0_136 = arith.constant 0 : index
    %c0_137 = arith.constant 0 : index
    %c0_138 = arith.constant 0 : index
    %89 = vector.load %arg2[%c3_135, %c0_136, %c0_137, %c0_138] : memref<4x4x32x64xf32, #tpu.memory_space<vmem>>, vector<1x1x32x64xf32>
    %90 = vector.shape_cast %89 : vector<1x1x32x64xf32> to vector<32x64xf32>
    %cst_139 = arith.constant dense<0.000000e+00> : vector<128x64xf32>
    %91 = tpu.matmul %88, %90, %cst_139 {dimension_numbers = #tpu.dot_dimension_numbers<[1], [0], [0], [1], [0, 0, 1, 1], [], []>} : vector<128x32xf32>, vector<32x64xf32>, vector<128x64xf32> -> vector<128x64xf32>
    %92 = arith.addf %86, %91 : vector<128x64xf32>
    %c0_140 = arith.constant 0 : index
    %c3_141 = arith.constant 3 : index
    %c1_142 = arith.constant 1 : index
    %c0_143 = arith.constant 0 : index
    %93 = tpu.strided_load %arg10[%c0_140, %c3_141, %c1_142, %c0_143] {strides = array<i32: 1, 2, 2, 1>} : memref<2x18x18x32xf32, #tpu.memory_space<vmem>>, vector<2x8x8x32xf32>
    %94 = vector.shape_cast %93 : vector<2x8x8x32xf32> to vector<128x32xf32>
    %c3_144 = arith.constant 3 : index
    %c1_145 = arith.constant 1 : index
    %c0_146 = arith.constant 0 : index
    %c0_147 = arith.constant 0 : index
    %95 = vector.load %arg2[%c3_144, %c1_145, %c0_146, %c0_147] : memref<4x4x32x64xf32, #tpu.memory_space<vmem>>, vector<1x1x32x64xf32>
    %96 = vector.shape_cast %95 : vector<1x1x32x64xf32> to vector<32x64xf32>
    %cst_148 = arith.constant dense<0.000000e+00> : vector<128x64xf32>
    %97 = tpu.matmul %94, %96, %cst_148 {dimension_numbers = #tpu.dot_dimension_numbers<[1], [0], [0], [1], [0, 0, 1, 1], [], []>} : vector<128x32xf32>, vector<32x64xf32>, vector<128x64xf32> -> vector<128x64xf32>
    %98 = arith.addf %92, %97 : vector<128x64xf32>
    %c0_149 = arith.constant 0 : index
    %c3_150 = arith.constant 3 : index
    %c2_151 = arith.constant 2 : index
    %c0_152 = arith.constant 0 : index
    %99 = tpu.strided_load %arg10[%c0_149, %c3_150, %c2_151, %c0_152] {strides = array<i32: 1, 2, 2, 1>} : memref<2x18x18x32xf32, #tpu.memory_space<vmem>>, vector<2x8x8x32xf32>
    %100 = vector.shape_cast %99 : vector<2x8x8x32xf32> to vector<128x32xf32>
    %c3_153 = arith.constant 3 : index
    %c2_154 = arith.constant 2 : index
    %c0_155 = arith.constant 0 : index
    %c0_156 = arith.constant 0 : index
    %101 = vector.load %arg2[%c3_153, %c2_154, %c0_155, %c0_156] : memref<4x4x32x64xf32, #tpu.memory_space<vmem>>, vector<1x1x32x64xf32>
    %102 = vector.shape_cast %101 : vector<1x1x32x64xf32> to vector<32x64xf32>
    %cst_157 = arith.constant dense<0.000000e+00> : vector<128x64xf32>
    %103 = tpu.matmul %100, %102, %cst_157 {dimension_numbers = #tpu.dot_dimension_numbers<[1], [0], [0], [1], [0, 0, 1, 1], [], []>} : vector<128x32xf32>, vector<32x64xf32>, vector<128x64xf32> -> vector<128x64xf32>
    %104 = arith.addf %98, %103 : vector<128x64xf32>
    %c0_158 = arith.constant 0 : index
    %c3_159 = arith.constant 3 : index
    %c3_160 = arith.constant 3 : index
    %c0_161 = arith.constant 0 : index
    %105 = tpu.strided_load %arg10[%c0_158, %c3_159, %c3_160, %c0_161] {strides = array<i32: 1, 2, 2, 1>} : memref<2x18x18x32xf32, #tpu.memory_space<vmem>>, vector<2x8x8x32xf32>
    %106 = vector.shape_cast %105 : vector<2x8x8x32xf32> to vector<128x32xf32>
    %c3_162 = arith.constant 3 : index
    %c3_163 = arith.constant 3 : index
    %c0_164 = arith.constant 0 : index
    %c0_165 = arith.constant 0 : index
    %107 = vector.load %arg2[%c3_162, %c3_163, %c0_164, %c0_165] : memref<4x4x32x64xf32, #tpu.memory_space<vmem>>, vector<1x1x32x64xf32>
    %108 = vector.shape_cast %107 : vector<1x1x32x64xf32> to vector<32x64xf32>
    %cst_166 = arith.constant dense<0.000000e+00> : vector<128x64xf32>
    %109 = tpu.matmul %106, %108, %cst_166 {dimension_numbers = #tpu.dot_dimension_numbers<[1], [0], [0], [1], [0, 0, 1, 1], [], []>} : vector<128x32xf32>, vector<32x64xf32>, vector<128x64xf32> -> vector<128x64xf32>
    %110 = arith.addf %104, %109 : vector<128x64xf32>
    %c0_167 = arith.constant 0 : index
    %c0_168 = arith.constant 0 : index
    %111 = vector.load %arg3[%c0_167, %c0_168] : memref<1x64xf32, #tpu.memory_space<vmem>>, vector<1x64xf32>
    %c0_169 = arith.constant 0 : index
    %c0_170 = arith.constant 0 : index
    %112 = vector.load %arg4[%c0_169, %c0_170] : memref<1x64xf32, #tpu.memory_space<vmem>>, vector<1x64xf32>
    %cst_171 = arith.constant dense<0.000000e+00> : vector<64xf32>
    %113 = vector.multi_reduction <add>, %110, %cst_171 [0] : vector<128x64xf32> to vector<64xf32>
    %114 = vector.shape_cast %113 : vector<64xf32> to vector<1x64xf32>
    %cst_172 = arith.constant 1.280000e+02 : f32
    %115 = vector.broadcast %cst_172 : f32 to vector<1x64xf32>
    %116 = arith.divf %114, %115 : vector<1x64xf32>
    %117 = arith.mulf %110, %110 : vector<128x64xf32>
    %cst_173 = arith.constant dense<0.000000e+00> : vector<64xf32>
    %118 = vector.multi_reduction <add>, %117, %cst_173 [0] : vector<128x64xf32> to vector<64xf32>
    %119 = vector.shape_cast %118 : vector<64xf32> to vector<1x64xf32>
    %cst_174 = arith.constant 1.280000e+02 : f32
    %120 = vector.broadcast %cst_174 : f32 to vector<1x64xf32>
    %121 = arith.divf %119, %120 : vector<1x64xf32>
    %122 = arith.mulf %116, %116 : vector<1x64xf32>
    %123 = arith.subf %121, %122 : vector<1x64xf32>
    %124 = vector.broadcast %116 : vector<1x64xf32> to vector<128x64xf32>
    %125 = arith.subf %110, %124 : vector<128x64xf32>
    %cst_175 = arith.constant 9.99999974E-6 : f32
    %126 = vector.broadcast %cst_175 : f32 to vector<1x64xf32>
    %127 = arith.addf %123, %126 : vector<1x64xf32>
    %128 = math.rsqrt %127 : vector<1x64xf32>
    %129 = vector.broadcast %128 : vector<1x64xf32> to vector<128x64xf32>
    %130 = arith.mulf %125, %129 : vector<128x64xf32>
    %131 = vector.broadcast %111 : vector<1x64xf32> to vector<128x64xf32>
    %132 = arith.mulf %130, %131 : vector<128x64xf32>
    %133 = vector.broadcast %112 : vector<1x64xf32> to vector<128x64xf32>
    %134 = arith.addf %132, %133 : vector<128x64xf32>
    %cst_176 = arith.constant 2.000000e-01 : f32
    %135 = vector.broadcast %cst_176 : f32 to vector<128x64xf32>
    %136 = arith.mulf %135, %134 : vector<128x64xf32>
    %137 = arith.maximumf %134, %136 : vector<128x64xf32>
    %cst_177 = arith.constant 0.000000e+00 : f32
    %138 = vector.broadcast %cst_177 : f32 to vector<2x1x10x64xf32>
    %cst_178 = arith.constant 0.000000e+00 : f32
    %139 = vector.broadcast %cst_178 : f32 to vector<2x10x1x64xf32>
    %c0_179 = arith.constant 0 : index
    %c0_180 = arith.constant 0 : index
    %c0_181 = arith.constant 0 : index
    %c0_182 = arith.constant 0 : index
    %140 = vector.load %arg11[%c0_179, %c0_180, %c0_181, %c0_182] : memref<2x10x10x64xf32, #tpu.memory_space<vmem>>, vector<2x1x10x64xf32>
    tpu.vector_store %arg11[%c0_179, %c0_180, %c0_181, %c0_182], %138 {strides = array<i32>} : memref<2x10x10x64xf32, #tpu.memory_space<vmem>>, vector<2x1x10x64xf32>,
    %c0_183 = arith.constant 0 : index
    %c9 = arith.constant 9 : index
    %c0_184 = arith.constant 0 : index
    %c0_185 = arith.constant 0 : index
    %141 = vector.load %arg11[%c0_183, %c9, %c0_184, %c0_185] : memref<2x10x10x64xf32, #tpu.memory_space<vmem>>, vector<2x1x10x64xf32>
    tpu.vector_store %arg11[%c0_183, %c9, %c0_184, %c0_185], %138 {strides = array<i32>} : memref<2x10x10x64xf32, #tpu.memory_space<vmem>>, vector<2x1x10x64xf32>,
    %c0_186 = arith.constant 0 : index
    %c0_187 = arith.constant 0 : index
    %c0_188 = arith.constant 0 : index
    %c0_189 = arith.constant 0 : index
    %142 = vector.load %arg11[%c0_186, %c0_187, %c0_188, %c0_189] : memref<2x10x10x64xf32, #tpu.memory_space<vmem>>, vector<2x10x1x64xf32>
    tpu.vector_store %arg11[%c0_186, %c0_187, %c0_188, %c0_189], %139 {strides = array<i32>} : memref<2x10x10x64xf32, #tpu.memory_space<vmem>>, vector<2x10x1x64xf32>,
    %c0_190 = arith.constant 0 : index
    %c0_191 = arith.constant 0 : index
    %c9_192 = arith.constant 9 : index
    %c0_193 = arith.constant 0 : index
    %143 = vector.load %arg11[%c0_190, %c0_191, %c9_192, %c0_193] : memref<2x10x10x64xf32, #tpu.memory_space<vmem>>, vector<2x10x1x64xf32>
    tpu.vector_store %arg11[%c0_190, %c0_191, %c9_192, %c0_193], %139 {strides = array<i32>} : memref<2x10x10x64xf32, #tpu.memory_space<vmem>>, vector<2x10x1x64xf32>,
    %144 = vector.shape_cast %137 : vector<128x64xf32> to vector<2x8x8x64xf32>
    %c0_194 = arith.constant 0 : index
    %c1_195 = arith.constant 1 : index
    %c1_196 = arith.constant 1 : index
    %c0_197 = arith.constant 0 : index
    %145 = vector.load %arg11[%c0_194, %c1_195, %c1_196, %c0_197] : memref<2x10x10x64xf32, #tpu.memory_space<vmem>>, vector<2x8x8x64xf32>
    tpu.vector_store %arg11[%c0_194, %c1_195, %c1_196, %c0_197], %144 {strides = array<i32>} : memref<2x10x10x64xf32, #tpu.memory_space<vmem>>, vector<2x8x8x64xf32>,
    %cst_198 = arith.constant 0.000000e+00 : f32
    %146 = vector.broadcast %cst_198 : f32 to vector<32x128xf32>
    %c0_199 = arith.constant 0 : index
    %c0_200 = arith.constant 0 : index
    %c0_201 = arith.constant 0 : index
    %c0_202 = arith.constant 0 : index
    %147 = tpu.strided_load %arg11[%c0_199, %c0_200, %c0_201, %c0_202] {strides = array<i32: 1, 2, 2, 1>} : memref<2x10x10x64xf32, #tpu.memory_space<vmem>>, vector<2x4x4x64xf32>
    %148 = vector.shape_cast %147 : vector<2x4x4x64xf32> to vector<32x64xf32>
    %c0_203 = arith.constant 0 : index
    %c0_204 = arith.constant 0 : index
    %c0_205 = arith.constant 0 : index
    %c0_206 = arith.constant 0 : index
    %149 = vector.load %arg5[%c0_203, %c0_204, %c0_205, %c0_206] : memref<4x4x64x128xf32, #tpu.memory_space<vmem>>, vector<1x1x64x128xf32>
    %150 = vector.shape_cast %149 : vector<1x1x64x128xf32> to vector<64x128xf32>
    %cst_207 = arith.constant dense<0.000000e+00> : vector<32x128xf32>
    %151 = tpu.matmul %148, %150, %cst_207 {dimension_numbers = #tpu.dot_dimension_numbers<[1], [0], [0], [1], [0, 0, 1, 1], [], []>} : vector<32x64xf32>, vector<64x128xf32>, vector<32x128xf32> -> vector<32x128xf32>
    %152 = arith.addf %146, %151 : vector<32x128xf32>
    %c0_208 = arith.constant 0 : index
    %c0_209 = arith.constant 0 : index
    %c1_210 = arith.constant 1 : index
    %c0_211 = arith.constant 0 : index
    %153 = tpu.strided_load %arg11[%c0_208, %c0_209, %c1_210, %c0_211] {strides = array<i32: 1, 2, 2, 1>} : memref<2x10x10x64xf32, #tpu.memory_space<vmem>>, vector<2x4x4x64xf32>
    %154 = vector.shape_cast %153 : vector<2x4x4x64xf32> to vector<32x64xf32>
    %c0_212 = arith.constant 0 : index
    %c1_213 = arith.constant 1 : index
    %c0_214 = arith.constant 0 : index
    %c0_215 = arith.constant 0 : index
    %155 = vector.load %arg5[%c0_212, %c1_213, %c0_214, %c0_215] : memref<4x4x64x128xf32, #tpu.memory_space<vmem>>, vector<1x1x64x128xf32>
    %156 = vector.shape_cast %155 : vector<1x1x64x128xf32> to vector<64x128xf32>
    %cst_216 = arith.constant dense<0.000000e+00> : vector<32x128xf32>
    %157 = tpu.matmul %154, %156, %cst_216 {dimension_numbers = #tpu.dot_dimension_numbers<[1], [0], [0], [1], [0, 0, 1, 1], [], []>} : vector<32x64xf32>, vector<64x128xf32>, vector<32x128xf32> -> vector<32x128xf32>
    %158 = arith.addf %152, %157 : vector<32x128xf32>
    %c0_217 = arith.constant 0 : index
    %c0_218 = arith.constant 0 : index
    %c2_219 = arith.constant 2 : index
    %c0_220 = arith.constant 0 : index
    %159 = tpu.strided_load %arg11[%c0_217, %c0_218, %c2_219, %c0_220] {strides = array<i32: 1, 2, 2, 1>} : memref<2x10x10x64xf32, #tpu.memory_space<vmem>>, vector<2x4x4x64xf32>
    %160 = vector.shape_cast %159 : vector<2x4x4x64xf32> to vector<32x64xf32>
    %c0_221 = arith.constant 0 : index
    %c2_222 = arith.constant 2 : index
    %c0_223 = arith.constant 0 : index
    %c0_224 = arith.constant 0 : index
    %161 = vector.load %arg5[%c0_221, %c2_222, %c0_223, %c0_224] : memref<4x4x64x128xf32, #tpu.memory_space<vmem>>, vector<1x1x64x128xf32>
    %162 = vector.shape_cast %161 : vector<1x1x64x128xf32> to vector<64x128xf32>
    %cst_225 = arith.constant dense<0.000000e+00> : vector<32x128xf32>
    %163 = tpu.matmul %160, %162, %cst_225 {dimension_numbers = #tpu.dot_dimension_numbers<[1], [0], [0], [1], [0, 0, 1, 1], [], []>} : vector<32x64xf32>, vector<64x128xf32>, vector<32x128xf32> -> vector<32x128xf32>
    %164 = arith.addf %158, %163 : vector<32x128xf32>
    %c0_226 = arith.constant 0 : index
    %c0_227 = arith.constant 0 : index
    %c3_228 = arith.constant 3 : index
    %c0_229 = arith.constant 0 : index
    %165 = tpu.strided_load %arg11[%c0_226, %c0_227, %c3_228, %c0_229] {strides = array<i32: 1, 2, 2, 1>} : memref<2x10x10x64xf32, #tpu.memory_space<vmem>>, vector<2x4x4x64xf32>
    %166 = vector.shape_cast %165 : vector<2x4x4x64xf32> to vector<32x64xf32>
    %c0_230 = arith.constant 0 : index
    %c3_231 = arith.constant 3 : index
    %c0_232 = arith.constant 0 : index
    %c0_233 = arith.constant 0 : index
    %167 = vector.load %arg5[%c0_230, %c3_231, %c0_232, %c0_233] : memref<4x4x64x128xf32, #tpu.memory_space<vmem>>, vector<1x1x64x128xf32>
    %168 = vector.shape_cast %167 : vector<1x1x64x128xf32> to vector<64x128xf32>
    %cst_234 = arith.constant dense<0.000000e+00> : vector<32x128xf32>
    %169 = tpu.matmul %166, %168, %cst_234 {dimension_numbers = #tpu.dot_dimension_numbers<[1], [0], [0], [1], [0, 0, 1, 1], [], []>} : vector<32x64xf32>, vector<64x128xf32>, vector<32x128xf32> -> vector<32x128xf32>
    %170 = arith.addf %164, %169 : vector<32x128xf32>
    %c0_235 = arith.constant 0 : index
    %c1_236 = arith.constant 1 : index
    %c0_237 = arith.constant 0 : index
    %c0_238 = arith.constant 0 : index
    %171 = tpu.strided_load %arg11[%c0_235, %c1_236, %c0_237, %c0_238] {strides = array<i32: 1, 2, 2, 1>} : memref<2x10x10x64xf32, #tpu.memory_space<vmem>>, vector<2x4x4x64xf32>
    %172 = vector.shape_cast %171 : vector<2x4x4x64xf32> to vector<32x64xf32>
    %c1_239 = arith.constant 1 : index
    %c0_240 = arith.constant 0 : index
    %c0_241 = arith.constant 0 : index
    %c0_242 = arith.constant 0 : index
    %173 = vector.load %arg5[%c1_239, %c0_240, %c0_241, %c0_242] : memref<4x4x64x128xf32, #tpu.memory_space<vmem>>, vector<1x1x64x128xf32>
    %174 = vector.shape_cast %173 : vector<1x1x64x128xf32> to vector<64x128xf32>
    %cst_243 = arith.constant dense<0.000000e+00> : vector<32x128xf32>
    %175 = tpu.matmul %172, %174, %cst_243 {dimension_numbers = #tpu.dot_dimension_numbers<[1], [0], [0], [1], [0, 0, 1, 1], [], []>} : vector<32x64xf32>, vector<64x128xf32>, vector<32x128xf32> -> vector<32x128xf32>
    %176 = arith.addf %170, %175 : vector<32x128xf32>
    %c0_244 = arith.constant 0 : index
    %c1_245 = arith.constant 1 : index
    %c1_246 = arith.constant 1 : index
    %c0_247 = arith.constant 0 : index
    %177 = tpu.strided_load %arg11[%c0_244, %c1_245, %c1_246, %c0_247] {strides = array<i32: 1, 2, 2, 1>} : memref<2x10x10x64xf32, #tpu.memory_space<vmem>>, vector<2x4x4x64xf32>
    %178 = vector.shape_cast %177 : vector<2x4x4x64xf32> to vector<32x64xf32>
    %c1_248 = arith.constant 1 : index
    %c1_249 = arith.constant 1 : index
    %c0_250 = arith.constant 0 : index
    %c0_251 = arith.constant 0 : index
    %179 = vector.load %arg5[%c1_248, %c1_249, %c0_250, %c0_251] : memref<4x4x64x128xf32, #tpu.memory_space<vmem>>, vector<1x1x64x128xf32>
    %180 = vector.shape_cast %179 : vector<1x1x64x128xf32> to vector<64x128xf32>
    %cst_252 = arith.constant dense<0.000000e+00> : vector<32x128xf32>
    %181 = tpu.matmul %178, %180, %cst_252 {dimension_numbers = #tpu.dot_dimension_numbers<[1], [0], [0], [1], [0, 0, 1, 1], [], []>} : vector<32x64xf32>, vector<64x128xf32>, vector<32x128xf32> -> vector<32x128xf32>
    %182 = arith.addf %176, %181 : vector<32x128xf32>
    %c0_253 = arith.constant 0 : index
    %c1_254 = arith.constant 1 : index
    %c2_255 = arith.constant 2 : index
    %c0_256 = arith.constant 0 : index
    %183 = tpu.strided_load %arg11[%c0_253, %c1_254, %c2_255, %c0_256] {strides = array<i32: 1, 2, 2, 1>} : memref<2x10x10x64xf32, #tpu.memory_space<vmem>>, vector<2x4x4x64xf32>
    %184 = vector.shape_cast %183 : vector<2x4x4x64xf32> to vector<32x64xf32>
    %c1_257 = arith.constant 1 : index
    %c2_258 = arith.constant 2 : index
    %c0_259 = arith.constant 0 : index
    %c0_260 = arith.constant 0 : index
    %185 = vector.load %arg5[%c1_257, %c2_258, %c0_259, %c0_260] : memref<4x4x64x128xf32, #tpu.memory_space<vmem>>, vector<1x1x64x128xf32>
    %186 = vector.shape_cast %185 : vector<1x1x64x128xf32> to vector<64x128xf32>
    %cst_261 = arith.constant dense<0.000000e+00> : vector<32x128xf32>
    %187 = tpu.matmul %184, %186, %cst_261 {dimension_numbers = #tpu.dot_dimension_numbers<[1], [0], [0], [1], [0, 0, 1, 1], [], []>} : vector<32x64xf32>, vector<64x128xf32>, vector<32x128xf32> -> vector<32x128xf32>
    %188 = arith.addf %182, %187 : vector<32x128xf32>
    %c0_262 = arith.constant 0 : index
    %c1_263 = arith.constant 1 : index
    %c3_264 = arith.constant 3 : index
    %c0_265 = arith.constant 0 : index
    %189 = tpu.strided_load %arg11[%c0_262, %c1_263, %c3_264, %c0_265] {strides = array<i32: 1, 2, 2, 1>} : memref<2x10x10x64xf32, #tpu.memory_space<vmem>>, vector<2x4x4x64xf32>
    %190 = vector.shape_cast %189 : vector<2x4x4x64xf32> to vector<32x64xf32>
    %c1_266 = arith.constant 1 : index
    %c3_267 = arith.constant 3 : index
    %c0_268 = arith.constant 0 : index
    %c0_269 = arith.constant 0 : index
    %191 = vector.load %arg5[%c1_266, %c3_267, %c0_268, %c0_269] : memref<4x4x64x128xf32, #tpu.memory_space<vmem>>, vector<1x1x64x128xf32>
    %192 = vector.shape_cast %191 : vector<1x1x64x128xf32> to vector<64x128xf32>
    %cst_270 = arith.constant dense<0.000000e+00> : vector<32x128xf32>
    %193 = tpu.matmul %190, %192, %cst_270 {dimension_numbers = #tpu.dot_dimension_numbers<[1], [0], [0], [1], [0, 0, 1, 1], [], []>} : vector<32x64xf32>, vector<64x128xf32>, vector<32x128xf32> -> vector<32x128xf32>
    %194 = arith.addf %188, %193 : vector<32x128xf32>
    %c0_271 = arith.constant 0 : index
    %c2_272 = arith.constant 2 : index
    %c0_273 = arith.constant 0 : index
    %c0_274 = arith.constant 0 : index
    %195 = tpu.strided_load %arg11[%c0_271, %c2_272, %c0_273, %c0_274] {strides = array<i32: 1, 2, 2, 1>} : memref<2x10x10x64xf32, #tpu.memory_space<vmem>>, vector<2x4x4x64xf32>
    %196 = vector.shape_cast %195 : vector<2x4x4x64xf32> to vector<32x64xf32>
    %c2_275 = arith.constant 2 : index
    %c0_276 = arith.constant 0 : index
    %c0_277 = arith.constant 0 : index
    %c0_278 = arith.constant 0 : index
    %197 = vector.load %arg5[%c2_275, %c0_276, %c0_277, %c0_278] : memref<4x4x64x128xf32, #tpu.memory_space<vmem>>, vector<1x1x64x128xf32>
    %198 = vector.shape_cast %197 : vector<1x1x64x128xf32> to vector<64x128xf32>
    %cst_279 = arith.constant dense<0.000000e+00> : vector<32x128xf32>
    %199 = tpu.matmul %196, %198, %cst_279 {dimension_numbers = #tpu.dot_dimension_numbers<[1], [0], [0], [1], [0, 0, 1, 1], [], []>} : vector<32x64xf32>, vector<64x128xf32>, vector<32x128xf32> -> vector<32x128xf32>
    %200 = arith.addf %194, %199 : vector<32x128xf32>
    %c0_280 = arith.constant 0 : index
    %c2_281 = arith.constant 2 : index
    %c1_282 = arith.constant 1 : index
    %c0_283 = arith.constant 0 : index
    %201 = tpu.strided_load %arg11[%c0_280, %c2_281, %c1_282, %c0_283] {strides = array<i32: 1, 2, 2, 1>} : memref<2x10x10x64xf32, #tpu.memory_space<vmem>>, vector<2x4x4x64xf32>
    %202 = vector.shape_cast %201 : vector<2x4x4x64xf32> to vector<32x64xf32>
    %c2_284 = arith.constant 2 : index
    %c1_285 = arith.constant 1 : index
    %c0_286 = arith.constant 0 : index
    %c0_287 = arith.constant 0 : index
    %203 = vector.load %arg5[%c2_284, %c1_285, %c0_286, %c0_287] : memref<4x4x64x128xf32, #tpu.memory_space<vmem>>, vector<1x1x64x128xf32>
    %204 = vector.shape_cast %203 : vector<1x1x64x128xf32> to vector<64x128xf32>
    %cst_288 = arith.constant dense<0.000000e+00> : vector<32x128xf32>
    %205 = tpu.matmul %202, %204, %cst_288 {dimension_numbers = #tpu.dot_dimension_numbers<[1], [0], [0], [1], [0, 0, 1, 1], [], []>} : vector<32x64xf32>, vector<64x128xf32>, vector<32x128xf32> -> vector<32x128xf32>
    %206 = arith.addf %200, %205 : vector<32x128xf32>
    %c0_289 = arith.constant 0 : index
    %c2_290 = arith.constant 2 : index
    %c2_291 = arith.constant 2 : index
    %c0_292 = arith.constant 0 : index
    %207 = tpu.strided_load %arg11[%c0_289, %c2_290, %c2_291, %c0_292] {strides = array<i32: 1, 2, 2, 1>} : memref<2x10x10x64xf32, #tpu.memory_space<vmem>>, vector<2x4x4x64xf32>
    %208 = vector.shape_cast %207 : vector<2x4x4x64xf32> to vector<32x64xf32>
    %c2_293 = arith.constant 2 : index
    %c2_294 = arith.constant 2 : index
    %c0_295 = arith.constant 0 : index
    %c0_296 = arith.constant 0 : index
    %209 = vector.load %arg5[%c2_293, %c2_294, %c0_295, %c0_296] : memref<4x4x64x128xf32, #tpu.memory_space<vmem>>, vector<1x1x64x128xf32>
    %210 = vector.shape_cast %209 : vector<1x1x64x128xf32> to vector<64x128xf32>
    %cst_297 = arith.constant dense<0.000000e+00> : vector<32x128xf32>
    %211 = tpu.matmul %208, %210, %cst_297 {dimension_numbers = #tpu.dot_dimension_numbers<[1], [0], [0], [1], [0, 0, 1, 1], [], []>} : vector<32x64xf32>, vector<64x128xf32>, vector<32x128xf32> -> vector<32x128xf32>
    %212 = arith.addf %206, %211 : vector<32x128xf32>
    %c0_298 = arith.constant 0 : index
    %c2_299 = arith.constant 2 : index
    %c3_300 = arith.constant 3 : index
    %c0_301 = arith.constant 0 : index
    %213 = tpu.strided_load %arg11[%c0_298, %c2_299, %c3_300, %c0_301] {strides = array<i32: 1, 2, 2, 1>} : memref<2x10x10x64xf32, #tpu.memory_space<vmem>>, vector<2x4x4x64xf32>
    %214 = vector.shape_cast %213 : vector<2x4x4x64xf32> to vector<32x64xf32>
    %c2_302 = arith.constant 2 : index
    %c3_303 = arith.constant 3 : index
    %c0_304 = arith.constant 0 : index
    %c0_305 = arith.constant 0 : index
    %215 = vector.load %arg5[%c2_302, %c3_303, %c0_304, %c0_305] : memref<4x4x64x128xf32, #tpu.memory_space<vmem>>, vector<1x1x64x128xf32>
    %216 = vector.shape_cast %215 : vector<1x1x64x128xf32> to vector<64x128xf32>
    %cst_306 = arith.constant dense<0.000000e+00> : vector<32x128xf32>
    %217 = tpu.matmul %214, %216, %cst_306 {dimension_numbers = #tpu.dot_dimension_numbers<[1], [0], [0], [1], [0, 0, 1, 1], [], []>} : vector<32x64xf32>, vector<64x128xf32>, vector<32x128xf32> -> vector<32x128xf32>
    %218 = arith.addf %212, %217 : vector<32x128xf32>
    %c0_307 = arith.constant 0 : index
    %c3_308 = arith.constant 3 : index
    %c0_309 = arith.constant 0 : index
    %c0_310 = arith.constant 0 : index
    %219 = tpu.strided_load %arg11[%c0_307, %c3_308, %c0_309, %c0_310] {strides = array<i32: 1, 2, 2, 1>} : memref<2x10x10x64xf32, #tpu.memory_space<vmem>>, vector<2x4x4x64xf32>
    %220 = vector.shape_cast %219 : vector<2x4x4x64xf32> to vector<32x64xf32>
    %c3_311 = arith.constant 3 : index
    %c0_312 = arith.constant 0 : index
    %c0_313 = arith.constant 0 : index
    %c0_314 = arith.constant 0 : index
    %221 = vector.load %arg5[%c3_311, %c0_312, %c0_313, %c0_314] : memref<4x4x64x128xf32, #tpu.memory_space<vmem>>, vector<1x1x64x128xf32>
    %222 = vector.shape_cast %221 : vector<1x1x64x128xf32> to vector<64x128xf32>
    %cst_315 = arith.constant dense<0.000000e+00> : vector<32x128xf32>
    %223 = tpu.matmul %220, %222, %cst_315 {dimension_numbers = #tpu.dot_dimension_numbers<[1], [0], [0], [1], [0, 0, 1, 1], [], []>} : vector<32x64xf32>, vector<64x128xf32>, vector<32x128xf32> -> vector<32x128xf32>
    %224 = arith.addf %218, %223 : vector<32x128xf32>
    %c0_316 = arith.constant 0 : index
    %c3_317 = arith.constant 3 : index
    %c1_318 = arith.constant 1 : index
    %c0_319 = arith.constant 0 : index
    %225 = tpu.strided_load %arg11[%c0_316, %c3_317, %c1_318, %c0_319] {strides = array<i32: 1, 2, 2, 1>} : memref<2x10x10x64xf32, #tpu.memory_space<vmem>>, vector<2x4x4x64xf32>
    %226 = vector.shape_cast %225 : vector<2x4x4x64xf32> to vector<32x64xf32>
    %c3_320 = arith.constant 3 : index
    %c1_321 = arith.constant 1 : index
    %c0_322 = arith.constant 0 : index
    %c0_323 = arith.constant 0 : index
    %227 = vector.load %arg5[%c3_320, %c1_321, %c0_322, %c0_323] : memref<4x4x64x128xf32, #tpu.memory_space<vmem>>, vector<1x1x64x128xf32>
    %228 = vector.shape_cast %227 : vector<1x1x64x128xf32> to vector<64x128xf32>
    %cst_324 = arith.constant dense<0.000000e+00> : vector<32x128xf32>
    %229 = tpu.matmul %226, %228, %cst_324 {dimension_numbers = #tpu.dot_dimension_numbers<[1], [0], [0], [1], [0, 0, 1, 1], [], []>} : vector<32x64xf32>, vector<64x128xf32>, vector<32x128xf32> -> vector<32x128xf32>
    %230 = arith.addf %224, %229 : vector<32x128xf32>
    %c0_325 = arith.constant 0 : index
    %c3_326 = arith.constant 3 : index
    %c2_327 = arith.constant 2 : index
    %c0_328 = arith.constant 0 : index
    %231 = tpu.strided_load %arg11[%c0_325, %c3_326, %c2_327, %c0_328] {strides = array<i32: 1, 2, 2, 1>} : memref<2x10x10x64xf32, #tpu.memory_space<vmem>>, vector<2x4x4x64xf32>
    %232 = vector.shape_cast %231 : vector<2x4x4x64xf32> to vector<32x64xf32>
    %c3_329 = arith.constant 3 : index
    %c2_330 = arith.constant 2 : index
    %c0_331 = arith.constant 0 : index
    %c0_332 = arith.constant 0 : index
    %233 = vector.load %arg5[%c3_329, %c2_330, %c0_331, %c0_332] : memref<4x4x64x128xf32, #tpu.memory_space<vmem>>, vector<1x1x64x128xf32>
    %234 = vector.shape_cast %233 : vector<1x1x64x128xf32> to vector<64x128xf32>
    %cst_333 = arith.constant dense<0.000000e+00> : vector<32x128xf32>
    %235 = tpu.matmul %232, %234, %cst_333 {dimension_numbers = #tpu.dot_dimension_numbers<[1], [0], [0], [1], [0, 0, 1, 1], [], []>} : vector<32x64xf32>, vector<64x128xf32>, vector<32x128xf32> -> vector<32x128xf32>
    %236 = arith.addf %230, %235 : vector<32x128xf32>
    %c0_334 = arith.constant 0 : index
    %c3_335 = arith.constant 3 : index
    %c3_336 = arith.constant 3 : index
    %c0_337 = arith.constant 0 : index
    %237 = tpu.strided_load %arg11[%c0_334, %c3_335, %c3_336, %c0_337] {strides = array<i32: 1, 2, 2, 1>} : memref<2x10x10x64xf32, #tpu.memory_space<vmem>>, vector<2x4x4x64xf32>
    %238 = vector.shape_cast %237 : vector<2x4x4x64xf32> to vector<32x64xf32>
    %c3_338 = arith.constant 3 : index
    %c3_339 = arith.constant 3 : index
    %c0_340 = arith.constant 0 : index
    %c0_341 = arith.constant 0 : index
    %239 = vector.load %arg5[%c3_338, %c3_339, %c0_340, %c0_341] : memref<4x4x64x128xf32, #tpu.memory_space<vmem>>, vector<1x1x64x128xf32>
    %240 = vector.shape_cast %239 : vector<1x1x64x128xf32> to vector<64x128xf32>
    %cst_342 = arith.constant dense<0.000000e+00> : vector<32x128xf32>
    %241 = tpu.matmul %238, %240, %cst_342 {dimension_numbers = #tpu.dot_dimension_numbers<[1], [0], [0], [1], [0, 0, 1, 1], [], []>} : vector<32x64xf32>, vector<64x128xf32>, vector<32x128xf32> -> vector<32x128xf32>
    %242 = arith.addf %236, %241 : vector<32x128xf32>
    %c0_343 = arith.constant 0 : index
    %c0_344 = arith.constant 0 : index
    %243 = vector.load %arg6[%c0_343, %c0_344] : memref<1x128xf32, #tpu.memory_space<vmem>>, vector<1x128xf32>
    %c0_345 = arith.constant 0 : index
    %c0_346 = arith.constant 0 : index
    %244 = vector.load %arg7[%c0_345, %c0_346] : memref<1x128xf32, #tpu.memory_space<vmem>>, vector<1x128xf32>
    %cst_347 = arith.constant dense<0.000000e+00> : vector<128xf32>
    %245 = vector.multi_reduction <add>, %242, %cst_347 [0] : vector<32x128xf32> to vector<128xf32>
    %246 = vector.shape_cast %245 : vector<128xf32> to vector<1x128xf32>
    %cst_348 = arith.constant 3.200000e+01 : f32
    %247 = vector.broadcast %cst_348 : f32 to vector<1x128xf32>
    %248 = arith.divf %246, %247 : vector<1x128xf32>
    %249 = arith.mulf %242, %242 : vector<32x128xf32>
    %cst_349 = arith.constant dense<0.000000e+00> : vector<128xf32>
    %250 = vector.multi_reduction <add>, %249, %cst_349 [0] : vector<32x128xf32> to vector<128xf32>
    %251 = vector.shape_cast %250 : vector<128xf32> to vector<1x128xf32>
    %cst_350 = arith.constant 3.200000e+01 : f32
    %252 = vector.broadcast %cst_350 : f32 to vector<1x128xf32>
    %253 = arith.divf %251, %252 : vector<1x128xf32>
    %254 = arith.mulf %248, %248 : vector<1x128xf32>
    %255 = arith.subf %253, %254 : vector<1x128xf32>
    %256 = vector.broadcast %248 : vector<1x128xf32> to vector<32x128xf32>
    %257 = arith.subf %242, %256 : vector<32x128xf32>
    %cst_351 = arith.constant 9.99999974E-6 : f32
    %258 = vector.broadcast %cst_351 : f32 to vector<1x128xf32>
    %259 = arith.addf %255, %258 : vector<1x128xf32>
    %260 = math.rsqrt %259 : vector<1x128xf32>
    %261 = vector.broadcast %260 : vector<1x128xf32> to vector<32x128xf32>
    %262 = arith.mulf %257, %261 : vector<32x128xf32>
    %263 = vector.broadcast %243 : vector<1x128xf32> to vector<32x128xf32>
    %264 = arith.mulf %262, %263 : vector<32x128xf32>
    %265 = vector.broadcast %244 : vector<1x128xf32> to vector<32x128xf32>
    %266 = arith.addf %264, %265 : vector<32x128xf32>
    %cst_352 = arith.constant 2.000000e-01 : f32
    %267 = vector.broadcast %cst_352 : f32 to vector<32x128xf32>
    %268 = arith.mulf %267, %266 : vector<32x128xf32>
    %269 = arith.maximumf %266, %268 : vector<32x128xf32>
    %270 = vector.shape_cast %269 : vector<32x128xf32> to vector<2x16x128xf32>
    %c0_353 = arith.constant 0 : index
    %c0_354 = arith.constant 0 : index
    %271 = vector.load %arg8[%c0_353, %c0_354] : memref<16x128xf32, #tpu.memory_space<vmem>>, vector<16x128xf32>
    %272 = vector.shape_cast %271 : vector<16x128xf32> to vector<1x16x128xf32>
    %273 = vector.broadcast %272 : vector<1x16x128xf32> to vector<2x16x128xf32>
    %274 = arith.mulf %270, %273 : vector<2x16x128xf32>
    %cst_355 = arith.constant dense<0.000000e+00> : vector<2x128xf32>
    %275 = vector.multi_reduction <add>, %274, %cst_355 [1] : vector<2x16x128xf32> to vector<2x128xf32>
    %cst_356 = arith.constant dense<0.000000e+00> : vector<2xf32>
    %276 = vector.multi_reduction <add>, %275, %cst_356 [1] : vector<2x128xf32> to vector<2xf32>
    %277 = vector.shape_cast %276 : vector<2xf32> to vector<2x1xf32>
    %cst_357 = arith.constant 5.000000e-01 : f32
    %278 = vector.broadcast %cst_357 : f32 to vector<2x1xf32>
    %279 = arith.mulf %278, %277 : vector<2x1xf32>
    %280 = math.tanh %279 : vector<2x1xf32>
    %cst_358 = arith.constant 1.000000e+00 : f32
    %281 = vector.broadcast %cst_358 : f32 to vector<2x1xf32>
    %282 = arith.addf %280, %281 : vector<2x1xf32>
    %cst_359 = arith.constant 5.000000e-01 : f32
    %283 = vector.broadcast %cst_359 : f32 to vector<2x1xf32>
    %284 = arith.mulf %283, %282 : vector<2x1xf32>
    %285 = vector.shape_cast %284 : vector<2x1xf32> to vector<2x1xf32>
    %286 = vector.broadcast %285 : vector<2x1xf32> to vector<2x128xf32>
    %c0_360 = arith.constant 0 : index
    %c0_361 = arith.constant 0 : index
    %287 = vector.load %arg9[%c0_360, %c0_361] : memref<2x128xf32, #tpu.memory_space<vmem>>, vector<2x128xf32>
    tpu.vector_store %arg9[%c0_360, %c0_361], %286 {strides = array<i32>} : memref<2x128xf32, #tpu.memory_space<vmem>>, vector<2x128xf32>,
    return
  }
}

</mosaic_0001>

<bundles_post_ra>
// kernel: discriminator_forward.1
= control target key start
LH: loop header
LB: loop body
LE: loop exit
PB: predicated region body
PF: predicated region fallthrough
CT: control target
= control target key end

     0   :  { %vm102_vm0 = vcmask 392192   ;;  %vm632_vm1 = vcmask 261120   ;;  %v8334_v20 = vmov 0.0   ;;  %vm647_vm2 = vcmask 253952   ;;  %s8324_s1 = inlined_call_operand.vmem [shape: f32[48,32], index: 1, kind: input, shape index: {}]   ;;  %s8325_s0 = inlined_call_operand.vmem [shape: f32[512,48], index: 0, kind: input, shape index: {}]   ;;  %s8326_s2 = inlined_call_operand.vmem [shape: f32[4,4,32,64], index: 2, kind: input, shape index: {}]   ;;  %s8327_s3 = inlined_call_operand.vmem [shape: f32[1,64], index: 3, kind: input, shape index: {}]   ;;  %s8328_s4 = inlined_call_operand.vmem [shape: f32[1,64], index: 4, kind: input, shape index: {}]   ;;  %s8329_s5 = inlined_call_operand.vmem [shape: f32[4,4,64,128], index: 5, kind: input, shape index: {}]   ;;  %s8330_s6 = inlined_call_operand.vmem [shape: f32[1,128], index: 6, kind: input, shape index: {}]   ;;  %s8331_s7 = inlined_call_operand.vmem [shape: f32[1,128], index: 7, kind: input, shape index: {}]   ;;  %s8332_s8 = inlined_call_operand.vmem [shape: f32[16,128], index: 8, kind: input, shape index: {}]   ;;  %s8333_s9 = inlined_call_operand.vmem [shape: f32[2,128], index: 9, kind: output, shape index: {}]  }
   0x1   :  { %v101_v0 = vld [vmem:[%s8324_s1 + $0x28] sm:$0xff]  ;;  %v100_v1 = vld [vmem:[%s8324_s1 + $0x20] sm:$0xff]  ;;  %v99_v2 = vld [vmem:[%s8324_s1 + $0x18] sm:$0xff]  ;;  %633 = vst.msk [vmem:[#allocation2] sm:$0xff] %vm632_vm1, %v8334_v20  ;;  %vm635_vm3 = vcmask 254976   ;;  %vm3408_vm4 = vcmask 523264  }
   0x2   :  { %305 = vmatpush.msra.mxu0 %v101_v0  ;;  %v98_v3 = vld [vmem:[%s8324_s1 + $0x10] sm:$0xff]  ;;  %v97_v4 = vld [vmem:[%s8324_s1 + $0x8] sm:$0xff]  ;;  %v96_v5 = vld [vmem:[%s8324_s1] sm:$0xff]  ;;  %634 = vst.msk [vmem:[#allocation2 + $0x8] sm:$0xff] %vm632_vm1, %v8334_v20  ;;  %vm3624_vm6 = vcmask 517120   ;;  %vm3633_vm7 = vcmask 516096  }
   0x3   :  { %v32_v6 = vld [vmem:[%s8325_s0] sm:$0xff]  ;;  %v33_v7 = vld [vmem:[%s8325_s0 + $0x8] sm:$0xff]  ;;  %v34_v8 = vld [vmem:[%s8325_s0 + $0x10] sm:$0xff]  ;;  %637 = vst.msk [vmem:[#allocation2 + $0x1b0] sm:$0xff] %vm632_vm1, %v8334_v20  ;;  %vm5266_vm15 = vcmask 1041409  }
   0x4   :  { %306 = vmatpush.msra.mxu0 %v100_v1  ;;  %v35_v9 = vld [vmem:[%s8325_s0 + $0x18] sm:$0xff]  ;;  %v36_v10 = vld [vmem:[%s8325_s0 + $0x20] sm:$0xff]  ;;  %v37_v11 = vld [vmem:[%s8325_s0 + $0x28] sm:$0xff]  ;;  %638 = vst.msk [vmem:[#allocation2 + $0x1b8] sm:$0xff] %vm632_vm1, %v8334_v20 }
   0x5   :  { %v38_v12 = vld [vmem:[%s8325_s0 + $0x30] sm:$0xff]  ;;  %v39_v13 = vld [vmem:[%s8325_s0 + $0x38] sm:$0xff]  ;;  %v40_v14 = vld [vmem:[%s8325_s0 + $0x40] sm:$0xff]  ;;  %641 = vst.msk [vmem:[#allocation2 + $0x198] sm:$0xff] %vm632_vm1, %v8334_v20 }
   0x6   :  { %307 = vmatpush.msra.mxu0 %v99_v2  ;;  %v41_v15 = vld [vmem:[%s8325_s0 + $0x48] sm:$0xff]  ;;  %v42_v16 = vld [vmem:[%s8325_s0 + $0x50] sm:$0xff]  ;;  %v43_v17 = vld [vmem:[%s8325_s0 + $0x58] sm:$0xff]  ;;  %642 = vst.msk [vmem:[#allocation2 + $0x1a0] sm:$0xff] %vm632_vm1, %v8334_v20 }
   0x7   :  { %v44_v18 = vld [vmem:[%s8325_s0 + $0x60] sm:$0xff]  ;;  %v45_v19 = vld [vmem:[%s8325_s0 + $0x68] sm:$0xff]  ;;  %v46_v21 = vld [vmem:[%s8325_s0 + $0x70] sm:$0xff]  ;;  %644 = vst.msk [vmem:[#allocation2 + $0x348] sm:$0xff] %vm632_vm1, %v8334_v20 }
   0x8   :  { %308 = vmatpush.msra.mxu0 %v98_v3  ;;  %645 = vst.msk [vmem:[#allocation2 + $0x350] sm:$0xff] %vm632_vm1, %v8334_v20  ;;  %v5631_v22 = vld [vmem:[%s8326_s2 + $0x38] sm:$0xff]  ;;  %v5630_v25 = vld [vmem:[%s8326_s2 + $0x30] sm:$0xff]  ;;  %v5629_v29 = vld [vmem:[%s8326_s2 + $0x28] sm:$0xff] }
   0x9   :  { %v819_v23 = vld [vmem:[%s8326_s2 + $0x18] sm:$0xff]  ;;  %648 = vst.msk [vmem:[#allocation2] sm:$0x1] %vm647_vm2, %v8334_v20  ;;  %917 = vmatpush.msra.mxu1 %v5631_v22  ;;  %v818_v26 = vld [vmem:[%s8326_s2 + $0x10] sm:$0xff]  ;;  %v817_v30 = vld [vmem:[%s8326_s2 + $0x8] sm:$0xff] }
   0xa   :  { %309 = vmatpush.msra.mxu0 %v97_v4  ;;  %v5667_v24 = vld [vmem:[%s8326_s2 + $0x58] sm:$0xff]  ;;  %1030 = vmatpush.msra.mxu2 %v819_v23  ;;  %649 = vst.msk [vmem:[#allocation2 + $0x18] sm:$0x1] %vm647_vm2, %v8334_v20  ;;  %v5666_v27 = vld [vmem:[%s8326_s2 + $0x50] sm:$0xff]  ;;  %v5665_v31 = vld [vmem:[%s8326_s2 + $0x48] sm:$0xff] }
   0xb   :  { %1180 = vmatpush.msra.mxu3 %v5667_v24  ;;  %650 = vst.msk [vmem:[#allocation2 + $0x30] sm:$0x1] %vm647_vm2, %v8334_v20  ;;  %v47_v28 = vld [vmem:[%s8325_s0 + $0x78] sm:$0xff]  ;;  %918 = vmatpush.msra.mxu1 %v5630_v25  ;;  %v5628_v32 = vld [vmem:[%s8326_s2 + $0x20] sm:$0xff]  ;;  %v821_v35 = vld [vmem:[#allocation2 + $0x1] ss:$2 sm:$0xff] }
   0xc   :  { %310 = vmatpush.msra.mxu0 %v96_v5  ;;  %1031 = vmatpush.msra.mxu2 %v818_v26  ;;  %651 = vst.msk [vmem:[#allocation2 + $0x48] sm:$0x1] %vm647_vm2, %v8334_v20  ;;  %v816_v33 = vld [vmem:[%s8326_s2] sm:$0xff]  ;;  %v49_v42 = vld [vmem:[%s8325_s0 + $0x88] sm:$0xff]  ;;  %v50_v46 = vld [vmem:[%s8325_s0 + $0x90] sm:$0xff] }
   0xd   :  { %5564 = vmatmul.msk.f32.vlgmr.msra.gmra.mxu0 %vm102_vm0, %v32_v6  ;;  %1181 = vmatpush.msra.mxu3 %v5666_v27  ;;  %652 = vst.msk [vmem:[#allocation2 + $0x60] sm:$0x1] %vm647_vm2, %v8334_v20  ;;  %v5664_v34 = vld [vmem:[%s8326_s2 + $0x40] sm:$0xff]  ;;  %v51_v50 = vld [vmem:[%s8325_s0 + $0x98] sm:$0xff]  ;;  %v53_v58 = vld [vmem:[%s8325_s0 + $0xa8] sm:$0xff] }
   0xe   :  { %919 = vmatpush.msra.mxu1 %v5629_v29  ;;  %1032 = vmatpush.msra.mxu2 %v817_v30  ;;  %653 = vst.msk [vmem:[#allocation2 + $0x78] sm:$0x1] %vm647_vm2, %v8334_v20  ;;  %v48_v38 = vld [vmem:[%s8325_s0 + $0x80] sm:$0xff]  ;;  %v54_v59 = vld [vmem:[%s8325_s0 + $0xb0] sm:$0xff]  ;;  %v55_v62 = vld [vmem:[%s8325_s0 + $0xb8] sm:$0xff] }
   0xf   :  { %1182 = vmatpush.msra.mxu3 %v5665_v31  ;;  %654 = vst.msk [vmem:[#allocation2 + $0x90] sm:$0x1] %vm647_vm2, %v8334_v20  ;;  %v52_v54 = vld [vmem:[%s8325_s0 + $0xa0] sm:$0xff]  ;;  %v59_v25 = vld [vmem:[%s8325_s0 + $0xd8] sm:$0xff] }
  0x10   :  { %920 = vmatpush.msra.mxu1 %v5628_v32  ;;  %1033 = vmatpush.msra.mxu2 %v816_v33  ;;  %v785_v36 = vld [vmem:[#allocation2] ss:$2 sm:$0xff]  ;;  %655 = vst.msk [vmem:[#allocation2 + $0xa8] sm:$0x1] %vm647_vm2, %v8334_v20  ;;  %v56_v6 = vld [vmem:[%s8325_s0 + $0xc0] sm:$0xff] }
  0x11   :  { %1183 = vmatpush.msra.mxu3 %v5664_v34  ;;  %5632 = vmatmul.msk.f32.vlgmr.msra.gmra.mxu1 %vm632_vm1, %v821_v35  ;;  %656 = vst.msk [vmem:[#allocation2 + $0xc0] sm:$0x1] %vm647_vm2, %v8334_v20  ;;  %v60_v29 = vld [vmem:[%s8325_s0 + $0xe0] sm:$0xff] }
  0x12   :  { %5648 = vmatmul.msk.f32.vlgmr.msra.gmra.mxu2 %vm632_vm1, %v785_v36  ;;  %657 = vst.msk [vmem:[#allocation2 + $0xd8] sm:$0x1] %vm647_vm2, %v8334_v20  ;;  %v61_v36 = vld [vmem:[%s8325_s0 + $0xe8] sm:$0xff] }
  0x13   :  { %658 = vst.msk [vmem:[#allocation2 + $0xf0] sm:$0x1] %vm647_vm2, %v8334_v20 }
  0x14   :  { %659 = vst.msk [vmem:[#allocation2 + $0x108] sm:$0x1] %vm647_vm2, %v8334_v20 }
  0x15   :  { %5565 = vmatmul.msk.f32.gmra.mxu0 %vm102_vm0, %v33_v7  ;;  %660 = vst.msk [vmem:[#allocation2 + $0x120] sm:$0x1] %vm647_vm2, %v8334_v20 }
  0x16   :  { %661 = vst.msk [vmem:[#allocation2 + $0x138] sm:$0x1] %vm647_vm2, %v8334_v20 }
  0x17   :  { %662 = vst.msk [vmem:[#allocation2 + $0x150] sm:$0x1] %vm647_vm2, %v8334_v20 }
  0x18   :  { %663 = vst.msk [vmem:[#allocation2 + $0x168] sm:$0x1] %vm647_vm2, %v8334_v20 }
  0x19   :  { %664 = vst.msk [vmem:[#allocation2 + $0x180] sm:$0x1] %vm647_vm2, %v8334_v20 }
  0x1a   :  { %665 = vst.msk [vmem:[#allocation2 + $0x198] sm:$0x1] %vm647_vm2, %v8334_v20 }
  0x1b   :  { %666 = vst.msk [vmem:[#allocation2 + $0x1b0] sm:$0x1] %vm647_vm2, %v8334_v20 }
  0x1c   :  { %667 = vst.msk [vmem:[#allocation2 + $0x1c8] sm:$0x1] %vm647_vm2, %v8334_v20 }
  0x1d   :  { %5566 = vmatmul.msk.f32.gmra.mxu0 %vm102_vm0, %v34_v8  ;;  %668 = vst.msk [vmem:[#allocation2 + $0x1e0] sm:$0x1] %vm647_vm2, %v8334_v20 }
  0x1e   :  { %669 = vst.msk [vmem:[#allocation2 + $0x1f8] sm:$0x1] %vm647_vm2, %v8334_v20 }
  0x1f   :  { %670 = vst.msk [vmem:[#allocation2 + $0x210] sm:$0x1] %vm647_vm2, %v8334_v20 }
  0x20   :  { %671 = vst.msk [vmem:[#allocation2 + $0x228] sm:$0x1] %vm647_vm2, %v8334_v20 }
  0x21   :  { %672 = vst.msk [vmem:[#allocation2 + $0x240] sm:$0x1] %vm647_vm2, %v8334_v20 }
  0x22   :  { %673 = vst.msk [vmem:[#allocation2 + $0x258] sm:$0x1] %vm647_vm2, %v8334_v20 }
  0x23   :  { %674 = vst.msk [vmem:[#allocation2 + $0x270] sm:$0x1] %vm647_vm2, %v8334_v20 }
  0x24   :  { %675 = vst.msk [vmem:[#allocation2 + $0x288] sm:$0x1] %vm647_vm2, %v8334_v20 }
  0x25   :  { %5567 = vmatmul.msk.f32.gmra.mxu0 %vm102_vm0, %v35_v9  ;;  %676 = vst.msk [vmem:[#allocation2 + $0x2a0] sm:$0x1] %vm647_vm2, %v8334_v20 }
  0x26   :  { %677 = vst.msk [vmem:[#allocation2 + $0x2b8] sm:$0x1] %vm647_vm2, %v8334_v20 }
  0x27   :  { %678 = vst.msk [vmem:[#allocation2 + $0x2d0] sm:$0x1] %vm647_vm2, %v8334_v20 }
  0x28   :  { %679 = vst.msk [vmem:[#allocation2 + $0x2e8] sm:$0x1] %vm647_vm2, %v8334_v20 }
  0x29   :  { %680 = vst.msk [vmem:[#allocation2 + $0x300] sm:$0x1] %vm647_vm2, %v8334_v20 }
  0x2a   :  { %681 = vst.msk [vmem:[#allocation2 + $0x318] sm:$0x1] %vm647_vm2, %v8334_v20 }
  0x2b   :  { %682 = vst.msk [vmem:[#allocation2 + $0x330] sm:$0x1] %vm647_vm2, %v8334_v20 }
  0x2c   :  { %683 = vst.msk [vmem:[#allocation2 + $0x348] sm:$0x1] %vm647_vm2, %v8334_v20 }
  0x2d   :  { %5568 = vmatmul.msk.f32.gmra.mxu0 %vm102_vm0, %v36_v10  ;;  %685 = vst.msk [vmem:[#allocation2 + $0x29] sm:$0x1] %vm647_vm2, %v8334_v20 }
  0x2e   :  { %686 = vst.msk [vmem:[#allocation2 + $0x41] sm:$0x1] %vm647_vm2, %v8334_v20 }
  0x2f   :  { %687 = vst.msk [vmem:[#allocation2 + $0x59] sm:$0x1] %vm647_vm2, %v8334_v20 }
  0x30   :  { %688 = vst.msk [vmem:[#allocation2 + $0x71] sm:$0x1] %vm647_vm2, %v8334_v20 }
  0x31   :  { %689 = vst.msk [vmem:[#allocation2 + $0x89] sm:$0x1] %vm647_vm2, %v8334_v20 }
  0x32   :  { %690 = vst.msk [vmem:[#allocation2 + $0xa1] sm:$0x1] %vm647_vm2, %v8334_v20 }
  0x33   :  { %691 = vst.msk [vmem:[#allocation2 + $0xb9] sm:$0x1] %vm647_vm2, %v8334_v20 }
  0x34   :  { %692 = vst.msk [vmem:[#allocation2 + $0xd1] sm:$0x1] %vm647_vm2, %v8334_v20 }
  0x35   :  { %5569 = vmatmul.msk.f32.gmra.mxu0 %vm102_vm0, %v37_v11  ;;  %693 = vst.msk [vmem:[#allocation2 + $0xe9] sm:$0x1] %vm647_vm2, %v8334_v20 }
  0x36   :  { %694 = vst.msk [vmem:[#allocation2 + $0x101] sm:$0x1] %vm647_vm2, %v8334_v20 }
  0x37   :  { %695 = vst.msk [vmem:[#allocation2 + $0x119] sm:$0x1] %vm647_vm2, %v8334_v20 }
  0x38   :  { %696 = vst.msk [vmem:[#allocation2 + $0x131] sm:$0x1] %vm647_vm2, %v8334_v20 }
  0x39   :  { %697 = vst.msk [vmem:[#allocation2 + $0x149] sm:$0x1] %vm647_vm2, %v8334_v20 }
  0x3a   :  { %698 = vst.msk [vmem:[#allocation2 + $0x161] sm:$0x1] %vm647_vm2, %v8334_v20 }
  0x3b   :  { %699 = vst.msk [vmem:[#allocation2 + $0x179] sm:$0x1] %vm647_vm2, %v8334_v20 }
  0x3c   :  { %700 = vst.msk [vmem:[#allocation2 + $0x191] sm:$0x1] %vm647_vm2, %v8334_v20 }
  0x3d   :  { %5570 = vmatmul.msk.f32.gmra.mxu0 %vm102_vm0, %v38_v12  ;;  %703 = vst.msk [vmem:[#allocation2 + $0x1d9] sm:$0x1] %vm647_vm2, %v8334_v20 }
  0x3e   :  { %704 = vst.msk [vmem:[#allocation2 + $0x1f1] sm:$0x1] %vm647_vm2, %v8334_v20 }
  0x3f   :  { %705 = vst.msk [vmem:[#allocation2 + $0x209] sm:$0x1] %vm647_vm2, %v8334_v20 }
  0x40   :  { %706 = vst.msk [vmem:[#allocation2 + $0x221] sm:$0x1] %vm647_vm2, %v8334_v20 }
  0x41   :  { %707 = vst.msk [vmem:[#allocation2 + $0x239] sm:$0x1] %vm647_vm2, %v8334_v20 }
  0x42   :  { %708 = vst.msk [vmem:[#allocation2 + $0x251] sm:$0x1] %vm647_vm2, %v8334_v20 }
  0x43   :  { %709 = vst.msk [vmem:[#allocation2 + $0x269] sm:$0x1] %vm647_vm2, %v8334_v20 }
  0x44   :  { %710 = vst.msk [vmem:[#allocation2 + $0x281] sm:$0x1] %vm647_vm2, %v8334_v20 }
  0x45   :  { %5571 = vmatmul.msk.f32.gmra.mxu0 %vm102_vm0, %v39_v13  ;;  %711 = vst.msk [vmem:[#allocation2 + $0x299] sm:$0x1] %vm647_vm2, %v8334_v20  ;;  %v57_v13 = vld [vmem:[%s8325_s0 + $0xc8] sm:$0xff] }
  0x46   :  { %712 = vst.msk [vmem:[#allocation2 + $0x2b1] sm:$0x1] %vm647_vm2, %v8334_v20 }
  0x47   :  { %713 = vst.msk [vmem:[#allocation2 + $0x2c9] sm:$0x1] %vm647_vm2, %v8334_v20 }
  0x48   :  { %714 = vst.msk [vmem:[#allocation2 + $0x2e1] sm:$0x1] %vm647_vm2, %v8334_v20 }
  0x49   :  { %715 = vst.msk [vmem:[#allocation2 + $0x2f9] sm:$0x1] %vm647_vm2, %v8334_v20 }
  0x4a   :  { %716 = vst.msk [vmem:[#allocation2 + $0x311] sm:$0x1] %vm647_vm2, %v8334_v20 }
  0x4b   :  { %717 = vst.msk [vmem:[#allocation2 + $0x329] sm:$0x1] %vm647_vm2, %v8334_v20 }
  0x4c   :  { %718 = vst.msk [vmem:[#allocation2 + $0x341] sm:$0x1] %vm647_vm2, %v8334_v20 }
  0x4d   :  { %5572 = vmatmul.msk.f32.gmra.mxu0 %vm102_vm0, %v40_v14  ;;  %636 = vst.msk [vmem:[#allocation2 + $0x10] sm:$0x3] %vm635_vm3, %v8334_v20 }
  0x4e   :  { %639 = vst.msk [vmem:[#allocation2 + $0x1c0] sm:$0x3] %vm635_vm3, %v8334_v20 }
  0x4f   :  { %643 = vst.msk [vmem:[#allocation2 + $0x1a8] sm:$0x3] %vm635_vm3, %v8334_v20 }
  0x50   :  { %646 = vst.msk [vmem:[#allocation2 + $0x358] sm:$0x3] %vm635_vm3, %v8334_v20 }
  0x51   :  { %684 = vst.msk [vmem:[#allocation2 + $0x11] sm:$0x1] %vm647_vm2, %v8334_v20 }
  0x52   :  { %701 = vst.msk [vmem:[#allocation2 + $0x1a9] sm:$0x1] %vm647_vm2, %v8334_v20 }
  0x53   :  { %702 = vst.msk [vmem:[#allocation2 + $0x1c1] sm:$0x1] %vm647_vm2, %v8334_v20 }
  0x54   :  { %v1084_v7 = vld [vmem:[#allocation2 + $0x2] ss:$2 sm:$0xff]  ;;  %719 = vst.msk [vmem:[#allocation2 + $0x359] sm:$0x1] %vm647_vm2, %v8334_v20 }
  0x55   :  { %5573 = vmatmul.msk.f32.gmra.mxu0 %vm102_vm0, %v41_v15  ;;  %5668 = vmatmul.msk.f32.vlgmr.msra.gmra.mxu3 %vm632_vm1, %v1084_v7  ;;  %3623 = vst.msk [vmem:[#allocation3] sm:$0xff] %vm3408_vm4, %v8334_v20 }
  0x56   :  { %3626 = vst.msk [vmem:[#allocation3 + $0xa0] sm:$0xff] %vm3408_vm4, %v8334_v20 }
  0x57   :  { %3629 = vst.msk [vmem:[#allocation3 + $0x90] sm:$0xff] %vm3408_vm4, %v8334_v20 }
  0x58   :  { %3631 = vst.msk [vmem:[#allocation3 + $0x130] sm:$0xff] %vm3408_vm4, %v8334_v20 }
  0x5d   :  { %5574 = vmatmul.msk.f32.gmra.mxu0 %vm102_vm0, %v42_v16 }
  0x65   :  { %5575 = vmatmul.msk.f32.gmra.mxu0 %vm102_vm0, %v43_v17 }
  0x6d   :  { %5576 = vmatmul.msk.f32.gmra.mxu0 %vm102_vm0, %v44_v18 }
  0x75   :  { %5577 = vmatmul.msk.f32.gmra.mxu0 %vm102_vm0, %v45_v19 }
  0x7d   :  { %5578 = vmatmul.msk.f32.gmra.mxu0 %vm102_vm0, %v46_v21  ;;  %v58_v21 = vld [vmem:[%s8325_s0 + $0xd0] sm:$0xff] }
  0x85   :  { %5579 = vmatmul.msk.f32.gmra.mxu0 %vm102_vm0, %v47_v28 }
  0x8a   :  { %v312_v37 = vpop.f32.mrf.mxu0 }
  0x8b   :  { %v504_v39 = vmul.f32 0.2, %v312_v37 }
  0x8d   :  { %v568_v40 = vmax.f32 %v312_v37, %v504_v39  ;;  %5580 = vmatmul.msk.f32.gmra.mxu0 %vm102_vm0, %v48_v38 }
  0x8f   :  { %721 = vst.msk [vmem:[#allocation2 + $0x19] sm:$0xff] %vm632_vm1, %v568_v40  ;;  %v62_v40 = vld [vmem:[%s8325_s0 + $0xf0] sm:$0xff] }
  0x92   :  { %v315_v41 = vpop.f32.mrf.mxu0 }
  0x93   :  { %v505_v43 = vmul.f32 0.2, %v315_v41 }
  0x95   :  { %v569_v44 = vmax.f32 %v315_v41, %v505_v43  ;;  %5581 = vmatmul.msk.f32.gmra.mxu0 %vm102_vm0, %v49_v42 }
  0x97   :  { %722 = vst.msk [vmem:[#allocation2 + $0x21] sm:$0xff] %vm632_vm1, %v569_v44  ;;  %v63_v44 = vld [vmem:[%s8325_s0 + $0xf8] sm:$0xff] }
  0x9a   :  { %v318_v45 = vpop.f32.mrf.mxu0 }
  0x9b   :  { %v506_v47 = vmul.f32 0.2, %v318_v45 }
  0x9d   :  { %v570_v48 = vmax.f32 %v318_v45, %v506_v47  ;;  %5582 = vmatmul.msk.f32.gmra.mxu0 %vm102_vm0, %v50_v46 }
  0x9f   :  { %723 = vst.msk [vmem:[#allocation2 + $0x31] sm:$0xff] %vm632_vm1, %v570_v48  ;;  %v64_v48 = vld [vmem:[%s8325_s0 + $0x100] sm:$0xff] }
  0xa2   :  { %v321_v49 = vpop.f32.mrf.mxu0 }
  0xa3   :  { %v507_v51 = vmul.f32 0.2, %v321_v49 }
  0xa5   :  { %v571_v52 = vmax.f32 %v321_v49, %v507_v51  ;;  %5583 = vmatmul.msk.f32.gmra.mxu0 %vm102_vm0, %v51_v50 }
  0xa7   :  { %724 = vst.msk [vmem:[#allocation2 + $0x39] sm:$0xff] %vm632_vm1, %v571_v52 }
  0xaa   :  { %v324_v53 = vpop.f32.mrf.mxu0 }
  0xab   :  { %v508_v61 = vmul.f32 0.2, %v324_v53 }
  0xad   :  { %5584 = vmatmul.msk.f32.gmra.mxu0 %vm102_vm0, %v52_v54  ;;  %v572_v0 = vmax.f32 %v324_v53, %v508_v61 }
  0xae   :  { %v823_v55 = vld [vmem:[#allocation2 + $0x31] ss:$2 sm:$0xff]  ;;  %v787_v56 = vld [vmem:[#allocation2 + $0x30] ss:$2 sm:$0xff] }
  0xaf   :  { %5633 = vmatmul.msk.f32.gmra.mxu1 %vm632_vm1, %v823_v55  ;;  %5649 = vmatmul.msk.f32.gmra.mxu2 %vm632_vm1, %v787_v56  ;;  %725 = vst.msk [vmem:[#allocation2 + $0x49] sm:$0xff] %vm632_vm1, %v572_v0  ;;  %v1086_v12 = vld [vmem:[#allocation2 + $0x32] ss:$2 sm:$0xff] }
  0xb0   :  { %5669 = vmatmul.msk.f32.gmra.mxu3 %vm632_vm1, %v1086_v12  ;;  %v65_v55 = vld [vmem:[%s8325_s0 + $0x108] sm:$0xff] }
  0xb2   :  { %v327_v57 = vpop.f32.mrf.mxu0 }
  0xb3   :  { %v509_v1 = vmul.f32 0.2, %v327_v57 }
  0xb5   :  { %5585 = vmatmul.msk.f32.gmra.mxu0 %vm102_vm0, %v53_v58  ;;  %v573_v4 = vmax.f32 %v327_v57, %v509_v1 }
  0xb7   :  { %726 = vst.msk [vmem:[#allocation2 + $0x51] sm:$0xff] %vm632_vm1, %v573_v4 }
  0xba   :  { %v330_v60 = vpop.f32.mrf.mxu0 }
  0xbb   :  { %v510_v2 = vmul.f32 0.2, %v330_v60 }
  0xbd   :  { %5586 = vmatmul.msk.f32.gmra.mxu0 %vm102_vm0, %v54_v59  ;;  %v574_v5 = vmax.f32 %v330_v60, %v510_v2  ;;  %v66_v59 = vld [vmem:[%s8325_s0 + $0x110] sm:$0xff] }
  0xbf   :  { %727 = vst.msk [vmem:[#allocation2 + $0x61] sm:$0xff] %vm632_vm1, %v574_v5 }
  0xc2   :  { %v333_v63 = vpop.f32.mrf.mxu0 }
  0xc3   :  { %v511_v3 = vmul.f32 0.2, %v333_v63 }
  0xc5   :  { %5587 = vmatmul.msk.f32.gmra.mxu0 %vm102_vm0, %v55_v62  ;;  %v575_v8 = vmax.f32 %v333_v63, %v511_v3  ;;  %v67_v63 = vld [vmem:[%s8325_s0 + $0x118] sm:$0xff] }
  0xc7   :  { %728 = vst.msk [vmem:[#allocation2 + $0x69] sm:$0xff] %vm632_vm1, %v575_v8 }
  0xca   :  { %v336_v9 = vpop.f32.mrf.mxu0 }
  0xcb   :  { %v512_v10 = vmul.f32 0.2, %v336_v9 }
  0xcd   :  { %5588 = vmatmul.msk.f32.gmra.mxu0 %vm102_vm0, %v56_v6  ;;  %v576_v11 = vmax.f32 %v336_v9, %v512_v10  ;;  %v68_v6 = vld [vmem:[%s8325_s0 + $0x120] sm:$0xff] }
  0xce   :  { %v825_v16 = vld [vmem:[#allocation2 + $0x61] ss:$2 sm:$0xff]  ;;  %v789_v17 = vld [vmem:[#allocation2 + $0x60] ss:$2 sm:$0xff] }
  0xcf   :  { %729 = vst.msk [vmem:[#allocation2 + $0x79] sm:$0xff] %vm632_vm1, %v576_v11  ;;  %5634 = vmatmul.msk.f32.gmra.mxu1 %vm632_vm1, %v825_v16  ;;  %5650 = vmatmul.msk.f32.gmra.mxu2 %vm632_vm1, %v789_v17  ;;  %v1088_v19 = vld [vmem:[#allocation2 + $0x62] ss:$2 sm:$0xff] }
  0xd0   :  { %5670 = vmatmul.msk.f32.gmra.mxu3 %vm632_vm1, %v1088_v19  ;;  %v70_v16 = vld [vmem:[%s8325_s0 + $0x130] sm:$0xff] }
  0xd2   :  { %v339_v14 = vpop.f32.mrf.mxu0 }
  0xd3   :  { %v513_v15 = vmul.f32 0.2, %v339_v14 }
  0xd5   :  { %5589 = vmatmul.msk.f32.gmra.mxu0 %vm102_vm0, %v57_v13  ;;  %v577_v18 = vmax.f32 %v339_v14, %v513_v15  ;;  %v69_v13 = vld [vmem:[%s8325_s0 + $0x128] sm:$0xff] }
  0xd7   :  { %730 = vst.msk [vmem:[#allocation2 + $0x81] sm:$0xff] %vm632_vm1, %v577_v18 }
  0xda   :  { %v342_v22 = vpop.f32.mrf.mxu0 }
  0xdb   :  { %v514_v23 = vmul.f32 0.2, %v342_v22 }
  0xdd   :  { %5590 = vmatmul.msk.f32.gmra.mxu0 %vm102_vm0, %v58_v21  ;;  %v578_v24 = vmax.f32 %v342_v22, %v514_v23  ;;  %v71_v21 = vld [vmem:[%s8325_s0 + $0x138] sm:$0xff] }
  0xdf   :  { %731 = vst.msk [vmem:[#allocation2 + $0x91] sm:$0xff] %vm632_vm1, %v578_v24 }
  0xe2   :  { %v345_v26 = vpop.f32.mrf.mxu0 }
  0xe3   :  { %v515_v27 = vmul.f32 0.2, %v345_v26 }
  0xe5   :  { %5591 = vmatmul.msk.f32.gmra.mxu0 %vm102_vm0, %v59_v25  ;;  %v579_v28 = vmax.f32 %v345_v26, %v515_v27  ;;  %v72_v25 = vld [vmem:[%s8325_s0 + $0x140] sm:$0xff] }
  0xe7   :  { %732 = vst.msk [vmem:[#allocation2 + $0x99] sm:$0xff] %vm632_vm1, %v579_v28 }
  0xea   :  { %v348_v30 = vpop.f32.mrf.mxu0 }
  0xeb   :  { %v516_v31 = vmul.f32 0.2, %v348_v30 }
  0xed   :  { %5592 = vmatmul.msk.f32.gmra.mxu0 %vm102_vm0, %v60_v29  ;;  %v580_v32 = vmax.f32 %v348_v30, %v516_v31 }
  0xee   :  { %v827_v33 = vld [vmem:[#allocation2 + $0x91] ss:$2 sm:$0xff]  ;;  %v791_v34 = vld [vmem:[#allocation2 + $0x90] ss:$2 sm:$0xff] }
  0xef   :  { %v1090_v35 = vld [vmem:[#allocation2 + $0x92] ss:$2 sm:$0xff]  ;;  %733 = vst.msk [vmem:[#allocation2 + $0xa9] sm:$0xff] %vm632_vm1, %v580_v32  ;;  %5635 = vmatmul.msk.f32.gmra.mxu1 %vm632_vm1, %v827_v33  ;;  %5651 = vmatmul.msk.f32.gmra.mxu2 %vm632_vm1, %v791_v34 }
  0xf0   :  { %5671 = vmatmul.msk.f32.gmra.mxu3 %vm632_vm1, %v1090_v35  ;;  %v73_v32 = vld [vmem:[%s8325_s0 + $0x148] sm:$0xff] }
  0xf2   :  { %v351_v37 = vpop.f32.mrf.mxu0 }
  0xf3   :  { %v517_v38 = vmul.f32 0.2, %v351_v37 }
  0xf5   :  { %5593 = vmatmul.msk.f32.gmra.mxu0 %vm102_vm0, %v61_v36  ;;  %v581_v39 = vmax.f32 %v351_v37, %v517_v38  ;;  %v74_v36 = vld [vmem:[%s8325_s0 + $0x150] sm:$0xff] }
  0xf7   :  { %734 = vst.msk [vmem:[#allocation2 + $0xb1] sm:$0xff] %vm632_vm1, %v581_v39 }
  0xfa   :  { %v354_v41 = vpop.f32.mrf.mxu0 }
  0xfb   :  { %v518_v42 = vmul.f32 0.2, %v354_v41 }
  0xfd   :  { %5594 = vmatmul.msk.f32.gmra.mxu0 %vm102_vm0, %v62_v40  ;;  %v582_v43 = vmax.f32 %v354_v41, %v518_v42  ;;  %v75_v40 = vld [vmem:[%s8325_s0 + $0x158] sm:$0xff] }
  0xff   :  { %735 = vst.msk [vmem:[#allocation2 + $0xc1] sm:$0xff] %vm632_vm1, %v582_v43 }
 0x102   :  { %v357_v45 = vpop.f32.mrf.mxu0 }
 0x103   :  { %v519_v46 = vmul.f32 0.2, %v357_v45 }
 0x105   :  { %5595 = vmatmul.msk.f32.gmra.mxu0 %vm102_vm0, %v63_v44  ;;  %v583_v47 = vmax.f32 %v357_v45, %v519_v46  ;;  %v76_v44 = vld [vmem:[%s8325_s0 + $0x160] sm:$0xff] }
 0x107   :  { %736 = vst.msk [vmem:[#allocation2 + $0xc9] sm:$0xff] %vm632_vm1, %v583_v47 }
 0x10a   :  { %v360_v49 = vpop.f32.mrf.mxu0 }
 0x10b   :  { %v520_v50 = vmul.f32 0.2, %v360_v49 }
 0x10d   :  { %5596 = vmatmul.msk.f32.gmra.mxu0 %vm102_vm0, %v64_v48  ;;  %v584_v51 = vmax.f32 %v360_v49, %v520_v50 }
 0x10e   :  { %v829_v52 = vld [vmem:[#allocation2 + $0xc1] ss:$2 sm:$0xff]  ;;  %v793_v53 = vld [vmem:[#allocation2 + $0xc0] ss:$2 sm:$0xff] }
 0x10f   :  { %v1092_v54 = vld [vmem:[#allocation2 + $0xc2] ss:$2 sm:$0xff]  ;;  %737 = vst.msk [vmem:[#allocation2 + $0xd9] sm:$0xff] %vm632_vm1, %v584_v51  ;;  %5636 = vmatmul.msk.f32.gmra.mxu1 %vm632_vm1, %v829_v52  ;;  %5652 = vmatmul.msk.f32.gmra.mxu2 %vm632_vm1, %v793_v53 }
 0x110   :  { %5672 = vmatmul.msk.f32.gmra.mxu3 %vm632_vm1, %v1092_v54  ;;  %v77_v51 = vld [vmem:[%s8325_s0 + $0x168] sm:$0xff] }
 0x112   :  { %v363_v56 = vpop.f32.mrf.mxu0 }
 0x113   :  { %v521_v57 = vmul.f32 0.2, %v363_v56 }
 0x115   :  { %5597 = vmatmul.msk.f32.gmra.mxu0 %vm102_vm0, %v65_v55  ;;  %v585_v58 = vmax.f32 %v363_v56, %v521_v57  ;;  %v78_v55 = vld [vmem:[%s8325_s0 + $0x170] sm:$0xff] }
 0x117   :  { %738 = vst.msk [vmem:[#allocation2 + $0xe1] sm:$0xff] %vm632_vm1, %v585_v58 }
 0x11a   :  { %v366_v60 = vpop.f32.mrf.mxu0 }
 0x11b   :  { %v522_v61 = vmul.f32 0.2, %v366_v60 }
 0x11d   :  { %5598 = vmatmul.msk.f32.gmra.mxu0 %vm102_vm0, %v66_v59  ;;  %v586_v62 = vmax.f32 %v366_v60, %v522_v61  ;;  %v79_v59 = vld [vmem:[%s8325_s0 + $0x178] sm:$0xff] }
 0x11e   :  { %v837_v61 = vld [vmem:[#allocation2 + $0x1b1] ss:$2 sm:$0xff] }
 0x11f   :  { %739 = vst.msk [vmem:[#allocation2 + $0xf1] sm:$0xff] %vm632_vm1, %v586_v62  ;;  %v801_v62 = vld [vmem:[#allocation2 + $0x1b0] ss:$2 sm:$0xff] }
 0x122   :  { %v369_v0 = vpop.f32.mrf.mxu0 }
 0x123   :  { %v523_v1 = vmul.f32 0.2, %v369_v0 }
 0x125   :  { %5599 = vmatmul.msk.f32.gmra.mxu0 %vm102_vm0, %v67_v63  ;;  %v587_v2 = vmax.f32 %v369_v0, %v523_v1  ;;  %v1100_v63 = vld [vmem:[#allocation2 + $0x1b2] ss:$2 sm:$0xff] }
 0x127   :  { %740 = vst.msk [vmem:[#allocation2 + $0xf9] sm:$0xff] %vm632_vm1, %v587_v2  ;;  %v80_v2 = vld [vmem:[%s8325_s0 + $0x180] sm:$0xff] }
 0x12a   :  { %v372_v3 = vpop.f32.mrf.mxu0 }
 0x12b   :  { %v524_v4 = vmul.f32 0.2, %v372_v3 }
 0x12d   :  { %v588_v5 = vmax.f32 %v372_v3, %v524_v4  ;;  %5600 = vmatmul.msk.f32.gmra.mxu0 %vm102_vm0, %v68_v6  ;;  %v81_v6 = vld [vmem:[%s8325_s0 + $0x188] sm:$0xff] }
 0x12e   :  { %v831_v7 = vld [vmem:[#allocation2 + $0xf1] ss:$2 sm:$0xff]  ;;  %v795_v8 = vld [vmem:[#allocation2 + $0xf0] ss:$2 sm:$0xff] }
 0x12f   :  { %741 = vst.msk [vmem:[#allocation2 + $0x109] sm:$0xff] %vm632_vm1, %v588_v5  ;;  %5637 = vmatmul.msk.f32.gmra.mxu1 %vm632_vm1, %v831_v7  ;;  %v1094_v9 = vld [vmem:[#allocation2 + $0xf2] ss:$2 sm:$0xff]  ;;  %5653 = vmatmul.msk.f32.gmra.mxu2 %vm632_vm1, %v795_v8 }
 0x130   :  { %5673 = vmatmul.msk.f32.gmra.mxu3 %vm632_vm1, %v1094_v9 }
 0x132   :  { %v375_v10 = vpop.f32.mrf.mxu0 }
 0x133   :  { %v525_v11 = vmul.f32 0.2, %v375_v10 }
 0x135   :  { %v589_v12 = vmax.f32 %v375_v10, %v525_v11  ;;  %5601 = vmatmul.msk.f32.gmra.mxu0 %vm102_vm0, %v69_v13  ;;  %v82_v10 = vld [vmem:[%s8325_s0 + $0x190] sm:$0xff] }
 0x137   :  { %742 = vst.msk [vmem:[#allocation2 + $0x111] sm:$0xff] %vm632_vm1, %v589_v12 }
 0x13a   :  { %v378_v14 = vpop.f32.mrf.mxu0 }
 0x13b   :  { %v526_v15 = vmul.f32 0.2, %v378_v14 }
 0x13d   :  { %v590_v17 = vmax.f32 %v378_v14, %v526_v15  ;;  %5602 = vmatmul.msk.f32.gmra.mxu0 %vm102_vm0, %v70_v16  ;;  %v83_v14 = vld [vmem:[%s8325_s0 + $0x198] sm:$0xff] }
 0x13f   :  { %743 = vst.msk [vmem:[#allocation2 + $0x121] sm:$0xff] %vm632_vm1, %v590_v17  ;;  %v84_v17 = vld [vmem:[%s8325_s0 + $0x1a0] sm:$0xff] }
 0x142   :  { %v381_v18 = vpop.f32.mrf.mxu0 }
 0x143   :  { %v527_v19 = vmul.f32 0.2, %v381_v18 }
 0x145   :  { %v591_v22 = vmax.f32 %v381_v18, %v527_v19  ;;  %5603 = vmatmul.msk.f32.gmra.mxu0 %vm102_vm0, %v71_v21 }
 0x147   :  { %744 = vst.msk [vmem:[#allocation2 + $0x129] sm:$0xff] %vm632_vm1, %v591_v22 }
 0x14a   :  { %v384_v23 = vpop.f32.mrf.mxu0 }
 0x14b   :  { %v528_v24 = vmul.f32 0.2, %v384_v23 }
 0x14d   :  { %v592_v26 = vmax.f32 %v384_v23, %v528_v24  ;;  %5604 = vmatmul.msk.f32.gmra.mxu0 %vm102_vm0, %v72_v25  ;;  %v85_v25 = vld [vmem:[%s8325_s0 + $0x1a8] sm:$0xff] }
 0x14e   :  { %v833_v27 = vld [vmem:[#allocation2 + $0x121] ss:$2 sm:$0xff]  ;;  %v797_v28 = vld [vmem:[#allocation2 + $0x120] ss:$2 sm:$0xff] }
 0x14f   :  { %v1096_v29 = vld [vmem:[#allocation2 + $0x122] ss:$2 sm:$0xff]  ;;  %745 = vst.msk [vmem:[#allocation2 + $0x139] sm:$0xff] %vm632_vm1, %v592_v26  ;;  %5638 = vmatmul.msk.f32.gmra.mxu1 %vm632_vm1, %v833_v27  ;;  %5654 = vmatmul.msk.f32.gmra.mxu2 %vm632_vm1, %v797_v28 }
 0x150   :  { %5674 = vmatmul.msk.f32.gmra.mxu3 %vm632_vm1, %v1096_v29  ;;  %v86_v29 = vld [vmem:[%s8325_s0 + $0x1b0] sm:$0xff] }
 0x152   :  { %v387_v30 = vpop.f32.mrf.mxu0 }
 0x153   :  { %v529_v31 = vmul.f32 0.2, %v387_v30 }
 0x155   :  { %v593_v33 = vmax.f32 %v387_v30, %v529_v31  ;;  %5605 = vmatmul.msk.f32.gmra.mxu0 %vm102_vm0, %v73_v32 }
 0x157   :  { %746 = vst.msk [vmem:[#allocation2 + $0x141] sm:$0xff] %vm632_vm1, %v593_v33  ;;  %v87_v33 = vld [vmem:[%s8325_s0 + $0x1b8] sm:$0xff] }
 0x15a   :  { %v390_v34 = vpop.f32.mrf.mxu0 }
 0x15b   :  { %v530_v35 = vmul.f32 0.2, %v390_v34 }
 0x15d   :  { %v594_v37 = vmax.f32 %v390_v34, %v530_v35  ;;  %5606 = vmatmul.msk.f32.gmra.mxu0 %vm102_vm0, %v74_v36 }
 0x15f   :  { %747 = vst.msk [vmem:[#allocation2 + $0x151] sm:$0xff] %vm632_vm1, %v594_v37  ;;  %v88_v37 = vld [vmem:[%s8325_s0 + $0x1c0] sm:$0xff] }
 0x162   :  { %v393_v38 = vpop.f32.mrf.mxu0 }
 0x163   :  { %v531_v39 = vmul.f32 0.2, %v393_v38 }
 0x165   :  { %v595_v41 = vmax.f32 %v393_v38, %v531_v39  ;;  %5607 = vmatmul.msk.f32.gmra.mxu0 %vm102_vm0, %v75_v40 }
 0x167   :  { %748 = vst.msk [vmem:[#allocation2 + $0x159] sm:$0xff] %vm632_vm1, %v595_v41 }
 0x16a   :  { %v396_v42 = vpop.f32.mrf.mxu0 }
 0x16b   :  { %v532_v43 = vmul.f32 0.2, %v396_v42 }
 0x16d   :  { %v596_v45 = vmax.f32 %v396_v42, %v532_v43  ;;  %5608 = vmatmul.msk.f32.gmra.mxu0 %vm102_vm0, %v76_v44  ;;  %v89_v44 = vld [vmem:[%s8325_s0 + $0x1c8] sm:$0xff] }
 0x16e   :  { %v835_v46 = vld [vmem:[#allocation2 + $0x151] ss:$2 sm:$0xff]  ;;  %v799_v47 = vld [vmem:[#allocation2 + $0x150] ss:$2 sm:$0xff] }
 0x16f   :  { %v1098_v48 = vld [vmem:[#allocation2 + $0x152] ss:$2 sm:$0xff]  ;;  %749 = vst.msk [vmem:[#allocation2 + $0x169] sm:$0xff] %vm632_vm1, %v596_v45  ;;  %5639 = vmatmul.msk.f32.gmra.mxu1 %vm632_vm1, %v835_v46  ;;  %5655 = vmatmul.msk.f32.gmra.mxu2 %vm632_vm1, %v799_v47 }
 0x170   :  { %5675 = vmatmul.msk.f32.gmra.mxu3 %vm632_vm1, %v1098_v48  ;;  %v5707_v47 = vld [vmem:[%s8326_s2 + $0x98] sm:$0xff] }
 0x171   :  { %v5727_v48 = vld [vmem:[%s8326_s2 + $0xb8] sm:$0xff]  ;;  %1511 = vmatpush.msrb.mxu2 %v5707_v47 }
 0x172   :  { %v399_v49 = vpop.f32.mrf.mxu0  ;;  %1677 = vmatpush.msrb.mxu3 %v5727_v48 }
 0x173   :  { %v533_v50 = vmul.f32 0.2, %v399_v49 }
 0x175   :  { %v597_v52 = vmax.f32 %v399_v49, %v533_v50  ;;  %5609 = vmatmul.msk.f32.gmra.mxu0 %vm102_vm0, %v77_v51  ;;  %v90_v50 = vld [vmem:[%s8325_s0 + $0x1d0] sm:$0xff] }
 0x177   :  { %750 = vst.msk [vmem:[#allocation2 + $0x171] sm:$0xff] %vm632_vm1, %v597_v52  ;;  %5640 = vmatmul.msk.f32.gmra.mxu1 %vm632_vm1, %v837_v61  ;;  %5656 = vmatmul.msk.f32.gmra.mxu2 %vm632_vm1, %v801_v62  ;;  %v92_v61 = vld [vmem:[%s8325_s0 + $0x1e0] sm:$0xff] }
 0x178   :  { %5676 = vmatmul.msk.f32.gmra.mxu3 %vm632_vm1, %v1100_v63 }
 0x17a   :  { %v402_v53 = vpop.f32.mrf.mxu0 }
 0x17b   :  { %v534_v54 = vmul.f32 0.2, %v402_v53 }
 0x17d   :  { %v598_v56 = vmax.f32 %v402_v53, %v534_v54  ;;  %5610 = vmatmul.msk.f32.gmra.mxu0 %vm102_vm0, %v78_v55  ;;  %v5687_v53 = vld [vmem:[%s8326_s2 + $0x78] sm:$0xff] }
 0x17e   :  { %v5927_v54 = vld [vmem:[%s8326_s2 + $0x1f8] sm:$0xff]  ;;  %1346 = vmatpush.msrb.mxu1 %v5687_v53 }
 0x17f   :  { %751 = vst.msk [vmem:[#allocation2 + $0x181] sm:$0xff] %vm632_vm1, %v598_v56  ;;  %3337 = vmatpush.msrb.mxu0 %v5927_v54  ;;  %v91_v56 = vld [vmem:[%s8325_s0 + $0x1d8] sm:$0xff]  ;;  %v5704_v54 = vld [vmem:[%s8326_s2 + $0x80] sm:$0xff] }
 0x182   :  { %v405_v57 = vpop.f32.mrf.mxu0 }
 0x183   :  { %v535_v58 = vmul.f32 0.2, %v405_v57 }
 0x185   :  { %v599_v60 = vmax.f32 %v405_v57, %v535_v58  ;;  %5611 = vmatmul.msk.f32.gmra.mxu0 %vm102_vm0, %v79_v59  ;;  %v5926_v59 = vld [vmem:[%s8326_s2 + $0x1f0] sm:$0xff] }
 0x186   :  { %3338 = vmatpush.msrb.mxu0 %v5926_v59 }
 0x187   :  { %752 = vst.msk [vmem:[#allocation2 + $0x189] sm:$0xff] %vm632_vm1, %v599_v60 }
 0x18a   :  { %v408_v0 = vpop.f32.mrf.mxu0 }
 0x18b   :  { %v536_v1 = vmul.f32 0.2, %v408_v0 }
 0x18d   :  { %v600_v3 = vmax.f32 %v408_v0, %v536_v1  ;;  %5612 = vmatmul.msk.f32.gmra.mxu0 %vm102_vm0, %v80_v2 }
 0x18f   :  { %753 = vst.msk [vmem:[#allocation2 + $0x1c9] sm:$0xff] %vm632_vm1, %v600_v3  ;;  %v5925_v3 = vld [vmem:[%s8326_s2 + $0x1e8] sm:$0xff] }
 0x190   :  { %3339 = vmatpush.msrb.mxu0 %v5925_v3 }
 0x192   :  { %v411_v4 = vpop.f32.mrf.mxu0 }
 0x193   :  { %v537_v5 = vmul.f32 0.2, %v411_v4 }
 0x195   :  { %v601_v7 = vmax.f32 %v411_v4, %v537_v5  ;;  %5613 = vmatmul.msk.f32.gmra.mxu0 %vm102_vm0, %v81_v6  ;;  %v5924_v4 = vld [vmem:[%s8326_s2 + $0x1e0] sm:$0xff]  ;;  %v93_v6 = vld [vmem:[%s8325_s0 + $0x1e8] sm:$0xff] }
 0x196   :  { %3340 = vmatpush.msrb.mxu0 %v5924_v4 }
 0x197   :  { %754 = vst.msk [vmem:[#allocation2 + $0x1d1] sm:$0xff] %vm632_vm1, %v601_v7 }
 0x19a   :  { %v414_v8 = vpop.f32.mrf.mxu0 }
 0x19b   :  { %v538_v9 = vmul.f32 0.2, %v414_v8 }
 0x19d   :  { %v602_v11 = vmax.f32 %v414_v8, %v538_v9  ;;  %5614 = vmatmul.msk.f32.gmra.mxu0 %vm102_vm0, %v82_v10  ;;  %v5706_v9 = vld [vmem:[%s8326_s2 + $0x90] sm:$0xff] }
 0x19e   :  { %v5726_v10 = vld [vmem:[%s8326_s2 + $0xb0] sm:$0xff]  ;;  %1512 = vmatpush.msrb.mxu2 %v5706_v9 }
 0x19f   :  { %755 = vst.msk [vmem:[#allocation2 + $0x1e1] sm:$0xff] %vm632_vm1, %v602_v11  ;;  %1678 = vmatpush.msrb.mxu3 %v5726_v10 }
 0x1a2   :  { %v417_v12 = vpop.f32.mrf.mxu0 }
 0x1a3   :  { %v539_v13 = vmul.f32 0.2, %v417_v12 }
 0x1a5   :  { %v603_v15 = vmax.f32 %v417_v12, %v539_v13  ;;  %5615 = vmatmul.msk.f32.gmra.mxu0 %vm102_vm0, %v83_v14  ;;  %v94_v12 = vld [vmem:[%s8325_s0 + $0x1f0] sm:$0xff] }
 0x1a7   :  { %756 = vst.msk [vmem:[#allocation2 + $0x1e9] sm:$0xff] %vm632_vm1, %v603_v15  ;;  %v5686_v15 = vld [vmem:[%s8326_s2 + $0x70] sm:$0xff] }
 0x1a8   :  { %1347 = vmatpush.msrb.mxu1 %v5686_v15 }
 0x1aa   :  { %v420_v16 = vpop.f32.mrf.mxu0 }
 0x1ab   :  { %v540_v18 = vmul.f32 0.2, %v420_v16 }
 0x1ad   :  { %v604_v23 = vmax.f32 %v420_v16, %v540_v18  ;;  %5616 = vmatmul.msk.f32.gmra.mxu0 %vm102_vm0, %v84_v17  ;;  %v95_v17 = vld [vmem:[%s8325_s0 + $0x1f8] sm:$0xff] }
 0x1ae   :  { %v839_v19 = vld [vmem:[#allocation2 + $0x1e1] ss:$2 sm:$0xff]  ;;  %v803_v21 = vld [vmem:[#allocation2 + $0x1e0] ss:$2 sm:$0xff] }
 0x1af   :  { %v1102_v22 = vld [vmem:[#allocation2 + $0x1e2] ss:$2 sm:$0xff]  ;;  %5641 = vmatmul.msk.f32.gmra.mxu1 %vm632_vm1, %v839_v19  ;;  %5657 = vmatmul.msk.f32.gmra.mxu2 %vm632_vm1, %v803_v21  ;;  %757 = vst.msk [vmem:[#allocation2 + $0x1f9] sm:$0xff] %vm632_vm1, %v604_v23  ;;  %v3241_v23 = vld [vmem:[#allocation2 + $0x4b] ss:$2 sm:$0xff] }
 0x1b0   :  { %5677 = vmatmul.msk.f32.gmra.mxu3 %vm632_vm1, %v1102_v22 }
 0x1b2   :  { %v423_v24 = vpop.f32.mrf.mxu0 }
 0x1b3   :  { %v541_v26 = vmul.f32 0.2, %v423_v24 }
 0x1b5   :  { %v605_v27 = vmax.f32 %v423_v24, %v541_v26  ;;  %5617 = vmatmul.msk.f32.gmra.mxu0 %vm102_vm0, %v85_v25 }
 0x1b7   :  { %758 = vst.msk [vmem:[#allocation2 + $0x201] sm:$0xff] %vm632_vm1, %v605_v27 }
 0x1ba   :  { %v426_v28 = vpop.f32.mrf.mxu0 }
 0x1bb   :  { %v542_v30 = vmul.f32 0.2, %v426_v28 }
 0x1bd   :  { %v606_v31 = vmax.f32 %v426_v28, %v542_v30  ;;  %5618 = vmatmul.msk.f32.gmra.mxu0 %vm102_vm0, %v86_v29  ;;  %v3243_v30 = vld [vmem:[#allocation2 + $0x7b] ss:$2 sm:$0xff] }
 0x1be   :  { %v3257_v3 = vld [vmem:[#allocation2 + $0x1fb] ss:$2 sm:$0xff] }
 0x1bf   :  { %759 = vst.msk [vmem:[#allocation2 + $0x211] sm:$0xff] %vm632_vm1, %v606_v31 }
 0x1c2   :  { %v429_v32 = vpop.f32.mrf.mxu0 }
 0x1c3   :  { %v543_v34 = vmul.f32 0.2, %v429_v32 }
 0x1c5   :  { %v607_v35 = vmax.f32 %v429_v32, %v543_v34  ;;  %5619 = vmatmul.msk.f32.gmra.mxu0 %vm102_vm0, %v87_v33  ;;  %v5705_v32 = vld [vmem:[%s8326_s2 + $0x88] sm:$0xff] }
 0x1c6   :  { %v5725_v33 = vld [vmem:[%s8326_s2 + $0xa8] sm:$0xff]  ;;  %1513 = vmatpush.msrb.mxu2 %v5705_v32 }
 0x1c7   :  { %760 = vst.msk [vmem:[#allocation2 + $0x219] sm:$0xff] %vm632_vm1, %v607_v35  ;;  %1679 = vmatpush.msrb.mxu3 %v5725_v33 }
 0x1c8   :  { %1514 = vmatpush.msrb.mxu2 %v5704_v54 }
 0x1ca   :  { %v432_v36 = vpop.f32.mrf.mxu0 }
 0x1cb   :  { %v544_v38 = vmul.f32 0.2, %v432_v36 }
 0x1cd   :  { %v608_v39 = vmax.f32 %v432_v36, %v544_v38  ;;  %5620 = vmatmul.msk.f32.gmra.mxu0 %vm102_vm0, %v88_v37  ;;  %v3245_v36 = vld [vmem:[#allocation2 + $0xab] ss:$2 sm:$0xff]  ;;  %v5685_v38 = vld [vmem:[%s8326_s2 + $0x68] sm:$0xff] }
 0x1ce   :  { %v841_v40 = vld [vmem:[#allocation2 + $0x211] ss:$2 sm:$0xff]  ;;  %v805_v41 = vld [vmem:[#allocation2 + $0x210] ss:$2 sm:$0xff]  ;;  %1348 = vmatpush.msrb.mxu1 %v5685_v38 }
 0x1cf   :  { %v1104_v42 = vld [vmem:[#allocation2 + $0x212] ss:$2 sm:$0xff]  ;;  %761 = vst.msk [vmem:[#allocation2 + $0x229] sm:$0xff] %vm632_vm1, %v608_v39  ;;  %5642 = vmatmul.msk.f32.gmra.mxu1 %vm632_vm1, %v841_v40  ;;  %5658 = vmatmul.msk.f32.gmra.mxu2 %vm632_vm1, %v805_v41  ;;  %v3247_v41 = vld [vmem:[#allocation2 + $0xdb] ss:$2 sm:$0xff] }
 0x1d0   :  { %5678 = vmatmul.msk.f32.gmra.mxu3 %vm632_vm1, %v1104_v42  ;;  %v1415_v38 = vld [vmem:[#allocation2 + $0x18] ss:$2 sm:$0xff] }
 0x1d2   :  { %v435_v43 = vpop.f32.mrf.mxu0 }
 0x1d3   :  { %v545_v45 = vmul.f32 0.2, %v435_v43 }
 0x1d5   :  { %v609_v46 = vmax.f32 %v435_v43, %v545_v45  ;;  %5621 = vmatmul.msk.f32.gmra.mxu0 %vm102_vm0, %v89_v44  ;;  %v3249_v45 = vld [vmem:[#allocation2 + $0x10b] ss:$2 sm:$0xff] }
 0x1d7   :  { %762 = vst.msk [vmem:[#allocation2 + $0x231] sm:$0xff] %vm632_vm1, %v609_v46 }
 0x1da   :  { %v438_v49 = vpop.f32.mrf.mxu0 }
 0x1db   :  { %v546_v51 = vmul.f32 0.2, %v438_v49 }
 0x1dd   :  { %v610_v52 = vmax.f32 %v438_v49, %v546_v51  ;;  %5622 = vmatmul.msk.f32.gmra.mxu0 %vm102_vm0, %v90_v50 }
 0x1de   :  { %v3259_v10 = vld [vmem:[#allocation2 + $0x22b] ss:$2 sm:$0xff] }
 0x1df   :  { %763 = vst.msk [vmem:[#allocation2 + $0x241] sm:$0xff] %vm632_vm1, %v610_v52  ;;  %v3251_v52 = vld [vmem:[#allocation2 + $0x13b] ss:$2 sm:$0xff] }
 0x1e2   :  { %v441_v55 = vpop.f32.mrf.mxu0 }
 0x1e3   :  { %v547_v57 = vmul.f32 0.2, %v441_v55 }
 0x1e5   :  { %v611_v58 = vmax.f32 %v441_v55, %v547_v57  ;;  %5623 = vmatmul.msk.f32.gmra.mxu0 %vm102_vm0, %v91_v56  ;;  %v5724_v55 = vld [vmem:[%s8326_s2 + $0xa0] sm:$0xff] }
 0x1e6   :  { %1680 = vmatpush.msrb.mxu3 %v5724_v55 }
 0x1e7   :  { %764 = vst.msk [vmem:[#allocation2 + $0x249] sm:$0xff] %vm632_vm1, %v611_v58  ;;  %v3253_v58 = vld [vmem:[#allocation2 + $0x16b] ss:$2 sm:$0xff] }
 0x1ea   :  { %v444_v60 = vpop.f32.mrf.mxu0 }
 0x1eb   :  { %v548_v62 = vmul.f32 0.2, %v444_v60 }
 0x1ed   :  { %v612_v63 = vmax.f32 %v444_v60, %v548_v62  ;;  %5624 = vmatmul.msk.f32.gmra.mxu0 %vm102_vm0, %v92_v61  ;;  %v5684_v60 = vld [vmem:[%s8326_s2 + $0x60] sm:$0xff] }
 0x1ee   :  { %v843_v0 = vld [vmem:[#allocation2 + $0x241] ss:$2 sm:$0xff]  ;;  %v807_v1 = vld [vmem:[#allocation2 + $0x240] ss:$2 sm:$0xff]  ;;  %1349 = vmatpush.msrb.mxu1 %v5684_v60 }
 0x1ef   :  { %v1106_v2 = vld [vmem:[#allocation2 + $0x242] ss:$2 sm:$0xff]  ;;  %765 = vst.msk [vmem:[#allocation2 + $0x259] sm:$0xff] %vm632_vm1, %v612_v63  ;;  %5643 = vmatmul.msk.f32.gmra.mxu1 %vm632_vm1, %v843_v0  ;;  %5659 = vmatmul.msk.f32.gmra.mxu2 %vm632_vm1, %v807_v1  ;;  %v3255_v62 = vld [vmem:[#allocation2 + $0x19b] ss:$2 sm:$0xff] }
 0x1f0   :  { %5679 = vmatmul.msk.f32.gmra.mxu3 %vm632_vm1, %v1106_v2 }
 0x1f2   :  { %v447_v5 = vpop.f32.mrf.mxu0 }
 0x1f3   :  { %v549_v7 = vmul.f32 0.2, %v447_v5 }
 0x1f5   :  { %v613_v8 = vmax.f32 %v447_v5, %v549_v7  ;;  %5625 = vmatmul.msk.f32.gmra.mxu0 %vm102_vm0, %v93_v6 }
 0x1f7   :  { %766 = vst.msk [vmem:[#allocation2 + $0x261] sm:$0xff] %vm632_vm1, %v613_v8 }
 0x1fa   :  { %v450_v11 = vpop.f32.mrf.mxu0 }
 0x1fb   :  { %v550_v13 = vmul.f32 0.2, %v450_v11 }
 0x1fd   :  { %v614_v14 = vmax.f32 %v450_v11, %v550_v13  ;;  %5626 = vmatmul.msk.f32.gmra.mxu0 %vm102_vm0, %v94_v12  ;;  %v5767_v12 = vld [vmem:[%s8326_s2 + $0xf8] sm:$0xff] }
 0x1fe   :  { %v5787_v13 = vld [vmem:[%s8326_s2 + $0x118] sm:$0xff]  ;;  %2009 = vmatpush.msra.mxu2 %v5767_v12 }
 0x1ff   :  { %767 = vst.msk [vmem:[#allocation2 + $0x271] sm:$0xff] %vm632_vm1, %v614_v14  ;;  %2175 = vmatpush.msra.mxu3 %v5787_v13  ;;  %v5745_v13 = vld [vmem:[%s8326_s2 + $0xc8] sm:$0xff] }
 0x202   :  { %v453_v16 = vpop.f32.mrf.mxu0 }
 0x203   :  { %v551_v18 = vmul.f32 0.2, %v453_v16 }
 0x205   :  { %v615_v19 = vmax.f32 %v453_v16, %v551_v18  ;;  %5627 = vmatmul.msk.f32.gmra.mxu0 %vm102_vm0, %v95_v17  ;;  %v3261_v16 = vld [vmem:[#allocation2 + $0x25b] ss:$2 sm:$0xff]  ;;  %v5747_v18 = vld [vmem:[%s8326_s2 + $0xd8] sm:$0xff]  ;;  %vm5269_vm0 = vcmask 1041408  }
 0x206   :  { %1843 = vmatpush.msra.mxu1 %v5747_v18 }
 0x207   :  { %768 = vst.msk [vmem:[#allocation2 + $0x279] sm:$0xff] %vm632_vm1, %v615_v19 }
 0x20a   :  { %v456_v21 = vpop.f32.mrf.mxu0 }
 0x20b   :  { %v552_v22 = vmul.f32 0.2, %v456_v21 }
 0x20d   :  { %v616_v24 = vmax.f32 %v456_v21, %v552_v22  ;;  %5928 = vmatmul.msk.f32.vlgmr.msrb.gmra.mxu0 %vm632_vm1, %v3241_v23 }
 0x20e   :  { %v845_v25 = vld [vmem:[#allocation2 + $0x271] ss:$2 sm:$0xff]  ;;  %v809_v26 = vld [vmem:[#allocation2 + $0x270] ss:$2 sm:$0xff] }
 0x20f   :  { %v1108_v27 = vld [vmem:[#allocation2 + $0x272] ss:$2 sm:$0xff]  ;;  %769 = vst.msk [vmem:[#allocation2 + $0x289] sm:$0xff] %vm632_vm1, %v616_v24  ;;  %5644 = vmatmul.msk.f32.gmra.mxu1 %vm632_vm1, %v845_v25  ;;  %5660 = vmatmul.msk.f32.gmra.mxu2 %vm632_vm1, %v809_v26 }
 0x210   :  { %5680 = vmatmul.msk.f32.gmra.mxu3 %vm632_vm1, %v1108_v27 }
 0x212   :  { %v459_v28 = vpop.f32.mrf.mxu0 }
 0x213   :  { %v553_v29 = vmul.f32 0.2, %v459_v28 }
 0x215   :  { %v617_v31 = vmax.f32 %v459_v28, %v553_v29  ;;  %5929 = vmatmul.msk.f32.gmra.mxu0 %vm632_vm1, %v3243_v30 }
 0x217   :  { %770 = vst.msk [vmem:[#allocation2 + $0x291] sm:$0xff] %vm632_vm1, %v617_v31  ;;  %v6850_v31 = vpop.f32.mrf.mxu1 }
 0x21a   :  { %v462_v34 = vpop.f32.mrf.mxu0 }
 0x21b   :  { %v554_v35 = vmul.f32 0.2, %v462_v34 }
 0x21d   :  { %v618_v37 = vmax.f32 %v462_v34, %v554_v35  ;;  %5930 = vmatmul.msk.f32.gmra.mxu0 %vm632_vm1, %v3245_v36  ;;  %v1250_v35 = vld [vmem:[#allocation2 + $0x3] ss:$2 sm:$0xff] }
 0x21e   :  { %v3263_v22 = vld [vmem:[#allocation2 + $0x28b] ss:$2 sm:$0xff] }
 0x21f   :  { %771 = vst.msk [vmem:[#allocation2 + $0x2a1] sm:$0xff] %vm632_vm1, %v618_v37  ;;  %v6854_v37 = vpop.f32.mrf.mxu2 }
 0x222   :  { %v465_v39 = vpop.f32.mrf.mxu0 }
 0x223   :  { %v555_v40 = vmul.f32 0.2, %v465_v39 }
 0x225   :  { %v619_v42 = vmax.f32 %v465_v39, %v555_v40  ;;  %5931 = vmatmul.msk.f32.gmra.mxu0 %vm632_vm1, %v3247_v41  ;;  %v6856_v39 = vpop.f32.mrf.mxu3  ;;  %v1581_v40 = vld [vmem:[#allocation2 + $0x19] ss:$2 sm:$0xff]  ;;  %v5766_v41 = vld [vmem:[%s8326_s2 + $0xf0] sm:$0xff] }
 0x226   :  { %2010 = vmatpush.msra.mxu2 %v5766_v41  ;;  %v5784_v41 = vld [vmem:[%s8326_s2 + $0x100] sm:$0xff] }
 0x227   :  { %772 = vst.msk [vmem:[#allocation2 + $0x2a9] sm:$0xff] %vm632_vm1, %v619_v42  ;;  %v5786_v42 = vld [vmem:[%s8326_s2 + $0x110] sm:$0xff] }
 0x228   :  { %2176 = vmatpush.msra.mxu3 %v5786_v42 }
 0x22a   :  { %v468_v43 = vpop.f32.mrf.mxu0 }
 0x22b   :  { %v556_v44 = vmul.f32 0.2, %v468_v43 }
 0x22d   :  { %v620_v46 = vmax.f32 %v468_v43, %v556_v44  ;;  %5932 = vmatmul.msk.f32.gmra.mxu0 %vm632_vm1, %v3249_v45  ;;  %v6868_v43 = vpop.f32.mrf.mxu1  ;;  %v5746_v45 = vld [vmem:[%s8326_s2 + $0xd0] sm:$0xff] }
 0x22e   :  { %v847_v47 = vld [vmem:[#allocation2 + $0x2a1] ss:$2 sm:$0xff]  ;;  %v811_v48 = vld [vmem:[#allocation2 + $0x2a0] ss:$2 sm:$0xff]  ;;  %1844 = vmatpush.msra.mxu1 %v5746_v45 }
 0x22f   :  { %v1110_v49 = vld [vmem:[#allocation2 + $0x2a2] ss:$2 sm:$0xff]  ;;  %773 = vst.msk [vmem:[#allocation2 + $0x2b9] sm:$0xff] %vm632_vm1, %v620_v46  ;;  %5645 = vmatmul.msk.f32.gmra.mxu1 %vm632_vm1, %v847_v47  ;;  %5661 = vmatmul.msk.f32.gmra.mxu2 %vm632_vm1, %v811_v48  ;;  %v1252_v48 = vld [vmem:[#allocation2 + $0x33] ss:$2 sm:$0xff] }
 0x230   :  { %5681 = vmatmul.msk.f32.gmra.mxu3 %vm632_vm1, %v1110_v49  ;;  %v1417_v49 = vld [vmem:[#allocation2 + $0x48] ss:$2 sm:$0xff]  ;;  %1845 = vmatpush.msra.mxu1 %v5745_v13  ;;  %v1274_v13 = vld [vmem:[#allocation2 + $0x273] ss:$2 sm:$0xff] }
 0x232   :  { %v471_v50 = vpop.f32.mrf.mxu0 }
 0x233   :  { %v557_v51 = vmul.f32 0.2, %v471_v50 }
 0x235   :  { %v621_v53 = vmax.f32 %v471_v50, %v557_v51  ;;  %5933 = vmatmul.msk.f32.gmra.mxu0 %vm632_vm1, %v3251_v52  ;;  %v1583_v50 = vld [vmem:[#allocation2 + $0x49] ss:$2 sm:$0xff]  ;;  %v6876_v51 = vpop.f32.mrf.mxu2  ;;  %v6879_v52 = vpop.f32.mrf.mxu3 }
 0x237   :  { %774 = vst.msk [vmem:[#allocation2 + $0x2c1] sm:$0xff] %vm632_vm1, %v621_v53  ;;  %v6881_v53 = vpop.f32.mrf.mxu1 }
 0x23a   :  { %v474_v56 = vpop.f32.mrf.mxu0 }
 0x23b   :  { %v558_v57 = vmul.f32 0.2, %v474_v56 }
 0x23d   :  { %v622_v59 = vmax.f32 %v474_v56, %v558_v57  ;;  %5934 = vmatmul.msk.f32.gmra.mxu0 %vm632_vm1, %v3253_v58  ;;  %v1254_v57 = vld [vmem:[#allocation2 + $0x63] ss:$2 sm:$0xff]  ;;  %v1419_v58 = vld [vmem:[#allocation2 + $0x78] ss:$2 sm:$0xff]  ;;  %v6886_v60 = vpop.f32.mrf.mxu2 }
 0x23e   :  { %v3265_v26 = vld [vmem:[#allocation2 + $0x2bb] ss:$2 sm:$0xff] }
 0x23f   :  { %775 = vst.msk [vmem:[#allocation2 + $0x2d1] sm:$0xff] %vm632_vm1, %v622_v59  ;;  %v1585_v59 = vld [vmem:[#allocation2 + $0x79] ss:$2 sm:$0xff] }
 0x242   :  { %v477_v61 = vpop.f32.mrf.mxu0 }
 0x243   :  { %v559_v63 = vmul.f32 0.2, %v477_v61 }
 0x245   :  { %v623_v0 = vmax.f32 %v477_v61, %v559_v63  ;;  %5935 = vmatmul.msk.f32.gmra.mxu0 %vm632_vm1, %v3255_v62  ;;  %v6889_v61 = vpop.f32.mrf.mxu3  ;;  %v6891_v62 = vpop.f32.mrf.mxu1  ;;  %v1256_v63 = vld [vmem:[#allocation2 + $0x93] ss:$2 sm:$0xff] }
 0x247   :  { %776 = vst.msk [vmem:[#allocation2 + $0x2d9] sm:$0xff] %vm632_vm1, %v623_v0  ;;  %v1421_v0 = vld [vmem:[#allocation2 + $0xa8] ss:$2 sm:$0xff] }
 0x24a   :  { %v480_v1 = vpop.f32.mrf.mxu0 }
 0x24b   :  { %v560_v2 = vmul.f32 0.2, %v480_v1 }
 0x24d   :  { %v624_v4 = vmax.f32 %v480_v1, %v560_v2  ;;  %5936 = vmatmul.msk.f32.gmra.mxu0 %vm632_vm1, %v3257_v3  ;;  %v1587_v1 = vld [vmem:[#allocation2 + $0xa9] ss:$2 sm:$0xff]  ;;  %v6895_v2 = vpop.f32.mrf.mxu2  ;;  %v6898_v3 = vpop.f32.mrf.mxu3 }
 0x24e   :  { %v849_v5 = vld [vmem:[#allocation2 + $0x2d1] ss:$2 sm:$0xff]  ;;  %v813_v6 = vld [vmem:[#allocation2 + $0x2d0] ss:$2 sm:$0xff] }
 0x24f   :  { %v1112_v7 = vld [vmem:[#allocation2 + $0x2d2] ss:$2 sm:$0xff]  ;;  %777 = vst.msk [vmem:[#allocation2 + $0x2e9] sm:$0xff] %vm632_vm1, %v624_v4  ;;  %5646 = vmatmul.msk.f32.gmra.mxu1 %vm632_vm1, %v849_v5  ;;  %5662 = vmatmul.msk.f32.gmra.mxu2 %vm632_vm1, %v813_v6  ;;  %v6900_v4 = vpop.f32.mrf.mxu1  ;;  %v1258_v5 = vld [vmem:[#allocation2 + $0xc3] ss:$2 sm:$0xff] }
 0x250   :  { %5682 = vmatmul.msk.f32.gmra.mxu3 %vm632_vm1, %v1112_v7  ;;  %v1423_v6 = vld [vmem:[#allocation2 + $0xd8] ss:$2 sm:$0xff]  ;;  %v1589_v7 = vld [vmem:[#allocation2 + $0xd9] ss:$2 sm:$0xff] }
 0x252   :  { %v483_v8 = vpop.f32.mrf.mxu0 }
 0x253   :  { %v561_v9 = vmul.f32 0.2, %v483_v8 }
 0x255   :  { %v625_v11 = vmax.f32 %v483_v8, %v561_v9  ;;  %5937 = vmatmul.msk.f32.gmra.mxu0 %vm632_vm1, %v3259_v10  ;;  %v6904_v8 = vpop.f32.mrf.mxu2  ;;  %v5765_v9 = vld [vmem:[%s8326_s2 + $0xe8] sm:$0xff] }
 0x256   :  { %v5785_v10 = vld [vmem:[%s8326_s2 + $0x108] sm:$0xff]  ;;  %2011 = vmatpush.msra.mxu2 %v5765_v9 }
 0x257   :  { %778 = vst.msk [vmem:[#allocation2 + $0x2f1] sm:$0xff] %vm632_vm1, %v625_v11  ;;  %v6913_v11 = vpop.f32.mrf.mxu3  ;;  %2177 = vmatpush.msra.mxu3 %v5785_v10  ;;  %v6915_v12 = vpop.f32.mrf.mxu1 }
 0x259   :  { %2178 = vmatpush.msra.mxu3 %v5784_v41 }
 0x25a   :  { %v486_v14 = vpop.f32.mrf.mxu0 }
 0x25b   :  { %v562_v15 = vmul.f32 0.2, %v486_v14 }
 0x25d   :  { %v626_v17 = vmax.f32 %v486_v14, %v562_v15  ;;  %5938 = vmatmul.msk.f32.gmra.mxu0 %vm632_vm1, %v3261_v16  ;;  %v1260_v14 = vld [vmem:[#allocation2 + $0xf3] ss:$2 sm:$0xff]  ;;  %v1425_v15 = vld [vmem:[#allocation2 + $0x108] ss:$2 sm:$0xff] }
 0x25e   :  { %v3267_v34 = vld [vmem:[#allocation2 + $0x2eb] ss:$2 sm:$0xff] }
 0x25f   :  { %779 = vst.msk [vmem:[#allocation2 + $0x301] sm:$0xff] %vm632_vm1, %v626_v17  ;;  %v1591_v16 = vld [vmem:[#allocation2 + $0x109] ss:$2 sm:$0xff]  ;;  %v6922_v17 = vpop.f32.mrf.mxu2  ;;  %v6925_v18 = vpop.f32.mrf.mxu3 }
 0x262   :  { %v489_v19 = vpop.f32.mrf.mxu0 }
 0x263   :  { %v563_v21 = vmul.f32 0.2, %v489_v19 }
 0x265   :  { %v627_v23 = vmax.f32 %v489_v19, %v563_v21  ;;  %5939 = vmatmul.msk.f32.gmra.mxu0 %vm632_vm1, %v3263_v22  ;;  %v6927_v19 = vpop.f32.mrf.mxu1  ;;  %v1262_v21 = vld [vmem:[#allocation2 + $0x123] ss:$2 sm:$0xff]  ;;  %v1427_v22 = vld [vmem:[#allocation2 + $0x138] ss:$2 sm:$0xff] }
 0x267   :  { %780 = vst.msk [vmem:[#allocation2 + $0x309] sm:$0xff] %vm632_vm1, %v627_v23  ;;  %v1593_v23 = vld [vmem:[#allocation2 + $0x139] ss:$2 sm:$0xff] }
 0x26a   :  { %v492_v24 = vpop.f32.mrf.mxu0 }
 0x26b   :  { %v564_v25 = vmul.f32 0.2, %v492_v24 }
 0x26d   :  { %v628_v27 = vmax.f32 %v492_v24, %v564_v25  ;;  %5940 = vmatmul.msk.f32.gmra.mxu0 %vm632_vm1, %v3265_v26  ;;  %v6931_v24 = vpop.f32.mrf.mxu2  ;;  %v6934_v25 = vpop.f32.mrf.mxu3 }
 0x26e   :  { %v851_v28 = vld [vmem:[#allocation2 + $0x301] ss:$2 sm:$0xff]  ;;  %v815_v29 = vld [vmem:[#allocation2 + $0x300] ss:$2 sm:$0xff]  ;;  %v6936_v26 = vpop.f32.mrf.mxu1 }
 0x26f   :  { %v1114_v30 = vld [vmem:[#allocation2 + $0x302] ss:$2 sm:$0xff]  ;;  %781 = vst.msk [vmem:[#allocation2 + $0x319] sm:$0xff] %vm632_vm1, %v628_v27  ;;  %5647 = vmatmul.msk.f32.gmra.mxu1 %vm632_vm1, %v851_v28  ;;  %5663 = vmatmul.msk.f32.gmra.mxu2 %vm632_vm1, %v815_v29  ;;  %v1264_v27 = vld [vmem:[#allocation2 + $0x153] ss:$2 sm:$0xff] }
 0x270   :  { %5683 = vmatmul.msk.f32.gmra.mxu3 %vm632_vm1, %v1114_v30  ;;  %v1429_v28 = vld [vmem:[#allocation2 + $0x168] ss:$2 sm:$0xff]  ;;  %v1595_v29 = vld [vmem:[#allocation2 + $0x169] ss:$2 sm:$0xff] }
 0x272   :  { %v495_v32 = vpop.f32.mrf.mxu0 }
 0x273   :  { %v565_v33 = vmul.f32 0.2, %v495_v32 }
 0x275   :  { %v629_v36 = vmax.f32 %v495_v32, %v565_v33  ;;  %5941 = vmatmul.msk.f32.gmra.mxu0 %vm632_vm1, %v3267_v34  ;;  %v6940_v30 = vpop.f32.mrf.mxu2  ;;  %v6943_v32 = vpop.f32.mrf.mxu3  ;;  %v1266_v34 = vld [vmem:[#allocation2 + $0x1b3] ss:$2 sm:$0xff] }
 0x276   :  { %v6945_v33 = vpop.f32.mrf.mxu1 }
 0x277   :  { %782 = vst.msk [vmem:[#allocation2 + $0x321] sm:$0xff] %vm632_vm1, %v629_v36  ;;  %5688 = vmatmul.msk.f32.vlgmr.msrb.gmra.mxu1 %vm632_vm1, %v1250_v35  ;;  %5708 = vmatmul.msk.f32.vlgmr.msrb.gmra.mxu2 %vm632_vm1, %v1415_v38  ;;  %v1431_v35 = vld [vmem:[#allocation2 + $0x1c8] ss:$2 sm:$0xff]  ;;  %v1597_v36 = vld [vmem:[#allocation2 + $0x1c9] ss:$2 sm:$0xff] }
 0x278   :  { %5728 = vmatmul.msk.f32.vlgmr.msrb.gmra.mxu3 %vm632_vm1, %v1581_v40  ;;  %v5764_v40 = vld [vmem:[%s8326_s2 + $0xe0] sm:$0xff] }
 0x279   :  { %2012 = vmatpush.msra.mxu2 %v5764_v40 }
 0x27a   :  { %v498_v44 = vpop.f32.mrf.mxu0 }
 0x27b   :  { %v566_v46 = vmul.f32 0.2, %v498_v44 }
 0x27d   :  { %v630_v47 = vmax.f32 %v498_v44, %v566_v46  ;;  %v6949_v38 = vpop.f32.mrf.mxu2  ;;  %v6958_v42 = vpop.f32.mrf.mxu3  ;;  %v5744_v44 = vld [vmem:[%s8326_s2 + $0xc0] sm:$0xff]  ;;  %v1268_v46 = vld [vmem:[#allocation2 + $0x1e3] ss:$2 sm:$0xff] }
 0x27e   :  { %1846 = vmatpush.msra.mxu1 %v5744_v44  ;;  %v6963_v45 = vpop.f32.mrf.mxu1  ;;  %v1278_v44 = vld [vmem:[#allocation2 + $0x2d3] ss:$2 sm:$0xff] }
 0x27f   :  { %783 = vst.msk [vmem:[#allocation2 + $0x331] sm:$0xff] %vm632_vm1, %v630_v47  ;;  %5689 = vmatmul.msk.f32.gmra.mxu1 %vm632_vm1, %v1252_v48  ;;  %5709 = vmatmul.msk.f32.gmra.mxu2 %vm632_vm1, %v1417_v49  ;;  %v1433_v47 = vld [vmem:[#allocation2 + $0x1f8] ss:$2 sm:$0xff]  ;;  %v1599_v48 = vld [vmem:[#allocation2 + $0x1f9] ss:$2 sm:$0xff] }
 0x280   :  { %5729 = vmatmul.msk.f32.gmra.mxu3 %vm632_vm1, %v1583_v50  ;;  %v3269_v50 = vld [vmem:[#allocation2 + $0x31b] ss:$2 sm:$0xff] }
 0x281   :  { %5942 = vmatmul.msk.f32.gmra.mxu0 %vm632_vm1, %v3269_v50 }
 0x282   :  { %v501_v54 = vpop.f32.mrf.mxu0 }
 0x283   :  { %v567_v55 = vmul.f32 0.2, %v501_v54 }
 0x285   :  { %v631_v56 = vmax.f32 %v501_v54, %v567_v55  ;;  %v6968_v49 = vpop.f32.mrf.mxu2  ;;  %v6970_v54 = vpop.f32.mrf.mxu3 }
 0x286   :  { %v6973_v55 = vpop.f32.mrf.mxu1 }
 0x287   :  { %784 = vst.msk [vmem:[#allocation2 + $0x339] sm:$0xff] %vm632_vm1, %v631_v56  ;;  %5690 = vmatmul.msk.f32.gmra.mxu1 %vm632_vm1, %v1254_v57  ;;  %5710 = vmatmul.msk.f32.gmra.mxu2 %vm632_vm1, %v1419_v58  ;;  %v1270_v56 = vld [vmem:[#allocation2 + $0x213] ss:$2 sm:$0xff]  ;;  %v1435_v57 = vld [vmem:[#allocation2 + $0x228] ss:$2 sm:$0xff] }
 0x288   :  { %5730 = vmatmul.msk.f32.gmra.mxu3 %vm632_vm1, %v1585_v59  ;;  %v1601_v58 = vld [vmem:[#allocation2 + $0x229] ss:$2 sm:$0xff] }
 0x28d   :  { %v6978_v59 = vpop.f32.mrf.mxu2 }
 0x28f   :  { %5691 = vmatmul.msk.f32.gmra.mxu1 %vm632_vm1, %v1256_v63  ;;  %5711 = vmatmul.msk.f32.gmra.mxu2 %vm632_vm1, %v1421_v0  ;;  %v6980_v63 = vpop.f32.mrf.mxu3  ;;  %v6982_v0 = vpop.f32.mrf.mxu1 }
 0x290   :  { %5731 = vmatmul.msk.f32.gmra.mxu3 %vm632_vm1, %v1587_v1  ;;  %v1272_v1 = vld [vmem:[#allocation2 + $0x243] ss:$2 sm:$0xff] }
 0x297   :  { %5692 = vmatmul.msk.f32.gmra.mxu1 %vm632_vm1, %v1258_v5  ;;  %5712 = vmatmul.msk.f32.gmra.mxu2 %vm632_vm1, %v1423_v6  ;;  %v1437_v5 = vld [vmem:[#allocation2 + $0x258] ss:$2 sm:$0xff]  ;;  %v1603_v6 = vld [vmem:[#allocation2 + $0x259] ss:$2 sm:$0xff]  ;;  %v6989_v9 = vpop.f32.mrf.mxu3  ;;  %v6991_v10 = vpop.f32.mrf.mxu1 }
 0x298   :  { %5732 = vmatmul.msk.f32.gmra.mxu3 %vm632_vm1, %v1589_v7  ;;  %v6987_v7 = vpop.f32.mrf.mxu2 }
 0x29f   :  { %5693 = vmatmul.msk.f32.gmra.mxu1 %vm632_vm1, %v1260_v14  ;;  %5713 = vmatmul.msk.f32.gmra.mxu2 %vm632_vm1, %v1425_v15  ;;  %v1439_v14 = vld [vmem:[#allocation2 + $0x288] ss:$2 sm:$0xff]  ;;  %v1605_v15 = vld [vmem:[#allocation2 + $0x289] ss:$2 sm:$0xff] }
 0x2a0   :  { %5733 = vmatmul.msk.f32.gmra.mxu3 %vm632_vm1, %v1591_v16  ;;  %v5827_v16 = vld [vmem:[%s8326_s2 + $0x158] sm:$0xff] }
 0x2a1   :  { %2507 = vmatpush.msrb.mxu2 %v5827_v16 }
 0x2a7   :  { %5694 = vmatmul.msk.f32.gmra.mxu1 %vm632_vm1, %v1262_v21  ;;  %5714 = vmatmul.msk.f32.gmra.mxu2 %vm632_vm1, %v1427_v22  ;;  %v5847_v21 = vld [vmem:[%s8326_s2 + $0x178] sm:$0xff]  ;;  %v7002_v22 = vpop.f32.mrf.mxu2 }
 0x2a8   :  { %5734 = vmatmul.msk.f32.gmra.mxu3 %vm632_vm1, %v1593_v23  ;;  %v7004_v23 = vpop.f32.mrf.mxu3 }
 0x2a9   :  { %2673 = vmatpush.msrb.mxu3 %v5847_v21  ;;  %v1747_v21 = vld [vmem:[#allocation2 + $0x1a] ss:$2 sm:$0xff] }
 0x2af   :  { %5695 = vmatmul.msk.f32.gmra.mxu1 %vm632_vm1, %v1264_v27  ;;  %5715 = vmatmul.msk.f32.gmra.mxu2 %vm632_vm1, %v1429_v28  ;;  %v7006_v27 = vpop.f32.mrf.mxu1  ;;  %v5807_v28 = vld [vmem:[%s8326_s2 + $0x138] sm:$0xff] }
 0x2b0   :  { %5735 = vmatmul.msk.f32.gmra.mxu3 %vm632_vm1, %v1595_v29  ;;  %v1276_v29 = vld [vmem:[#allocation2 + $0x2a3] ss:$2 sm:$0xff]  ;;  %2341 = vmatpush.msrb.mxu1 %v5807_v28 }
 0x2b1   :  { %v1913_v28 = vld [vmem:[#allocation2 + $0x1b] ss:$2 sm:$0xff] }
 0x2b3   :  { %v7016_v40 = vpop.f32.mrf.mxu3 }
 0x2b7   :  { %5696 = vmatmul.msk.f32.gmra.mxu1 %vm632_vm1, %v1266_v34  ;;  %5716 = vmatmul.msk.f32.gmra.mxu2 %vm632_vm1, %v1431_v35  ;;  %v1441_v34 = vld [vmem:[#allocation2 + $0x2b8] ss:$2 sm:$0xff]  ;;  %v1607_v35 = vld [vmem:[#allocation2 + $0x2b9] ss:$2 sm:$0xff] }
 0x2b8   :  { %5736 = vmatmul.msk.f32.gmra.mxu3 %vm632_vm1, %v1597_v36  ;;  %v7014_v36 = vpop.f32.mrf.mxu2 }
 0x2bf   :  { %5697 = vmatmul.msk.f32.gmra.mxu1 %vm632_vm1, %v1268_v46  ;;  %5717 = vmatmul.msk.f32.gmra.mxu2 %vm632_vm1, %v1433_v47  ;;  %v1443_v46 = vld [vmem:[#allocation2 + $0x2e8] ss:$2 sm:$0xff]  ;;  %v1609_v47 = vld [vmem:[#allocation2 + $0x2e9] ss:$2 sm:$0xff] }
 0x2c0   :  { %5737 = vmatmul.msk.f32.gmra.mxu3 %vm632_vm1, %v1599_v48 }
 0x2c7   :  { %5698 = vmatmul.msk.f32.gmra.mxu1 %vm632_vm1, %v1270_v56  ;;  %5718 = vmatmul.msk.f32.gmra.mxu2 %vm632_vm1, %v1435_v57  ;;  %v1280_v57 = vld [vmem:[#allocation2 + $0x303] ss:$2 sm:$0xff] }
 0x2c8   :  { %5738 = vmatmul.msk.f32.gmra.mxu3 %vm632_vm1, %v1601_v58  ;;  %v1445_v58 = vld [vmem:[#allocation2 + $0x318] ss:$2 sm:$0xff] }
 0x2cc   :  { %v7018_v41 = vpop.f32.mrf.mxu1 }
 0x2cf   :  { %5699 = vmatmul.msk.f32.gmra.mxu1 %vm632_vm1, %v1272_v1  ;;  %5719 = vmatmul.msk.f32.gmra.mxu2 %vm632_vm1, %v1437_v5  ;;  %v1611_v1 = vld [vmem:[#allocation2 + $0x319] ss:$2 sm:$0xff] }
 0x2d0   :  { %5739 = vmatmul.msk.f32.gmra.mxu3 %vm632_vm1, %v1603_v6  ;;  %v1036_v6 = vadd.f32 %v6854_v37, %v6850_v31  ;;  %v5826_v31 = vld [vmem:[%s8326_s2 + $0x150] sm:$0xff] }
 0x2d1   :  { %v5846_v37 = vld [vmem:[%s8326_s2 + $0x170] sm:$0xff]  ;;  %2508 = vmatpush.msrb.mxu2 %v5826_v31 }
 0x2d2   :  { %v7023_v48 = vpop.f32.mrf.mxu2  ;;  %2674 = vmatpush.msrb.mxu3 %v5846_v37  ;;  %v1917_v31 = vld [vmem:[#allocation2 + $0x7b] ss:$2 sm:$0xff]  ;;  %v2083_v37 = vld [vmem:[#allocation2 + $0x90] ss:$2 sm:$0xff] }
 0x2d3   :  { %v7025_v50 = vpop.f32.mrf.mxu3 }
 0x2d7   :  { %5700 = vmatmul.msk.f32.gmra.mxu1 %vm632_vm1, %v1274_v13  ;;  %5720 = vmatmul.msk.f32.gmra.mxu2 %vm632_vm1, %v1439_v14 }
 0x2d8   :  { %5740 = vmatmul.msk.f32.gmra.mxu3 %vm632_vm1, %v1605_v15 }
 0x2df   :  { %5701 = vmatmul.msk.f32.gmra.mxu1 %vm632_vm1, %v1276_v29  ;;  %5721 = vmatmul.msk.f32.gmra.mxu2 %vm632_vm1, %v1441_v34  ;;  %v1233_v29 = vadd.f32 %v6856_v39, %v1036_v6  ;;  %v2079_v34 = vld [vmem:[#allocation2 + $0x30] ss:$2 sm:$0xff]  ;;  %v1039_v39 = vadd.f32 %v6876_v51, %v6868_v43 }
 0x2e0   :  { %5741 = vmatmul.msk.f32.gmra.mxu3 %vm632_vm1, %v1607_v35 }
 0x2e1   :  { %v1234_v6 = vadd.f32 %v6879_v52, %v1039_v39 }
 0x2e7   :  { %5702 = vmatmul.msk.f32.gmra.mxu1 %vm632_vm1, %v1278_v44  ;;  %5722 = vmatmul.msk.f32.gmra.mxu2 %vm632_vm1, %v1443_v46 }
 0x2e8   :  { %5742 = vmatmul.msk.f32.gmra.mxu3 %vm632_vm1, %v1609_v47 }
 0x2ec   :  { %v967_v56 = vpop.f32.mrf.mxu1 }
 0x2ef   :  { %5703 = vmatmul.msk.f32.gmra.mxu1 %vm632_vm1, %v1280_v57  ;;  %5723 = vmatmul.msk.f32.gmra.mxu2 %vm632_vm1, %v1445_v58  ;;  %v5806_v58 = vld [vmem:[%s8326_s2 + $0x130] sm:$0xff] }
 0x2f0   :  { %5743 = vmatmul.msk.f32.gmra.mxu3 %vm632_vm1, %v1611_v1  ;;  %v1749_v1 = vld [vmem:[#allocation2 + $0x4a] ss:$2 sm:$0xff]  ;;  %2342 = vmatpush.msrb.mxu1 %v5806_v58  ;;  %v1919_v58 = vld [vmem:[#allocation2 + $0xab] ss:$2 sm:$0xff] }
 0x2f2   :  { %v1080_v5 = vpop.f32.mrf.mxu2 }
 0x2f3   :  { %v1081_v13 = vadd.f32 %v1080_v5, %v967_v56  ;;  %v1230_v14 = vpop.f32.mrf.mxu3  ;;  %v1915_v5 = vld [vmem:[#allocation2 + $0x4b] ss:$2 sm:$0xff] }
 0x2f4   :  { %v1351_v15 = vpop.f32.mrf.mxu1 }
 0x2f5   :  { %v7032_v16 = vadd.f32 %v1230_v14, %v1081_v13  ;;  %v1399_v35 = vadd.f32 %v1351_v15, %v1233_v29  ;;  %v2081_v13 = vld [vmem:[#allocation2 + $0x60] ss:$2 sm:$0xff]  ;;  %v1042_v14 = vadd.f32 %v6886_v60, %v6881_v53  ;;  %v1045_v53 = vadd.f32 %v6895_v2, %v6891_v62 }
 0x2f6   :  { %v1048_v62 = vadd.f32 %v6904_v8, %v6900_v4  ;;  %v5825_v4 = vld [vmem:[%s8326_s2 + $0x148] sm:$0xff] }
 0x2f7   :  { %5748 = vmatmul.msk.f32.vlgmr.msra.gmra.mxu1 %vm632_vm1, %v1747_v21  ;;  %5768 = vmatmul.msk.f32.vlgmr.msra.gmra.mxu2 %vm632_vm1, %v1913_v28  ;;  %v1235_v52 = vadd.f32 %v6889_v61, %v1042_v14  ;;  %v1236_v61 = vadd.f32 %v6898_v3, %v1045_v53  ;;  %v1755_v14 = vld [vmem:[#allocation2 + $0xda] ss:$2 sm:$0xff]  ;;  %v1757_v53 = vld [vmem:[#allocation2 + $0x10a] ss:$2 sm:$0xff] }
 0x2f8   :  { %5788 = vmatmul.msk.f32.vlgmr.msra.gmra.mxu3 %vm632_vm1, %v2079_v34  ;;  %v1751_v34 = vld [vmem:[#allocation2 + $0x7a] ss:$2 sm:$0xff]  ;;  %v1237_v3 = vadd.f32 %v6913_v11, %v1048_v62  ;;  %2509 = vmatpush.msrb.mxu2 %v5825_v4  ;;  %v1051_v11 = vadd.f32 %v6922_v17, %v6915_v12  ;;  %v1925_v62 = vld [vmem:[#allocation2 + $0x13b] ss:$2 sm:$0xff]  ;;  %v1927_v4 = vld [vmem:[#allocation2 + $0x16b] ss:$2 sm:$0xff] }
 0x2f9   :  { %v5845_v8 = vld [vmem:[%s8326_s2 + $0x168] sm:$0xff] }
 0x2fa   :  { %v1516_v44 = vpop.f32.mrf.mxu2  ;;  %2675 = vmatpush.msrb.mxu3 %v5845_v8  ;;  %v2093_v8 = vld [vmem:[#allocation2 + $0x180] ss:$2 sm:$0xff] }
 0x2fb   :  { %v1564_v46 = vadd.f32 %v1516_v44, %v1399_v35  ;;  %v1682_v47 = vpop.f32.mrf.mxu3 }
 0x2fc   :  { %v1354_v56 = vpop.f32.mrf.mxu1 }
 0x2fd   :  { %v7046_v57 = vadd.f32 %v1682_v47, %v1564_v46  ;;  %v1400_v43 = vadd.f32 %v1354_v56, %v1234_v6  ;;  %v1753_v56 = vld [vmem:[#allocation2 + $0xaa] ss:$2 sm:$0xff] }
 0x2ff   :  { %5749 = vmatmul.msk.f32.gmra.mxu1 %vm632_vm1, %v1749_v1  ;;  %5769 = vmatmul.msk.f32.gmra.mxu2 %vm632_vm1, %v1915_v5  ;;  %v2085_v1 = vld [vmem:[#allocation2 + $0xc0] ss:$2 sm:$0xff] }
 0x300   :  { %5789 = vmatmul.msk.f32.gmra.mxu3 %vm632_vm1, %v2081_v13 }
 0x302   :  { %v1519_v51 = vpop.f32.mrf.mxu2 }
 0x303   :  { %v1565_v15 = vadd.f32 %v1519_v51, %v1400_v43  ;;  %v1685_v21 = vpop.f32.mrf.mxu3 }
 0x304   :  { %v1357_v28 = vpop.f32.mrf.mxu1 }
 0x305   :  { %v7057_v29 = vadd.f32 %v1685_v21, %v1565_v15  ;;  %v1401_v35 = vadd.f32 %v1357_v28, %v1235_v52  ;;  %v1921_v15 = vld [vmem:[#allocation2 + $0xdb] ss:$2 sm:$0xff]  ;;  %v2087_v21 = vld [vmem:[#allocation2 + $0xf0] ss:$2 sm:$0xff] }
 0x307   :  { %5750 = vmatmul.msk.f32.gmra.mxu1 %vm632_vm1, %v1751_v34  ;;  %5770 = vmatmul.msk.f32.gmra.mxu2 %vm632_vm1, %v1917_v31 }
 0x308   :  { %5790 = vmatmul.msk.f32.gmra.mxu3 %vm632_vm1, %v2083_v37 }
 0x30a   :  { %v1522_v44 = vpop.f32.mrf.mxu2 }
 0x30b   :  { %v1566_v60 = vadd.f32 %v1522_v44, %v1401_v35  ;;  %v1688_v39 = vpop.f32.mrf.mxu3  ;;  %v5805_v44 = vld [vmem:[%s8326_s2 + $0x128] sm:$0xff] }
 0x30c   :  { %v1360_v46 = vpop.f32.mrf.mxu1  ;;  %2343 = vmatpush.msrb.mxu1 %v5805_v44  ;;  %v1929_v44 = vld [vmem:[#allocation2 + $0x1cb] ss:$2 sm:$0xff] }
 0x30d   :  { %v7065_v47 = vadd.f32 %v1688_v39, %v1566_v60  ;;  %v1402_v5 = vadd.f32 %v1360_v46, %v1236_v61  ;;  %v1923_v60 = vld [vmem:[#allocation2 + $0x10b] ss:$2 sm:$0xff]  ;;  %v1238_v39 = vadd.f32 %v6925_v18, %v1051_v11  ;;  %v2089_v46 = vld [vmem:[#allocation2 + $0x120] ss:$2 sm:$0xff] }
 0x30f   :  { %5751 = vmatmul.msk.f32.gmra.mxu1 %vm632_vm1, %v1753_v56  ;;  %5771 = vmatmul.msk.f32.gmra.mxu2 %vm632_vm1, %v1919_v58  ;;  %v1054_v56 = vadd.f32 %v6931_v24, %v6927_v19  ;;  %v1057_v19 = vadd.f32 %v6940_v30, %v6936_v26  ;;  %v1060_v26 = vadd.f32 %v6949_v38, %v6945_v33  ;;  %v5824_v33 = vld [vmem:[%s8326_s2 + $0x140] sm:$0xff] }
 0x310   :  { %5791 = vmatmul.msk.f32.gmra.mxu3 %vm632_vm1, %v2085_v1  ;;  %v5844_v38 = vld [vmem:[%s8326_s2 + $0x160] sm:$0xff]  ;;  %2510 = vmatpush.msrb.mxu2 %v5824_v33 }
 0x311   :  { %v1239_v18 = vadd.f32 %v6934_v25, %v1054_v56  ;;  %v1240_v25 = vadd.f32 %v6943_v32, %v1057_v19  ;;  %v1241_v32 = vadd.f32 %v6958_v42, %v1060_v26  ;;  %2676 = vmatpush.msrb.mxu3 %v5844_v38  ;;  %v1063_v42 = vadd.f32 %v6968_v49, %v6963_v45  ;;  %v1935_v26 = vld [vmem:[#allocation2 + $0x25b] ss:$2 sm:$0xff]  ;;  %v1937_v33 = vld [vmem:[#allocation2 + $0x28b] ss:$2 sm:$0xff]  ;;  %v2103_v38 = vld [vmem:[#allocation2 + $0x2a0] ss:$2 sm:$0xff] }
 0x312   :  { %v1525_v6 = vpop.f32.mrf.mxu2 }
 0x313   :  { %v1567_v2 = vadd.f32 %v1525_v6, %v1402_v5  ;;  %v1691_v13 = vpop.f32.mrf.mxu3  ;;  %v1759_v6 = vld [vmem:[#allocation2 + $0x13a] ss:$2 sm:$0xff] }
 0x314   :  { %v1363_v43 = vpop.f32.mrf.mxu1 }
 0x315   :  { %v7073_v51 = vadd.f32 %v1691_v13, %v1567_v2  ;;  %v1403_v28 = vadd.f32 %v1363_v43, %v1237_v3  ;;  %v2091_v2 = vld [vmem:[#allocation2 + $0x150] ss:$2 sm:$0xff] }
 0x317   :  { %5752 = vmatmul.msk.f32.gmra.mxu1 %vm632_vm1, %v1755_v14  ;;  %5772 = vmatmul.msk.f32.gmra.mxu2 %vm632_vm1, %v1921_v15 }
 0x318   :  { %5792 = vmatmul.msk.f32.gmra.mxu3 %vm632_vm1, %v2087_v21  ;;  %v1761_v21 = vld [vmem:[#allocation2 + $0x16a] ss:$2 sm:$0xff] }
 0x31a   :  { %v1528_v34 = vpop.f32.mrf.mxu2 }
 0x31b   :  { %v1568_v31 = vadd.f32 %v1528_v34, %v1403_v28  ;;  %v1694_v52 = vpop.f32.mrf.mxu3 }
 0x31c   :  { %v1366_v37 = vpop.f32.mrf.mxu1 }
 0x31d   :  { %v7087_v35 = vadd.f32 %v1694_v52, %v1568_v31  ;;  %v1404_v12 = vadd.f32 %v1366_v37, %v1238_v39  ;;  %v1763_v37 = vld [vmem:[#allocation2 + $0x1ca] ss:$2 sm:$0xff] }
 0x31f   :  { %5753 = vmatmul.msk.f32.gmra.mxu1 %vm632_vm1, %v1757_v53  ;;  %5773 = vmatmul.msk.f32.gmra.mxu2 %vm632_vm1, %v1923_v60  ;;  %v2095_v53 = vld [vmem:[#allocation2 + $0x1e0] ss:$2 sm:$0xff] }
 0x320   :  { %5793 = vmatmul.msk.f32.gmra.mxu3 %vm632_vm1, %v2089_v46 }
 0x322   :  { %v1531_v17 = vpop.f32.mrf.mxu2 }
 0x323   :  { %v1569_v58 = vadd.f32 %v1531_v17, %v1404_v12  ;;  %v1697_v61 = vpop.f32.mrf.mxu3 }
 0x324   :  { %v1369_v1 = vpop.f32.mrf.mxu1 }
 0x325   :  { %v7098_v5 = vadd.f32 %v1697_v61, %v1569_v58  ;;  %v1405_v13 = vadd.f32 %v1369_v1, %v1239_v18  ;;  %v5804_v58 = vld [vmem:[%s8326_s2 + $0x120] sm:$0xff]  ;;  %v1066_v18 = vadd.f32 %v6978_v59, %v6973_v55  ;;  %v1069_v55 = vadd.f32 %v6987_v7, %v6982_v0 }
 0x326   :  { %v1765_v61 = vld [vmem:[#allocation2 + $0x1fa] ss:$2 sm:$0xff]  ;;  %v1931_v1 = vld [vmem:[#allocation2 + $0x1fb] ss:$2 sm:$0xff]  ;;  %2344 = vmatpush.msrb.mxu1 %v5804_v58  ;;  %v1072_v0 = vadd.f32 %v7002_v22, %v6991_v10  ;;  %v5887_v10 = vld [vmem:[%s8326_s2 + $0x1b8] sm:$0xff] }
 0x327   :  { %5754 = vmatmul.msk.f32.gmra.mxu1 %vm632_vm1, %v1759_v6  ;;  %5774 = vmatmul.msk.f32.gmra.mxu2 %vm632_vm1, %v1925_v62  ;;  %v1242_v6 = vadd.f32 %v6970_v54, %v1063_v42  ;;  %v2097_v62 = vld [vmem:[#allocation2 + $0x210] ss:$2 sm:$0xff]  ;;  %v1243_v54 = vadd.f32 %v6980_v63, %v1066_v18  ;;  %v1244_v63 = vadd.f32 %v6989_v9, %v1069_v55 }
 0x328   :  { %5794 = vmatmul.msk.f32.gmra.mxu3 %vm632_vm1, %v2091_v2  ;;  %v1245_v9 = vadd.f32 %v7004_v23, %v1072_v0  ;;  %v5907_v22 = vld [vmem:[%s8326_s2 + $0x1d8] sm:$0xff]  ;;  %3005 = vmatpush.msra.mxu2 %v5887_v10  ;;  %v1075_v23 = vadd.f32 %v7014_v36, %v7006_v27  ;;  %v1777_v55 = vld [vmem:[#allocation2 + $0x31a] ss:$2 sm:$0xff] }
 0x329   :  { %3171 = vmatpush.msra.mxu3 %v5907_v22  ;;  %v5867_v58 = vld [vmem:[%s8326_s2 + $0x198] sm:$0xff]  ;;  %v5866_v10 = vld [vmem:[%s8326_s2 + $0x190] sm:$0xff] }
 0x32a   :  { %v1534_v43 = vpop.f32.mrf.mxu2  ;;  %2839 = vmatpush.msra.mxu1 %v5867_v58  ;;  %v2577_v0 = vld [vmem:[#allocation2 + $0x33] ss:$2 sm:$0xff] }
 0x32b   :  { %v1570_v24 = vadd.f32 %v1534_v43, %v1405_v13  ;;  %v1700_v14 = vpop.f32.mrf.mxu3  ;;  %v2247_v22 = vld [vmem:[#allocation2 + $0x61] ss:$2 sm:$0xff] }
 0x32c   :  { %v1372_v15 = vpop.f32.mrf.mxu1  ;;  %2840 = vmatpush.msra.mxu1 %v5866_v10  ;;  %v2589_v10 = vld [vmem:[#allocation2 + $0x153] ss:$2 sm:$0xff] }
 0x32d   :  { %v7106_v3 = vadd.f32 %v1700_v14, %v1570_v24  ;;  %v1406_v28 = vadd.f32 %v1372_v15, %v1240_v25  ;;  %v1767_v24 = vld [vmem:[#allocation2 + $0x22a] ss:$2 sm:$0xff]  ;;  %v1933_v14 = vld [vmem:[#allocation2 + $0x22b] ss:$2 sm:$0xff] }
 0x32e   :  { %v2099_v15 = vld [vmem:[#allocation2 + $0x240] ss:$2 sm:$0xff] }
 0x32f   :  { %5755 = vmatmul.msk.f32.gmra.mxu1 %vm632_vm1, %v1761_v21  ;;  %5775 = vmatmul.msk.f32.gmra.mxu2 %vm632_vm1, %v1927_v4 }
 0x330   :  { %5795 = vmatmul.msk.f32.gmra.mxu3 %vm632_vm1, %v2093_v8 }
 0x332   :  { %v1537_v34 = vpop.f32.mrf.mxu2 }
 0x333   :  { %v1571_v30 = vadd.f32 %v1537_v34, %v1406_v28  ;;  %v1703_v11 = vpop.f32.mrf.mxu3  ;;  %v1769_v34 = vld [vmem:[#allocation2 + $0x25a] ss:$2 sm:$0xff] }
 0x334   :  { %v1375_v31 = vpop.f32.mrf.mxu1 }
 0x335   :  { %v7114_v52 = vadd.f32 %v1703_v11, %v1571_v30  ;;  %v1407_v60 = vadd.f32 %v1375_v31, %v1241_v32  ;;  %v2101_v30 = vld [vmem:[#allocation2 + $0x270] ss:$2 sm:$0xff] }
 0x337   :  { %5756 = vmatmul.msk.f32.gmra.mxu1 %vm632_vm1, %v1763_v37  ;;  %5776 = vmatmul.msk.f32.gmra.mxu2 %vm632_vm1, %v1929_v44 }
 0x338   :  { %5796 = vmatmul.msk.f32.gmra.mxu3 %vm632_vm1, %v2095_v53  ;;  %v1771_v53 = vld [vmem:[#allocation2 + $0x28a] ss:$2 sm:$0xff] }
 0x33a   :  { %v1540_v39 = vpop.f32.mrf.mxu2 }
 0x33b   :  { %v1572_v46 = vadd.f32 %v1540_v39, %v1407_v60  ;;  %v1706_v12 = vpop.f32.mrf.mxu3 }
 0x33c   :  { %v1378_v17 = vpop.f32.mrf.mxu1 }
 0x33d   :  { %v7128_v56 = vadd.f32 %v1706_v12, %v1572_v46  ;;  %v1408_v45 = vadd.f32 %v1378_v17, %v1242_v6  ;;  %v1246_v6 = vadd.f32 %v7016_v40, %v1075_v23 }
 0x33f   :  { %5757 = vmatmul.msk.f32.gmra.mxu1 %vm632_vm1, %v1765_v61  ;;  %5777 = vmatmul.msk.f32.gmra.mxu2 %vm632_vm1, %v1931_v1  ;;  %v1773_v61 = vld [vmem:[#allocation2 + $0x2ba] ss:$2 sm:$0xff]  ;;  %v1939_v1 = vld [vmem:[#allocation2 + $0x2bb] ss:$2 sm:$0xff] }
 0x340   :  { %5797 = vmatmul.msk.f32.gmra.mxu3 %vm632_vm1, %v2097_v62  ;;  %v2105_v62 = vld [vmem:[#allocation2 + $0x2d0] ss:$2 sm:$0xff] }
 0x342   :  { %v1543_v49 = vpop.f32.mrf.mxu2 }
 0x343   :  { %v1573_v2 = vadd.f32 %v1543_v49, %v1408_v45  ;;  %v1709_v13 = vpop.f32.mrf.mxu3  ;;  %v1078_v45 = vadd.f32 %v7023_v48, %v7018_v41 }
 0x344   :  { %v1381_v43 = vpop.f32.mrf.mxu1 }
 0x345   :  { %v7139_v19 = vadd.f32 %v1709_v13, %v1573_v2  ;;  %v1409_v21 = vadd.f32 %v1381_v43, %v1243_v54  ;;  %v1775_v43 = vld [vmem:[#allocation2 + $0x2ea] ss:$2 sm:$0xff]  ;;  %v1247_v40 = vadd.f32 %v7025_v50, %v1078_v45 }
 0x346   :  { %v2109_v50 = vld [vmem:[#allocation2 + $0x330] ss:$2 sm:$0xff] }
 0x347   :  { %5758 = vmatmul.msk.f32.gmra.mxu1 %vm632_vm1, %v1767_v24  ;;  %5778 = vmatmul.msk.f32.gmra.mxu2 %vm632_vm1, %v1933_v14  ;;  %v1941_v24 = vld [vmem:[#allocation2 + $0x2eb] ss:$2 sm:$0xff]  ;;  %v2107_v14 = vld [vmem:[#allocation2 + $0x300] ss:$2 sm:$0xff] }
 0x348   :  { %5798 = vmatmul.msk.f32.gmra.mxu3 %vm632_vm1, %v2099_v15 }
 0x34a   :  { %v1546_v4 = vpop.f32.mrf.mxu2 }
 0x34b   :  { %v1574_v59 = vadd.f32 %v1546_v4, %v1409_v21  ;;  %v1712_v25 = vpop.f32.mrf.mxu3 }
 0x34c   :  { %v1384_v8 = vpop.f32.mrf.mxu1 }
 0x34d   :  { %v7147_v28 = vadd.f32 %v1712_v25, %v1574_v59  ;;  %v1410_v11 = vadd.f32 %v1384_v8, %v1244_v63  ;;  %v1943_v59 = vld [vmem:[#allocation2 + $0x31b] ss:$2 sm:$0xff] }
 0x34f   :  { %5759 = vmatmul.msk.f32.gmra.mxu1 %vm632_vm1, %v1769_v34  ;;  %5779 = vmatmul.msk.f32.gmra.mxu2 %vm632_vm1, %v1935_v26 }
 0x350   :  { %5799 = vmatmul.msk.f32.gmra.mxu3 %vm632_vm1, %v2101_v30 }
 0x352   :  { %v1549_v31 = vpop.f32.mrf.mxu2 }
 0x353   :  { %v1575_v7 = vadd.f32 %v1549_v31, %v1410_v11  ;;  %v1715_v37 = vpop.f32.mrf.mxu3  ;;  %v2245_v11 = vld [vmem:[#allocation2 + $0x31] ss:$2 sm:$0xff]  ;;  %v2411_v31 = vld [vmem:[#allocation2 + $0x32] ss:$2 sm:$0xff] }
 0x354   :  { %v1387_v44 = vpop.f32.mrf.mxu1 }
 0x355   :  { %v7155_v32 = vadd.f32 %v1715_v37, %v1575_v7  ;;  %v1411_v60 = vadd.f32 %v1387_v44, %v1245_v9  ;;  %v5886_v7 = vld [vmem:[%s8326_s2 + $0x1b0] sm:$0xff] }
 0x356   :  { %3006 = vmatpush.msra.mxu2 %v5886_v7 }
 0x357   :  { %5760 = vmatmul.msk.f32.gmra.mxu1 %vm632_vm1, %v1771_v53  ;;  %5780 = vmatmul.msk.f32.gmra.mxu2 %vm632_vm1, %v1937_v33 }
 0x358   :  { %5800 = vmatmul.msk.f32.gmra.mxu3 %vm632_vm1, %v2103_v38 }
 0x35a   :  { %v1552_v39 = vpop.f32.mrf.mxu2 }
 0x35b   :  { %v1576_v42 = vadd.f32 %v1552_v39, %v1411_v60  ;;  %v1718_v46 = vpop.f32.mrf.mxu3  ;;  %v2413_v60 = vld [vmem:[#allocation2 + $0x62] ss:$2 sm:$0xff] }
 0x35c   :  { %v1390_v12 = vpop.f32.mrf.mxu1 }
 0x35d   :  { %v7169_v17 = vadd.f32 %v1718_v46, %v1576_v42  ;;  %v1412_v27 = vadd.f32 %v1390_v12, %v1246_v6  ;;  %v2581_v6 = vld [vmem:[#allocation2 + $0x93] ss:$2 sm:$0xff] }
 0x35f   :  { %5761 = vmatmul.msk.f32.gmra.mxu1 %vm632_vm1, %v1773_v61  ;;  %5781 = vmatmul.msk.f32.gmra.mxu2 %vm632_vm1, %v1939_v1  ;;  %v2249_v61 = vld [vmem:[#allocation2 + $0x91] ss:$2 sm:$0xff]  ;;  %v2415_v1 = vld [vmem:[#allocation2 + $0x92] ss:$2 sm:$0xff] }
 0x360   :  { %5801 = vmatmul.msk.f32.gmra.mxu3 %vm632_vm1, %v2105_v62 }
 0x362   :  { %v1555_v36 = vpop.f32.mrf.mxu2 }
 0x363   :  { %v1577_v49 = vadd.f32 %v1555_v36, %v1412_v27  ;;  %v1721_v18 = vpop.f32.mrf.mxu3 }
 0x364   :  { %v1393_v2 = vpop.f32.mrf.mxu1 }
 0x365   :  { %v7180_v13 = vadd.f32 %v1721_v18, %v1577_v49  ;;  %v1413_v54 = vadd.f32 %v1393_v2, %v1247_v40  ;;  %v2251_v18 = vld [vmem:[#allocation2 + $0xc1] ss:$2 sm:$0xff]  ;;  %v2417_v2 = vld [vmem:[#allocation2 + $0xc2] ss:$2 sm:$0xff] }
 0x367   :  { %5762 = vmatmul.msk.f32.gmra.mxu1 %vm632_vm1, %v1775_v43  ;;  %5782 = vmatmul.msk.f32.gmra.mxu2 %vm632_vm1, %v1941_v24  ;;  %v2583_v43 = vld [vmem:[#allocation2 + $0xc3] ss:$2 sm:$0xff] }
 0x368   :  { %5802 = vmatmul.msk.f32.gmra.mxu3 %vm632_vm1, %v2107_v14 }
 0x36a   :  { %v1558_v15 = vpop.f32.mrf.mxu2 }
 0x36b   :  { %v1578_v21 = vadd.f32 %v1558_v15, %v1413_v54  ;;  %v1724_v41 = vpop.f32.mrf.mxu3 }
 0x36c   :  { %v1396_v48 = vpop.f32.mrf.mxu1 }
 0x36d   :  { %v7186_v4 = vadd.f32 %v1724_v41, %v1578_v21  ;;  %v1414_v25 = vadd.f32 %v1396_v48, %v7032_v16  ;;  %v5906_v16 = vld [vmem:[%s8326_s2 + $0x1d0] sm:$0xff]  ;;  %v2253_v21 = vld [vmem:[#allocation2 + $0xf1] ss:$2 sm:$0xff]  ;;  %v2419_v41 = vld [vmem:[#allocation2 + $0xf2] ss:$2 sm:$0xff] }
 0x36e   :  { %3172 = vmatpush.msra.mxu3 %v5906_v16  ;;  %v2585_v48 = vld [vmem:[#allocation2 + $0xf3] ss:$2 sm:$0xff] }
 0x36f   :  { %5763 = vmatmul.msk.f32.gmra.mxu1 %vm632_vm1, %v1777_v55  ;;  %5783 = vmatmul.msk.f32.gmra.mxu2 %vm632_vm1, %v1943_v59  ;;  %v5885_v55 = vld [vmem:[%s8326_s2 + $0x1a8] sm:$0xff] }
 0x370   :  { %5803 = vmatmul.msk.f32.gmra.mxu3 %vm632_vm1, %v2109_v50  ;;  %3007 = vmatpush.msra.mxu2 %v5885_v55 }
 0x372   :  { %v1561_v8 = vpop.f32.mrf.mxu2 }
 0x373   :  { %v1579_v34 = vadd.f32 %v1561_v8, %v1414_v25  ;;  %v1727_v26 = vpop.f32.mrf.mxu3 }
 0x374   :  { %v1848_v63 = vpop.f32.mrf.mxu1 }
 0x375   :  { %v7192_v30 = vadd.f32 %v1727_v26, %v1579_v34  ;;  %v1896_v37 = vadd.f32 %v1848_v63, %v7046_v57  ;;  %v2579_v57 = vld [vmem:[#allocation2 + $0x63] ss:$2 sm:$0xff] }
 0x376   :  { %v5865_v63 = vld [vmem:[%s8326_s2 + $0x188] sm:$0xff] }
 0x377   :  { %5808 = vmatmul.msk.f32.vlgmr.msrb.gmra.mxu1 %vm632_vm1, %v2245_v11  ;;  %5828 = vmatmul.msk.f32.vlgmr.msrb.gmra.mxu2 %vm632_vm1, %v2411_v31  ;;  %v2255_v11 = vld [vmem:[#allocation2 + $0x121] ss:$2 sm:$0xff]  ;;  %v2421_v31 = vld [vmem:[#allocation2 + $0x122] ss:$2 sm:$0xff] }
 0x378   :  { %5848 = vmatmul.msk.f32.vlgmr.msrb.gmra.mxu3 %vm632_vm1, %v2577_v0  ;;  %2841 = vmatpush.msra.mxu1 %v5865_v63  ;;  %v2597_v63 = vld [vmem:[#allocation2 + $0x243] ss:$2 sm:$0xff] }
 0x37a   :  { %v2014_v44 = vpop.f32.mrf.mxu2 }
 0x37b   :  { %v2062_v53 = vadd.f32 %v2014_v44, %v1896_v37  ;;  %v2180_v33 = vpop.f32.mrf.mxu3 }
 0x37c   :  { %v1851_v9 = vpop.f32.mrf.mxu1 }
 0x37d   :  { %v7204_v38 = vadd.f32 %v2180_v33, %v2062_v53  ;;  %v1897_v39 = vadd.f32 %v1851_v9, %v7057_v29  ;;  %v2257_v33 = vld [vmem:[#allocation2 + $0x151] ss:$2 sm:$0xff]  ;;  %v2423_v9 = vld [vmem:[#allocation2 + $0x152] ss:$2 sm:$0xff] }
 0x37f   :  { %5809 = vmatmul.msk.f32.gmra.mxu1 %vm632_vm1, %v2247_v22  ;;  %5829 = vmatmul.msk.f32.gmra.mxu2 %vm632_vm1, %v2413_v60 }
 0x380   :  { %5849 = vmatmul.msk.f32.gmra.mxu3 %vm632_vm1, %v2579_v57 }
 0x382   :  { %v2017_v23 = vpop.f32.mrf.mxu2 }
 0x383   :  { %v2063_v42 = vadd.f32 %v2017_v23, %v1897_v39  ;;  %v2183_v46 = vpop.f32.mrf.mxu3 }
 0x384   :  { %v1854_v12 = vpop.f32.mrf.mxu1 }
 0x385   :  { %v7213_v58 = vadd.f32 %v2183_v46, %v2063_v42  ;;  %v1898_v62 = vadd.f32 %v1854_v12, %v7065_v47  ;;  %v2259_v42 = vld [vmem:[#allocation2 + $0x181] ss:$2 sm:$0xff]  ;;  %v2425_v46 = vld [vmem:[#allocation2 + $0x182] ss:$2 sm:$0xff] }
 0x386   :  { %v2591_v12 = vld [vmem:[#allocation2 + $0x183] ss:$2 sm:$0xff] }
 0x387   :  { %5810 = vmatmul.msk.f32.gmra.mxu1 %vm632_vm1, %v2249_v61  ;;  %5830 = vmatmul.msk.f32.gmra.mxu2 %vm632_vm1, %v2415_v1 }
 0x388   :  { %5850 = vmatmul.msk.f32.gmra.mxu3 %vm632_vm1, %v2581_v6 }
 0x38a   :  { %v2020_v27 = vpop.f32.mrf.mxu2 }
 0x38b   :  { %v2064_v36 = vadd.f32 %v2020_v27, %v1898_v62  ;;  %v2186_v29 = vpop.f32.mrf.mxu3 }
 0x38c   :  { %v1857_v45 = vpop.f32.mrf.mxu1 }
 0x38d   :  { %v7219_v49 = vadd.f32 %v2186_v29, %v2064_v36  ;;  %v1899_v24 = vadd.f32 %v1857_v45, %v7073_v51  ;;  %v5905_v51 = vld [vmem:[%s8326_s2 + $0x1c8] sm:$0xff] }
 0x38e   :  { %3173 = vmatpush.msra.mxu3 %v5905_v51  ;;  %v2261_v36 = vld [vmem:[#allocation2 + $0x1e1] ss:$2 sm:$0xff]  ;;  %v2427_v29 = vld [vmem:[#allocation2 + $0x1e2] ss:$2 sm:$0xff] }
 0x38f   :  { %5811 = vmatmul.msk.f32.gmra.mxu1 %vm632_vm1, %v2251_v18  ;;  %5831 = vmatmul.msk.f32.gmra.mxu2 %vm632_vm1, %v2417_v2  ;;  %v2593_v45 = vld [vmem:[#allocation2 + $0x1e3] ss:$2 sm:$0xff]  ;;  %v5884_v18 = vld [vmem:[%s8326_s2 + $0x1a0] sm:$0xff] }
 0x390   :  { %5851 = vmatmul.msk.f32.gmra.mxu3 %vm632_vm1, %v2583_v43  ;;  %3008 = vmatpush.msra.mxu2 %v5884_v18 }
 0x392   :  { %v2023_v40 = vpop.f32.mrf.mxu2 }
 0x393   :  { %v2065_v14 = vadd.f32 %v2023_v40, %v1899_v24  ;;  %v2189_v47 = vpop.f32.mrf.mxu3 }
 0x394   :  { %v1860_v54 = vpop.f32.mrf.mxu1 }
 0x395   :  { %v7225_v15 = vadd.f32 %v2189_v47, %v2065_v14  ;;  %v1900_v59 = vadd.f32 %v1860_v54, %v7087_v35  ;;  %v2587_v35 = vld [vmem:[#allocation2 + $0x123] ss:$2 sm:$0xff]  ;;  %v5864_v54 = vld [vmem:[%s8326_s2 + $0x180] sm:$0xff] }
 0x396   :  { %2842 = vmatpush.msra.mxu1 %v5864_v54 }
 0x397   :  { %5812 = vmatmul.msk.f32.gmra.mxu1 %vm632_vm1, %v2253_v21  ;;  %5832 = vmatmul.msk.f32.gmra.mxu2 %vm632_vm1, %v2419_v41  ;;  %v2263_v21 = vld [vmem:[#allocation2 + $0x211] ss:$2 sm:$0xff]  ;;  %v2429_v41 = vld [vmem:[#allocation2 + $0x212] ss:$2 sm:$0xff] }
 0x398   :  { %5852 = vmatmul.msk.f32.gmra.mxu3 %vm632_vm1, %v2585_v48 }
 0x39a   :  { %v2026_v50 = vpop.f32.mrf.mxu2 }
 0x39b   :  { %v2066_v25 = vadd.f32 %v2026_v50, %v1900_v59  ;;  %v2192_v8 = vpop.f32.mrf.mxu3 }
 0x39c   :  { %v1863_v34 = vpop.f32.mrf.mxu1 }
 0x39d   :  { %v7237_v26 = vadd.f32 %v2192_v8, %v2066_v25  ;;  %v1901_v0 = vadd.f32 %v1863_v34, %v7098_v5  ;;  %v2265_v8 = vld [vmem:[#allocation2 + $0x241] ss:$2 sm:$0xff]  ;;  %v2431_v34 = vld [vmem:[#allocation2 + $0x242] ss:$2 sm:$0xff] }
 0x39f   :  { %5813 = vmatmul.msk.f32.gmra.mxu1 %vm632_vm1, %v2255_v11  ;;  %5833 = vmatmul.msk.f32.gmra.mxu2 %vm632_vm1, %v2421_v31 }
 0x3a0   :  { %5853 = vmatmul.msk.f32.gmra.mxu3 %vm632_vm1, %v2587_v35 }
 0x3a2   :  { %v2029_v7 = vpop.f32.mrf.mxu2 }
 0x3a3   :  { %v2067_v16 = vadd.f32 %v2029_v7, %v1901_v0  ;;  %v2195_v37 = vpop.f32.mrf.mxu3 }
 0x3a4   :  { %v1866_v44 = vpop.f32.mrf.mxu1 }
 0x3a5   :  { %v7246_v53 = vadd.f32 %v2195_v37, %v2067_v16  ;;  %v1902_v22 = vadd.f32 %v1866_v44, %v7106_v3  ;;  %v2267_v16 = vld [vmem:[#allocation2 + $0x271] ss:$2 sm:$0xff]  ;;  %v2433_v37 = vld [vmem:[#allocation2 + $0x272] ss:$2 sm:$0xff] }
 0x3a6   :  { %v2599_v44 = vld [vmem:[#allocation2 + $0x273] ss:$2 sm:$0xff] }
 0x3a7   :  { %5814 = vmatmul.msk.f32.gmra.mxu1 %vm632_vm1, %v2257_v33  ;;  %5834 = vmatmul.msk.f32.gmra.mxu2 %vm632_vm1, %v2423_v9 }
 0x3a8   :  { %5854 = vmatmul.msk.f32.gmra.mxu3 %vm632_vm1, %v2589_v10 }
 0x3aa   :  { %v2032_v60 = vpop.f32.mrf.mxu2 }
 0x3ab   :  { %v2068_v57 = vadd.f32 %v2032_v60, %v1902_v22  ;;  %v2198_v5 = vpop.f32.mrf.mxu3 }
 0x3ac   :  { %v1869_v39 = vpop.f32.mrf.mxu1 }
 0x3ad   :  { %v7252_v23 = vadd.f32 %v2198_v5, %v2068_v57  ;;  %v1903_v61 = vadd.f32 %v1869_v39, %v7114_v52  ;;  %v5904_v52 = vld [vmem:[%s8326_s2 + $0x1c0] sm:$0xff]  ;;  %v2269_v57 = vld [vmem:[#allocation2 + $0x2a1] ss:$2 sm:$0xff]  ;;  %v2435_v5 = vld [vmem:[#allocation2 + $0x2a2] ss:$2 sm:$0xff] }
 0x3ae   :  { %3174 = vmatpush.msra.mxu3 %v5904_v52  ;;  %v2601_v39 = vld [vmem:[#allocation2 + $0x2a3] ss:$2 sm:$0xff] }
 0x3af   :  { %5815 = vmatmul.msk.f32.gmra.mxu1 %vm632_vm1, %v2259_v42  ;;  %5835 = vmatmul.msk.f32.gmra.mxu2 %vm632_vm1, %v2425_v46 }
 0x3b0   :  { %5855 = vmatmul.msk.f32.gmra.mxu3 %vm632_vm1, %v2591_v12 }
 0x3b2   :  { %v2035_v1 = vpop.f32.mrf.mxu2 }
 0x3b3   :  { %v2069_v6 = vadd.f32 %v2035_v1, %v1903_v61  ;;  %v2201_v3 = vpop.f32.mrf.mxu3 }
 0x3b4   :  { %v1872_v62 = vpop.f32.mrf.mxu1 }
 0x3b5   :  { %v7258_v27 = vadd.f32 %v2201_v3, %v2069_v6  ;;  %v1904_v2 = vadd.f32 %v1872_v62, %v7128_v56  ;;  %v2595_v56 = vld [vmem:[#allocation2 + $0x213] ss:$2 sm:$0xff]  ;;  %v2437_v3 = vld [vmem:[#allocation2 + $0x2d2] ss:$2 sm:$0xff] }
 0x3b6   :  { %v2271_v6 = vld [vmem:[#allocation2 + $0x2d1] ss:$2 sm:$0xff] }
 0x3b7   :  { %5816 = vmatmul.msk.f32.gmra.mxu1 %vm632_vm1, %v2261_v36  ;;  %5836 = vmatmul.msk.f32.gmra.mxu2 %vm632_vm1, %v2427_v29  ;;  %v2603_v62 = vld [vmem:[#allocation2 + $0x2d3] ss:$2 sm:$0xff] }
 0x3b8   :  { %5856 = vmatmul.msk.f32.gmra.mxu3 %vm632_vm1, %v2593_v45 }
 0x3ba   :  { %v2038_v43 = vpop.f32.mrf.mxu2 }
 0x3bb   :  { %v2070_v24 = vadd.f32 %v2038_v43, %v1904_v2  ;;  %v2204_v40 = vpop.f32.mrf.mxu3  ;;  %v2273_v2 = vld [vmem:[#allocation2 + $0x301] ss:$2 sm:$0xff]  ;;  %v2439_v43 = vld [vmem:[#allocation2 + $0x302] ss:$2 sm:$0xff] }
 0x3bc   :  { %v1875_v14 = vpop.f32.mrf.mxu1 }
 0x3bd   :  { %v7270_v47 = vadd.f32 %v2204_v40, %v2070_v24  ;;  %v1905_v48 = vadd.f32 %v1875_v14, %v7139_v19  ;;  %v2605_v24 = vld [vmem:[#allocation2 + $0x303] ss:$2 sm:$0xff] }
 0x3bf   :  { %5817 = vmatmul.msk.f32.gmra.mxu1 %vm632_vm1, %v2263_v21  ;;  %5837 = vmatmul.msk.f32.gmra.mxu2 %vm632_vm1, %v2429_v41 }
 0x3c0   :  { %5857 = vmatmul.msk.f32.gmra.mxu3 %vm632_vm1, %v2595_v56  ;;  %v2275_v56 = vld [vmem:[#allocation2 + $0x331] ss:$2 sm:$0xff] }
 0x3c2   :  { %v2041_v55 = vpop.f32.mrf.mxu2 }
 0x3c3   :  { %v2071_v51 = vadd.f32 %v2041_v55, %v1905_v48  ;;  %v2207_v59 = vpop.f32.mrf.mxu3  ;;  %v2441_v48 = vld [vmem:[#allocation2 + $0x332] ss:$2 sm:$0xff]  ;;  %v2607_v55 = vld [vmem:[#allocation2 + $0x333] ss:$2 sm:$0xff] }
 0x3c4   :  { %v1878_v50 = vpop.f32.mrf.mxu1 }
 0x3c5   :  { %v7279_v25 = vadd.f32 %v2207_v59, %v2071_v51  ;;  %v1906_v11 = vadd.f32 %v1878_v50, %v7147_v28 }
 0x3c7   :  { %5818 = vmatmul.msk.f32.gmra.mxu1 %vm632_vm1, %v2265_v8  ;;  %5838 = vmatmul.msk.f32.gmra.mxu2 %vm632_vm1, %v2431_v34 }
 0x3c8   :  { %5858 = vmatmul.msk.f32.gmra.mxu3 %vm632_vm1, %v2597_v63  ;;  %v2743_v63 = vld [vmem:[#allocation2 + $0x48] ss:$2 sm:$0xff] }
 0x3ca   :  { %v2044_v31 = vpop.f32.mrf.mxu2 }
 0x3cb   :  { %v2072_v35 = vadd.f32 %v2044_v31, %v1906_v11  ;;  %v2210_v19 = vpop.f32.mrf.mxu3  ;;  %v2909_v11 = vld [vmem:[#allocation2 + $0x49] ss:$2 sm:$0xff]  ;;  %v3075_v31 = vld [vmem:[#allocation2 + $0x4a] ss:$2 sm:$0xff] }
 0x3cc   :  { %v1881_v0 = vpop.f32.mrf.mxu1 }
 0x3cd   :  { %v7285_v7 = vadd.f32 %v2210_v19, %v2072_v35  ;;  %v1907_v33 = vadd.f32 %v1881_v0, %v7155_v32 }
 0x3cf   :  { %5819 = vmatmul.msk.f32.gmra.mxu1 %vm632_vm1, %v2267_v16  ;;  %5839 = vmatmul.msk.f32.gmra.mxu2 %vm632_vm1, %v2433_v37 }
 0x3d0   :  { %5859 = vmatmul.msk.f32.gmra.mxu3 %vm632_vm1, %v2599_v44  ;;  %v2745_v44 = vld [vmem:[#allocation2 + $0x78] ss:$2 sm:$0xff] }
 0x3d2   :  { %v2047_v9 = vpop.f32.mrf.mxu2 }
 0x3d3   :  { %v2073_v10 = vadd.f32 %v2047_v9, %v1907_v33  ;;  %v2213_v28 = vpop.f32.mrf.mxu3  ;;  %v2911_v33 = vld [vmem:[#allocation2 + $0x79] ss:$2 sm:$0xff]  ;;  %v3077_v9 = vld [vmem:[#allocation2 + $0x7a] ss:$2 sm:$0xff] }
 0x3d4   :  { %v1884_v22 = vpop.f32.mrf.mxu1 }
 0x3d5   :  { %v7291_v60 = vadd.f32 %v2213_v28, %v2073_v10  ;;  %v1908_v42 = vadd.f32 %v1884_v22, %v7169_v17 }
 0x3d7   :  { %5820 = vmatmul.msk.f32.gmra.mxu1 %vm632_vm1, %v2269_v57  ;;  %5840 = vmatmul.msk.f32.gmra.mxu2 %vm632_vm1, %v2435_v5 }
 0x3d8   :  { %5860 = vmatmul.msk.f32.gmra.mxu3 %vm632_vm1, %v2601_v39  ;;  %v2747_v39 = vld [vmem:[#allocation2 + $0xa8] ss:$2 sm:$0xff] }
 0x3da   :  { %v2050_v46 = vpop.f32.mrf.mxu2 }
 0x3db   :  { %v2074_v12 = vadd.f32 %v2050_v46, %v1908_v42  ;;  %v2216_v32 = vpop.f32.mrf.mxu3  ;;  %v2913_v42 = vld [vmem:[#allocation2 + $0xa9] ss:$2 sm:$0xff]  ;;  %v3079_v46 = vld [vmem:[#allocation2 + $0xaa] ss:$2 sm:$0xff] }
 0x3dc   :  { %v1887_v61 = vpop.f32.mrf.mxu1 }
 0x3dd   :  { %v7297_v1 = vadd.f32 %v2216_v32, %v2074_v12  ;;  %v1909_v36 = vadd.f32 %v1887_v61, %v7180_v13 }
 0x3df   :  { %5821 = vmatmul.msk.f32.gmra.mxu1 %vm632_vm1, %v2271_v6  ;;  %5841 = vmatmul.msk.f32.gmra.mxu2 %vm632_vm1, %v2437_v3 }
 0x3e0   :  { %5861 = vmatmul.msk.f32.gmra.mxu3 %vm632_vm1, %v2603_v62  ;;  %v2749_v62 = vld [vmem:[#allocation2 + $0xd8] ss:$2 sm:$0xff] }
 0x3e2   :  { %v2053_v29 = vpop.f32.mrf.mxu2 }
 0x3e3   :  { %v2075_v45 = vadd.f32 %v2053_v29, %v1909_v36  ;;  %v2219_v17 = vpop.f32.mrf.mxu3  ;;  %v2915_v36 = vld [vmem:[#allocation2 + $0xd9] ss:$2 sm:$0xff]  ;;  %v3081_v29 = vld [vmem:[#allocation2 + $0xda] ss:$2 sm:$0xff] }
 0x3e4   :  { %v1890_v18 = vpop.f32.mrf.mxu1 }
 0x3e5   :  { %v7303_v52 = vadd.f32 %v2219_v17, %v2075_v45  ;;  %v1910_v40 = vadd.f32 %v1890_v18, %v7186_v4 }
 0x3e7   :  { %5822 = vmatmul.msk.f32.gmra.mxu1 %vm632_vm1, %v2273_v2  ;;  %5842 = vmatmul.msk.f32.gmra.mxu2 %vm632_vm1, %v2439_v43 }
 0x3e8   :  { %5862 = vmatmul.msk.f32.gmra.mxu3 %vm632_vm1, %v2605_v24  ;;  %v2751_v24 = vld [vmem:[#allocation2 + $0x108] ss:$2 sm:$0xff] }
 0x3ea   :  { %v2056_v14 = vpop.f32.mrf.mxu2 }
 0x3eb   :  { %v2076_v54 = vadd.f32 %v2056_v14, %v1910_v40  ;;  %v2222_v13 = vpop.f32.mrf.mxu3  ;;  %v2917_v40 = vld [vmem:[#allocation2 + $0x109] ss:$2 sm:$0xff]  ;;  %v3083_v14 = vld [vmem:[#allocation2 + $0x10a] ss:$2 sm:$0xff] }
 0x3ec   :  { %v1893_v21 = vpop.f32.mrf.mxu1 }
 0x3ed   :  { %v7309_v41 = vadd.f32 %v2222_v13, %v2076_v54  ;;  %v1911_v51 = vadd.f32 %v1893_v21, %v7192_v30 }
 0x3ef   :  { %8336 = vst [vmem:[#allocation4_spill] sm:$0xff] %v7309_v41  ;;  %5823 = vmatmul.msk.f32.gmra.mxu1 %vm632_vm1, %v2275_v56  ;;  %5843 = vmatmul.msk.f32.gmra.mxu2 %vm632_vm1, %v2441_v48 }
 0x3f0   :  { %5863 = vmatmul.msk.f32.gmra.mxu3 %vm632_vm1, %v2607_v55  ;;  %v2753_v55 = vld [vmem:[#allocation2 + $0x138] ss:$2 sm:$0xff] }
 0x3f2   :  { %v2059_v59 = vpop.f32.mrf.mxu2 }
 0x3f3   :  { %v2077_v50 = vadd.f32 %v2059_v59, %v1911_v51  ;;  %v2225_v4 = vpop.f32.mrf.mxu3  ;;  %v2919_v51 = vld [vmem:[#allocation2 + $0x139] ss:$2 sm:$0xff]  ;;  %v3085_v59 = vld [vmem:[#allocation2 + $0x13a] ss:$2 sm:$0xff] }
 0x3f4   :  { %v2346_v8 = vpop.f32.mrf.mxu1 }
 0x3f5   :  { %v7315_v34 = vadd.f32 %v2225_v4, %v2077_v50  ;;  %v2394_v35 = vadd.f32 %v2346_v8, %v7204_v38 }
 0x3f7   :  { %8337 = vst [vmem:[#allocation5_spill] sm:$0xff] %v7315_v34  ;;  %5868 = vmatmul.msk.f32.vlgmr.msra.gmra.mxu1 %vm632_vm1, %v2743_v63  ;;  %5888 = vmatmul.msk.f32.vlgmr.msra.gmra.mxu2 %vm632_vm1, %v2909_v11 }
 0x3f8   :  { %5908 = vmatmul.msk.f32.vlgmr.msra.gmra.mxu3 %vm632_vm1, %v3075_v31  ;;  %v2755_v31 = vld [vmem:[#allocation2 + $0x168] ss:$2 sm:$0xff] }
 0x3fa   :  { %v2512_v19 = vpop.f32.mrf.mxu2 }
 0x3fb   :  { %v2560_v0 = vadd.f32 %v2512_v19, %v2394_v35  ;;  %v2678_v30 = vpop.f32.mrf.mxu3  ;;  %v2921_v35 = vld [vmem:[#allocation2 + $0x169] ss:$2 sm:$0xff]  ;;  %v3087_v19 = vld [vmem:[#allocation2 + $0x16a] ss:$2 sm:$0xff] }
 0x3fc   :  { %v2349_v16 = vpop.f32.mrf.mxu1 }
 0x3fd   :  { %v7321_v37 = vadd.f32 %v2678_v30, %v2560_v0  ;;  %v2395_v10 = vadd.f32 %v2349_v16, %v7213_v58 }
 0x3ff   :  { %5869 = vmatmul.msk.f32.gmra.mxu1 %vm632_vm1, %v2745_v44  ;;  %5889 = vmatmul.msk.f32.gmra.mxu2 %vm632_vm1, %v2911_v33  ;;  %v2757_v33 = vld [vmem:[#allocation2 + $0x198] ss:$2 sm:$0xff] }
 0x400   :  { %5909 = vmatmul.msk.f32.gmra.mxu3 %vm632_vm1, %v3077_v9  ;;  %v2923_v9 = vld [vmem:[#allocation2 + $0x199] ss:$2 sm:$0xff] }
 0x402   :  { %v2515_v28 = vpop.f32.mrf.mxu2 }
 0x403   :  { %v2561_v22 = vadd.f32 %v2515_v28, %v2395_v10  ;;  %v2681_v38 = vpop.f32.mrf.mxu3  ;;  %v3089_v28 = vld [vmem:[#allocation2 + $0x19a] ss:$2 sm:$0xff] }
 0x404   :  { %v2352_v57 = vpop.f32.mrf.mxu1 }
 0x405   :  { %v7327_v5 = vadd.f32 %v2681_v38, %v2561_v22  ;;  %v2396_v12 = vadd.f32 %v2352_v57, %v7219_v49 }
 0x407   :  { %5870 = vmatmul.msk.f32.gmra.mxu1 %vm632_vm1, %v2747_v39  ;;  %5890 = vmatmul.msk.f32.gmra.mxu2 %vm632_vm1, %v2913_v42 }
 0x408   :  { %5910 = vmatmul.msk.f32.gmra.mxu3 %vm632_vm1, %v3079_v46  ;;  %v2759_v46 = vld [vmem:[#allocation2 + $0x1f8] ss:$2 sm:$0xff] }
 0x40a   :  { %v2518_v32 = vpop.f32.mrf.mxu2 }
 0x40b   :  { %v2562_v61 = vadd.f32 %v2518_v32, %v2396_v12  ;;  %v2684_v58 = vpop.f32.mrf.mxu3  ;;  %v2925_v12 = vld [vmem:[#allocation2 + $0x1f9] ss:$2 sm:$0xff]  ;;  %v3091_v32 = vld [vmem:[#allocation2 + $0x1fa] ss:$2 sm:$0xff] }
 0x40c   :  { %v2355_v6 = vpop.f32.mrf.mxu1 }
 0x40d   :  { %v7333_v3 = vadd.f32 %v2684_v58, %v2562_v61  ;;  %v2397_v45 = vadd.f32 %v2355_v6, %v7225_v15  ;;  %v2761_v6 = vld [vmem:[#allocation2 + $0x228] ss:$2 sm:$0xff] }
 0x40f   :  { %5871 = vmatmul.msk.f32.gmra.mxu1 %vm632_vm1, %v2749_v62  ;;  %5891 = vmatmul.msk.f32.gmra.mxu2 %vm632_vm1, %v2915_v36  ;;  %v2927_v62 = vld [vmem:[#allocation2 + $0x229] ss:$2 sm:$0xff]  ;;  %v3093_v36 = vld [vmem:[#allocation2 + $0x22a] ss:$2 sm:$0xff] }
 0x410   :  { %5911 = vmatmul.msk.f32.gmra.mxu3 %vm632_vm1, %v3081_v29 }
 0x412   :  { %v2521_v17 = vpop.f32.mrf.mxu2 }
 0x413   :  { %v2563_v18 = vadd.f32 %v2521_v17, %v2397_v45  ;;  %v2687_v49 = vpop.f32.mrf.mxu3 }
 0x414   :  { %v2358_v2 = vpop.f32.mrf.mxu1 }
 0x415   :  { %v7339_v43 = vadd.f32 %v2687_v49, %v2563_v18  ;;  %v2398_v54 = vadd.f32 %v2358_v2, %v7237_v26  ;;  %v2763_v18 = vld [vmem:[#allocation2 + $0x258] ss:$2 sm:$0xff]  ;;  %v2929_v49 = vld [vmem:[#allocation2 + $0x259] ss:$2 sm:$0xff] }
 0x416   :  { %v3095_v2 = vld [vmem:[#allocation2 + $0x25a] ss:$2 sm:$0xff] }
 0x417   :  { %5872 = vmatmul.msk.f32.gmra.mxu1 %vm632_vm1, %v2751_v24  ;;  %5892 = vmatmul.msk.f32.gmra.mxu2 %vm632_vm1, %v2917_v40 }
 0x418   :  { %5912 = vmatmul.msk.f32.gmra.mxu3 %vm632_vm1, %v3083_v14 }
 0x41a   :  { %v2524_v13 = vpop.f32.mrf.mxu2 }
 0x41b   :  { %v2564_v21 = vadd.f32 %v2524_v13, %v2398_v54  ;;  %v2690_v15 = vpop.f32.mrf.mxu3  ;;  %v2765_v54 = vld [vmem:[#allocation2 + $0x288] ss:$2 sm:$0xff]  ;;  %v2931_v13 = vld [vmem:[#allocation2 + $0x289] ss:$2 sm:$0xff] }
 0x41c   :  { %v2361_v56 = vpop.f32.mrf.mxu1 }
 0x41d   :  { %v7345_v48 = vadd.f32 %v2690_v15, %v2564_v21  ;;  %v2399_v50 = vadd.f32 %v2361_v56, %v7246_v53  ;;  %v3097_v21 = vld [vmem:[#allocation2 + $0x28a] ss:$2 sm:$0xff] }
 0x41f   :  { %5873 = vmatmul.msk.f32.gmra.mxu1 %vm632_vm1, %v2753_v55  ;;  %5893 = vmatmul.msk.f32.gmra.mxu2 %vm632_vm1, %v2919_v51  ;;  %v3271_v51 = vld [vmem:[#allocation2 + $0x34b] ss:$2 sm:$0xff] }
 0x420   :  { %5913 = vmatmul.msk.f32.gmra.mxu3 %vm632_vm1, %v3085_v59  ;;  %v2767_v59 = vld [vmem:[#allocation2 + $0x2b8] ss:$2 sm:$0xff]  ;;  %5943 = vmatmul.msk.f32.gmra.mxu0 %vm632_vm1, %v3271_v51 }
 0x422   :  { %v2527_v4 = vpop.f32.mrf.mxu2 }
 0x423   :  { %v2565_v8 = vadd.f32 %v2527_v4, %v2399_v50  ;;  %v2693_v26 = vpop.f32.mrf.mxu3  ;;  %v2933_v50 = vld [vmem:[#allocation2 + $0x2b9] ss:$2 sm:$0xff]  ;;  %v3099_v4 = vld [vmem:[#allocation2 + $0x2ba] ss:$2 sm:$0xff] }
 0x424   :  { %v2364_v63 = vpop.f32.mrf.mxu1 }
 0x425   :  { %v7351_v11 = vadd.f32 %v2693_v26, %v2565_v8  ;;  %v2400_v0 = vadd.f32 %v2364_v63, %v7252_v23 }
 0x427   :  { %5874 = vmatmul.msk.f32.gmra.mxu1 %vm632_vm1, %v2755_v31  ;;  %5894 = vmatmul.msk.f32.gmra.mxu2 %vm632_vm1, %v2921_v35  ;;  %v2769_v31 = vld [vmem:[#allocation2 + $0x2e8] ss:$2 sm:$0xff]  ;;  %v2935_v35 = vld [vmem:[#allocation2 + $0x2e9] ss:$2 sm:$0xff] }
 0x428   :  { %5914 = vmatmul.msk.f32.gmra.mxu3 %vm632_vm1, %v3087_v19  ;;  %v3101_v19 = vld [vmem:[#allocation2 + $0x2ea] ss:$2 sm:$0xff] }
 0x42a   :  { %v2530_v30 = vpop.f32.mrf.mxu2 }
 0x42b   :  { %v2566_v16 = vadd.f32 %v2530_v30, %v2400_v0  ;;  %v2696_v53 = vpop.f32.mrf.mxu3  ;;  %v3342_v0 = vpop.f32.mrf.mxu0 }
 0x42c   :  { %v2367_v44 = vpop.f32.mrf.mxu1 }
 0x42d   :  { %v7357_v10 = vadd.f32 %v2696_v53, %v2566_v16  ;;  %v2401_v22 = vadd.f32 %v2367_v44, %v7258_v27  ;;  %v2771_v44 = vld [vmem:[#allocation2 + $0x318] ss:$2 sm:$0xff] }
 0x42f   :  { %5875 = vmatmul.msk.f32.gmra.mxu1 %vm632_vm1, %v2757_v33  ;;  %5895 = vmatmul.msk.f32.gmra.mxu2 %vm632_vm1, %v2923_v9  ;;  %v2937_v33 = vld [vmem:[#allocation2 + $0x319] ss:$2 sm:$0xff]  ;;  %v3103_v9 = vld [vmem:[#allocation2 + $0x31a] ss:$2 sm:$0xff] }
 0x430   :  { %5915 = vmatmul.msk.f32.gmra.mxu3 %vm632_vm1, %v3089_v28 }
 0x432   :  { %v2533_v38 = vpop.f32.mrf.mxu2 }
 0x433   :  { %v2567_v57 = vadd.f32 %v2533_v38, %v2401_v22  ;;  %v2699_v23 = vpop.f32.mrf.mxu3  ;;  %v3345_v38 = vpop.f32.mrf.mxu0 }
 0x434   :  { %v7363_v39 = vpop.f32.mrf.mxu1 }
 0x435   :  { %v7365_v42 = vadd.f32 %v2699_v23, %v2567_v57  ;;  %v2773_v23 = vld [vmem:[#allocation2 + $0x348] ss:$2 sm:$0xff] }
 0x437   :  { %5876 = vmatmul.msk.f32.gmra.mxu1 %vm632_vm1, %v2759_v46  ;;  %5896 = vmatmul.msk.f32.gmra.mxu2 %vm632_vm1, %v2925_v12  ;;  %v2939_v46 = vld [vmem:[#allocation2 + $0x349] ss:$2 sm:$0xff]  ;;  %v3105_v12 = vld [vmem:[#allocation2 + $0x34a] ss:$2 sm:$0xff] }
 0x438   :  { %5916 = vmatmul.msk.f32.gmra.mxu3 %vm632_vm1, %v3091_v32 }
 0x43a   :  { %v7370_v61 = vpop.f32.mrf.mxu2 }
 0x43b   :  { %v7372_v58 = vpop.f32.mrf.mxu3 }
 0x43c   :  { %v7374_v27 = vpop.f32.mrf.mxu1 }
 0x43f   :  { %5877 = vmatmul.msk.f32.gmra.mxu1 %vm632_vm1, %v2761_v6  ;;  %5897 = vmatmul.msk.f32.gmra.mxu2 %vm632_vm1, %v2927_v62 }
 0x440   :  { %5917 = vmatmul.msk.f32.gmra.mxu3 %vm632_vm1, %v3093_v36  ;;  %v3348_v36 = vpop.f32.mrf.mxu0 }
 0x442   :  { %v7379_v29 = vpop.f32.mrf.mxu2 }
 0x443   :  { %v7381_v45 = vpop.f32.mrf.mxu3 }
 0x444   :  { %v7383_v17 = vpop.f32.mrf.mxu1 }
 0x447   :  { %5878 = vmatmul.msk.f32.gmra.mxu1 %vm632_vm1, %v2763_v18  ;;  %5898 = vmatmul.msk.f32.gmra.mxu2 %vm632_vm1, %v2929_v49 }
 0x448   :  { %5918 = vmatmul.msk.f32.gmra.mxu3 %vm632_vm1, %v3095_v2 }
 0x44a   :  { %v7388_v24 = vpop.f32.mrf.mxu2 }
 0x44b   :  { %v7390_v40 = vpop.f32.mrf.mxu3 }
 0x44c   :  { %v7392_v14 = vpop.f32.mrf.mxu1 }
 0x44f   :  { %5879 = vmatmul.msk.f32.gmra.mxu1 %vm632_vm1, %v2765_v54  ;;  %5899 = vmatmul.msk.f32.gmra.mxu2 %vm632_vm1, %v2931_v13  ;;  %v3351_v54 = vpop.f32.mrf.mxu0 }
 0x450   :  { %5919 = vmatmul.msk.f32.gmra.mxu3 %vm632_vm1, %v3097_v21 }
 0x452   :  { %v7397_v15 = vpop.f32.mrf.mxu2 }
 0x453   :  { %v7399_v56 = vpop.f32.mrf.mxu3 }
 0x454   :  { %v7401_v55 = vpop.f32.mrf.mxu1 }
 0x457   :  { %5880 = vmatmul.msk.f32.gmra.mxu1 %vm632_vm1, %v2767_v59  ;;  %5900 = vmatmul.msk.f32.gmra.mxu2 %vm632_vm1, %v2933_v50  ;;  %v3354_v59 = vpop.f32.mrf.mxu0 }
 0x458   :  { %5920 = vmatmul.msk.f32.gmra.mxu3 %vm632_vm1, %v3099_v4 }
 0x45a   :  { %v7407_v8 = vpop.f32.mrf.mxu2 }
 0x45b   :  { %v7409_v26 = vpop.f32.mrf.mxu3 }
 0x45c   :  { %v7411_v63 = vpop.f32.mrf.mxu1 }
 0x45d   :  { %8338 = vst [vmem:[#allocation6_spill] sm:$0xff] %v7411_v63 }
 0x45f   :  { %5881 = vmatmul.msk.f32.gmra.mxu1 %vm632_vm1, %v2769_v31  ;;  %5901 = vmatmul.msk.f32.gmra.mxu2 %vm632_vm1, %v2935_v35 }
 0x460   :  { %5921 = vmatmul.msk.f32.gmra.mxu3 %vm632_vm1, %v3101_v19 }
 0x462   :  { %v7420_v30 = vpop.f32.mrf.mxu2 }
 0x463   :  { %8339 = vst [vmem:[#allocation7_spill] sm:$0xff] %v7420_v30  ;;  %v7424_v16 = vpop.f32.mrf.mxu3 }
 0x464   :  { %8340 = vst [vmem:[#allocation8_spill] sm:$0xff] %v7424_v16  ;;  %v7428_v53 = vpop.f32.mrf.mxu1 }
 0x465   :  { %8341 = vst [vmem:[#allocation9_spill] sm:$0xff] %v7428_v53 }
 0x467   :  { %5882 = vmatmul.msk.f32.gmra.mxu1 %vm632_vm1, %v2771_v44  ;;  %5902 = vmatmul.msk.f32.gmra.mxu2 %vm632_vm1, %v2937_v33  ;;  %v3357_v44 = vpop.f32.mrf.mxu0 }
 0x468   :  { %5922 = vmatmul.msk.f32.gmra.mxu3 %vm632_vm1, %v3103_v9 }
 0x46a   :  { %v7433_v28 = vpop.f32.mrf.mxu2 }
 0x46b   :  { %8342 = vst [vmem:[#allocation10_spill] sm:$0xff] %v7433_v28  ;;  %v7435_v22 = vpop.f32.mrf.mxu3 }
 0x46c   :  { %8343 = vst [vmem:[#allocation11_spill] sm:$0xff] %v7435_v22  ;;  %v7437_v57 = vpop.f32.mrf.mxu1 }
 0x46d   :  { %8344 = vst [vmem:[#allocation12_spill] sm:$0xff] %v7437_v57 }
 0x46f   :  { %5883 = vmatmul.msk.f32.gmra.mxu1 %vm632_vm1, %v2773_v23  ;;  %5903 = vmatmul.msk.f32.gmra.mxu2 %vm632_vm1, %v2939_v46 }
 0x470   :  { %5923 = vmatmul.msk.f32.gmra.mxu3 %vm632_vm1, %v3105_v12 }
 0x472   :  { %v7442_v32 = vpop.f32.mrf.mxu2 }
 0x473   :  { %8345 = vst [vmem:[#allocation13_spill] sm:$0xff] %v7442_v32  ;;  %v7444_v6 = vpop.f32.mrf.mxu3 }
 0x474   :  { %8346 = vst [vmem:[#allocation14_spill] sm:$0xff] %v7444_v6  ;;  %v2844_v62 = vpop.f32.mrf.mxu1 }
 0x475   :  { %v2892_v23 = vadd.f32 %v2844_v62, %v7321_v37 }
 0x47a   :  { %v3010_v18 = vpop.f32.mrf.mxu2 }
 0x47b   :  { %v3176_v49 = vpop.f32.mrf.mxu3  ;;  %v3058_v20 = vadd.f32 %v3010_v18, %v2892_v23 }
 0x47c   :  { %v2847_v2 = vpop.f32.mrf.mxu1 }
 0x47d   :  { %v2893_v9 = vadd.f32 %v2847_v2, %v7327_v5  ;;  %v3224_v41 = vadd.f32 %v3176_v49, %v3058_v20  ;;  %v3360_v5 = vpop.f32.mrf.mxu0 }
 0x47f   :  { %v7453_v62 = vadd.f32 %v3342_v0, %v3224_v41 }
 0x482   :  { %v3013_v13 = vpop.f32.mrf.mxu2 }
 0x483   :  { %v3179_v21 = vpop.f32.mrf.mxu3  ;;  %v3059_v46 = vadd.f32 %v3013_v13, %v2893_v9 }
 0x484   :  { %v2850_v51 = vpop.f32.mrf.mxu1 }
 0x485   :  { %v2894_v12 = vadd.f32 %v2850_v51, %v7333_v3  ;;  %v3225_v34 = vadd.f32 %v3179_v21, %v3059_v46 }
 0x487   :  { %v7451_v2 = vadd.f32 %v3345_v38, %v3225_v34  ;;  %v3454_v34 = vmul.f32 %v7453_v62, %v7453_v62 }
 0x489   :  { %v3410_v41 = vsel %vm3408_vm4, %v7451_v2, 0.0 }
 0x48a   :  { %v3016_v50 = vpop.f32.mrf.mxu2 }
 0x48b   :  { %v3182_v4 = vpop.f32.mrf.mxu3  ;;  %v3060_v6 = vadd.f32 %v3016_v50, %v2894_v12 }
 0x48c   :  { %v2853_v31 = vpop.f32.mrf.mxu1 }
 0x48d   :  { %v2895_v32 = vadd.f32 %v2853_v31, %v7339_v43  ;;  %v3226_v30 = vadd.f32 %v3182_v4, %v3060_v6 }
 0x48f   :  { %v7455_v3 = vadd.f32 %v3348_v36, %v3226_v30  ;;  %v3409_v30 = vsel %vm3408_vm4, %v7453_v62, 0.0  ;;  %v3470_v36 = vsel %vm3408_vm4, %v3454_v34, 0.0 }
 0x490   :  { %v3411_v49 = vadd.f32 %v3410_v41, %v3409_v30 }
 0x492   :  { %v3019_v35 = vpop.f32.mrf.mxu2 }
 0x493   :  { %v3185_v19 = vpop.f32.mrf.mxu3  ;;  %v3061_v22 = vadd.f32 %v3019_v35, %v2895_v32 }
 0x494   :  { %v2856_v33 = vpop.f32.mrf.mxu1 }
 0x495   :  { %v2896_v28 = vadd.f32 %v2856_v33, %v7345_v48  ;;  %v3227_v37 = vadd.f32 %v3185_v19, %v3061_v22  ;;  %v3455_v48 = vmul.f32 %v7451_v2, %v7451_v2 }
 0x497   :  { %v7460_v32 = vadd.f32 %v3351_v54, %v3227_v37 }
 0x499   :  { %v3457_v22 = vmul.f32 %v7460_v32, %v7460_v32  ;;  %v3414_v21 = vsel %vm3408_vm4, %v7460_v32, 0.0 }
 0x49a   :  { %v3022_v57 = vpop.f32.mrf.mxu2 }
 0x49b   :  { %v3188_v53 = vpop.f32.mrf.mxu3  ;;  %v3062_v63 = vadd.f32 %v3022_v57, %v2896_v28  ;;  %v3363_v57 = vpop.f32.mrf.mxu0  ;;  %v3475_v35 = vsel %vm3408_vm4, %v3457_v22, 0.0 }
 0x49c   :  { %v2859_v16 = vpop.f32.mrf.mxu1 }
 0x49d   :  { %v3228_v18 = vadd.f32 %v3188_v53, %v3062_v63  ;;  %v2897_v43 = vadd.f32 %v2859_v16, %v7351_v11  ;;  %v3456_v63 = vmul.f32 %v7455_v3, %v7455_v3  ;;  %v3471_v16 = vsel %vm3408_vm4, %v3455_v48, 0.0 }
 0x49e   :  { %v3412_v53 = vsel %vm3408_vm4, %v7455_v3, 0.0  ;;  %v3472_v50 = vadd.f32 %v3471_v16, %v3470_v36 }
 0x49f   :  { %v7468_v0 = vadd.f32 %v3354_v59, %v3228_v18  ;;  %v3473_v54 = vsel %vm3408_vm4, %v3456_v63, 0.0  ;;  %v3413_v4 = vadd.f32 %v3412_v53, %v3411_v49 }
 0x4a0   :  { %v3474_v23 = vadd.f32 %v3473_v54, %v3472_v50 }
 0x4a1   :  { %v3458_v51 = vmul.f32 %v7468_v0, %v7468_v0  ;;  %v3416_v19 = vsel %vm3408_vm4, %v7468_v0, 0.0  ;;  %v3415_v46 = vadd.f32 %v3414_v21, %v3413_v4  ;;  %v2403_v4 = vadd.f32 %v7374_v27, %v7279_v25  ;;  %v5979_v25 = vld [vmem:[%s8329_s5 + $0xf8] sm:$0xff] }
 0x4a2   :  { %v3025_v13 = vpop.f32.mrf.mxu2  ;;  %4028 = vmatpush.msra.mxu0 %v5979_v25 }
 0x4a3   :  { %v3063_v20 = vadd.f32 %v3025_v13, %v2897_v43  ;;  %v3191_v6 = vpop.f32.mrf.mxu3  ;;  %v3477_v37 = vsel %vm3408_vm4, %v3458_v51, 0.0  ;;  %v3476_v43 = vadd.f32 %v3475_v35, %v3474_v23  ;;  %v3417_v13 = vadd.f32 %v3416_v19, %v3415_v46  ;;  %v3366_v30 = vpop.f32.mrf.mxu0  ;;  %v5951_v51 = vld [vmem:[%s8329_s5 + $0x78] sm:$0xff] }
 0x4a4   :  { %v2862_v28 = vpop.f32.mrf.mxu1  ;;  %3782 = vmatpush.msrb.mxu1 %v5951_v51 }
 0x4a5   :  { %v3229_v11 = vadd.f32 %v3191_v6, %v3063_v20  ;;  %v2898_v59 = vadd.f32 %v2862_v28, %v7357_v10  ;;  %v3478_v6 = vadd.f32 %v3477_v37, %v3476_v43  ;;  %v2402_v28 = vadd.f32 %v7363_v39, %v7270_v47  ;;  %v3713_v39 = vld [vmem:[%s8329_s5 + $0x38] sm:$0xff] }
 0x4a6   :  { %3846 = vmatpush.msrb.mxu2 %v3713_v39 }
 0x4a7   :  { %v7477_v38 = vadd.f32 %v3357_v44, %v3229_v11 }
 0x4a9   :  { %v3459_v44 = vmul.f32 %v7477_v38, %v7477_v38  ;;  %v3418_v10 = vsel %vm3408_vm4, %v7477_v38, 0.0 }
 0x4aa   :  { %v3028_v31 = vpop.f32.mrf.mxu2  ;;  %v3419_v34 = vadd.f32 %v3418_v10, %v3417_v13 }
 0x4ab   :  { %v3064_v33 = vadd.f32 %v3028_v31, %v2898_v59  ;;  %v3194_v9 = vpop.f32.mrf.mxu3  ;;  %v3479_v48 = vsel %vm3408_vm4, %v3459_v44, 0.0 }
 0x4ac   :  { %v2865_v12 = vpop.f32.mrf.mxu1  ;;  %v3480_v16 = vadd.f32 %v3479_v48, %v3478_v6 }
 0x4ad   :  { %v3230_v18 = vadd.f32 %v3194_v9, %v3064_v33  ;;  %v2899_v11 = vadd.f32 %v2865_v12, %v7365_v42  ;;  %v5967_v42 = vld [vmem:[%s8329_s5 + $0xb8] sm:$0xff]  ;;  %v2569_v9 = vadd.f32 %v7379_v29, %v2403_v4  ;;  %v2404_v29 = vadd.f32 %v7383_v17, %v7285_v7  ;;  %v3712_v7 = vld [vmem:[%s8329_s5 + $0x30] sm:$0xff] }
 0x4ae   :  { %3935 = vmatpush.msrb.mxu3 %v5967_v42  ;;  %v5966_v17 = vld [vmem:[%s8329_s5 + $0xb0] sm:$0xff]  ;;  %3847 = vmatpush.msrb.mxu2 %v3712_v7 }
 0x4af   :  { %v7495_v20 = vadd.f32 %v3360_v5, %v3230_v18  ;;  %v2568_v5 = vadd.f32 %v7370_v61, %v2402_v28  ;;  %v2735_v10 = vadd.f32 %v7381_v45, %v2569_v9  ;;  %v2570_v28 = vadd.f32 %v7388_v24, %v2404_v29 }
 0x4b0   :  { %3936 = vmatpush.msrb.mxu3 %v5966_v17 }
 0x4b1   :  { %v3420_v41 = vsel %vm3408_vm4, %v7495_v20, 0.0  ;;  %v3460_v63 = vmul.f32 %v7495_v20, %v7495_v20  ;;  %v2734_v61 = vadd.f32 %v7372_v58, %v2568_v5 }
 0x4b2   :  { %v3421_v53 = vadd.f32 %v3420_v41, %v3419_v34  ;;  %v3031_v22 = vpop.f32.mrf.mxu2 }
 0x4b3   :  { %v3481_v36 = vsel %vm3408_vm4, %v3460_v63, 0.0  ;;  %v3065_v49 = vadd.f32 %v3031_v22, %v2899_v11  ;;  %v3197_v54 = vpop.f32.mrf.mxu3  ;;  %v2736_v22 = vadd.f32 %v7390_v40, %v2570_v28 }
 0x4b4   :  { %v3482_v21 = vadd.f32 %v3481_v36, %v3480_v16  ;;  %v2868_v47 = vpop.f32.mrf.mxu1  ;;  %v5950_v16 = vld [vmem:[%s8329_s5 + $0x70] sm:$0xff]  ;;  %v2405_v36 = vadd.f32 %v7392_v14, %v7291_v60 }
 0x4b5   :  { %v3231_v59 = vadd.f32 %v3197_v54, %v3065_v49  ;;  %v2900_v19 = vadd.f32 %v2868_v47, %v2734_v61  ;;  %3783 = vmatpush.msrb.mxu1 %v5950_v16  ;;  %v5978_v60 = vld [vmem:[%s8329_s5 + $0xf0] sm:$0xff] }
 0x4b6   :  { %v2571_v42 = vadd.f32 %v7397_v15, %v2405_v36  ;;  %4029 = vmatpush.msra.mxu0 %v5978_v60  ;;  %v2406_v15 = vadd.f32 %v7401_v55, %v7297_v1  ;;  %v5965_v1 = vld [vmem:[%s8329_s5 + $0xa8] sm:$0xff] }
 0x4b7   :  { %v7516_v50 = vadd.f32 %v3363_v57, %v3231_v59  ;;  %v3369_v57 = vpop.f32.mrf.mxu0  ;;  %v5949_v55 = vld [vmem:[%s8329_s5 + $0x68] sm:$0xff]  ;;  %3937 = vmatpush.msrb.mxu3 %v5965_v1 }
 0x4b8   :  { %3784 = vmatpush.msrb.mxu1 %v5949_v55 }
 0x4b9   :  { %v3422_v31 = vsel %vm3408_vm4, %v7516_v50, 0.0  ;;  %v3461_v35 = vmul.f32 %v7516_v50, %v7516_v50 }
 0x4ba   :  { %v3423_v44 = vadd.f32 %v3422_v31, %v3421_v53  ;;  %v3034_v33 = vpop.f32.mrf.mxu2  ;;  %v2737_v31 = vadd.f32 %v7399_v56, %v2571_v42 }
 0x4bb   :  { %v3483_v23 = vsel %vm3408_vm4, %v3461_v35, 0.0  ;;  %v3066_v46 = vadd.f32 %v3034_v33, %v2900_v19  ;;  %v3200_v58 = vpop.f32.mrf.mxu3 }
 0x4bc   :  { %v3484_v12 = vadd.f32 %v3483_v23, %v3482_v21  ;;  %v2871_v37 = vpop.f32.mrf.mxu1 }
 0x4bd   :  { %v3232_v27 = vadd.f32 %v3200_v58, %v3066_v46  ;;  %v2901_v48 = vadd.f32 %v2871_v37, %v2735_v10  ;;  %v2572_v58 = vadd.f32 %v7407_v8, %v2406_v15  ;;  %v3711_v37 = vld [vmem:[%s8329_s5 + $0x28] sm:$0xff] }
 0x4be   :  { %3848 = vmatpush.msrb.mxu2 %v3711_v37  ;;  %v5977_v10 = vld [vmem:[%s8329_s5 + $0xe8] sm:$0xff] }
 0x4bf   :  { %v7530_v18 = vadd.f32 %v3366_v30, %v3232_v27  ;;  %v3372_v24 = vpop.f32.mrf.mxu0  ;;  %4030 = vmatpush.msra.mxu0 %v5977_v10  ;;  %v2738_v29 = vadd.f32 %v7409_v26, %v2572_v58  ;;  %v8355_v58 = vld [vmem:[#allocation12_spill] sm:$0xff] }
 0x4c1   :  { %v3424_v43 = vsel %vm3408_vm4, %v7530_v18, 0.0  ;;  %v3462_v13 = vmul.f32 %v7530_v18, %v7530_v18 }
 0x4c2   :  { %v3425_v6 = vadd.f32 %v3424_v43, %v3423_v44  ;;  %v3037_v34 = vpop.f32.mrf.mxu2 }
 0x4c3   :  { %v3485_v41 = vsel %vm3408_vm4, %v3462_v13, 0.0  ;;  %v3067_v63 = vadd.f32 %v3037_v34, %v2901_v48  ;;  %v3203_v45 = vpop.f32.mrf.mxu3  ;;  %v8347_v13 = vld [vmem:[#allocation6_spill] sm:$0xff] }
 0x4c4   :  { %v3486_v11 = vadd.f32 %v3485_v41, %v3484_v12  ;;  %v2874_v30 = vpop.f32.mrf.mxu1  ;;  %v2407_v48 = vadd.f32 %v8347_v13, %v7303_v52  ;;  %v8349_v52 = vld [vmem:[#allocation8_spill] sm:$0xff] }
 0x4c5   :  { %v3233_v53 = vadd.f32 %v3203_v45, %v3067_v63  ;;  %v2902_v21 = vadd.f32 %v2874_v30, %v2736_v22 }
 0x4c7   :  { %v7550_v5 = vadd.f32 %v3369_v57, %v3233_v53  ;;  %v3375_v19 = vpop.f32.mrf.mxu0 }
 0x4c9   :  { %v3426_v49 = vsel %vm3408_vm4, %v7550_v5, 0.0  ;;  %v3463_v54 = vmul.f32 %v7550_v5, %v7550_v5 }
 0x4ca   :  { %v3427_v47 = vadd.f32 %v3426_v49, %v3425_v6  ;;  %v3040_v39 = vpop.f32.mrf.mxu2  ;;  %v8350_v49 = vld [vmem:[#allocation4_spill] sm:$0xff] }
 0x4cb   :  { %v3487_v51 = vsel %vm3408_vm4, %v3463_v54, 0.0  ;;  %v3068_v59 = vadd.f32 %v3040_v39, %v2902_v21  ;;  %v3206_v40 = vpop.f32.mrf.mxu3  ;;  %v8351_v54 = vld [vmem:[#allocation9_spill] sm:$0xff] }
 0x4cc   :  { %v3488_v61 = vadd.f32 %v3487_v51, %v3486_v11  ;;  %v2877_v4 = vpop.f32.mrf.mxu1  ;;  %v8348_v11 = vld [vmem:[#allocation7_spill] sm:$0xff]  ;;  %v2408_v21 = vadd.f32 %v8351_v54, %v8350_v49 }
 0x4cd   :  { %v3234_v14 = vadd.f32 %v3206_v40, %v3068_v59  ;;  %v2903_v9 = vadd.f32 %v2877_v4, %v2737_v31  ;;  %v2573_v30 = vadd.f32 %v8348_v11, %v2407_v48  ;;  %v8352_v40 = vld [vmem:[#allocation10_spill] sm:$0xff] }
 0x4cf   :  { %v7564_v35 = vadd.f32 %v3372_v24, %v3234_v14  ;;  %v3378_v41 = vpop.f32.mrf.mxu0  ;;  %v2739_v22 = vadd.f32 %v8349_v52, %v2573_v30 }
 0x4d1   :  { %v3428_v44 = vsel %vm3408_vm4, %v7564_v35, 0.0  ;;  %v3464_v33 = vmul.f32 %v7564_v35, %v7564_v35 }
 0x4d2   :  { %v3429_v23 = vadd.f32 %v3428_v44, %v3427_v47  ;;  %v3043_v46 = vpop.f32.mrf.mxu2 }
 0x4d3   :  { %v3489_v57 = vsel %vm3408_vm4, %v3464_v33, 0.0  ;;  %v3069_v56 = vadd.f32 %v3043_v46, %v2903_v9  ;;  %v3209_v12 = vpop.f32.mrf.mxu3  ;;  %v8353_v33 = vld [vmem:[#allocation11_spill] sm:$0xff]  ;;  %v8354_v46 = vld [vmem:[#allocation5_spill] sm:$0xff] }
 0x4d4   :  { %v3490_v25 = vadd.f32 %v3489_v57, %v3488_v61  ;;  %v2880_v27 = vpop.f32.mrf.mxu1  ;;  %v2574_v61 = vadd.f32 %v8352_v40, %v2408_v21  ;;  %v2409_v57 = vadd.f32 %v8355_v58, %v8354_v46 }
 0x4d5   :  { %v3235_v8 = vadd.f32 %v3209_v12, %v3069_v56  ;;  %v2904_v28 = vadd.f32 %v2880_v27, %v2738_v29 }
 0x4d6   :  { %v2740_v9 = vadd.f32 %v8353_v33, %v2574_v61 }
 0x4d7   :  { %v7587_v43 = vadd.f32 %v3375_v19, %v3235_v8  ;;  %v3381_v31 = vpop.f32.mrf.mxu0 }
 0x4d9   :  { %v3430_v6 = vsel %vm3408_vm4, %v7587_v43, 0.0  ;;  %v3465_v34 = vmul.f32 %v7587_v43, %v7587_v43 }
 0x4da   :  { %v3431_v63 = vadd.f32 %v3430_v6, %v3429_v23  ;;  %v3046_v45 = vpop.f32.mrf.mxu2  ;;  %v6146_v6 = vmov 128.0  }
 0x4db   :  { %v3491_v7 = vsel %vm3408_vm4, %v3465_v34, 0.0  ;;  %v3070_v26 = vadd.f32 %v3046_v45, %v2904_v28  ;;  %v3212_v17 = vpop.f32.mrf.mxu3  ;;  %6135 = vrcp.f32 %v6146_v6 }
 0x4dc   :  { %v3492_v16 = vadd.f32 %v3491_v7, %v3490_v25  ;;  %v2883_v53 = vpop.f32.mrf.mxu1  ;;  %v8356_v25 = vld [vmem:[#allocation13_spill] sm:$0xff] }
 0x4dd   :  { %v3236_v24 = vadd.f32 %v3212_v17, %v3070_v26  ;;  %v2905_v42 = vadd.f32 %v2883_v53, %v2739_v22  ;;  %v2575_v27 = vadd.f32 %v8356_v25, %v2409_v57 }
 0x4df   :  { %v7598_v36 = vadd.f32 %v3378_v41, %v3236_v24  ;;  %v3384_v13 = vpop.f32.mrf.mxu0  ;;  %v8357_v41 = vld [vmem:[#allocation14_spill] sm:$0xff] }
 0x4e1   :  { %v3432_v47 = vsel %vm3408_vm4, %v7598_v36, 0.0  ;;  %v3466_v39 = vmul.f32 %v7598_v36, %v7598_v36  ;;  %v6136_v26 = vpop.eup %6135 }
 0x4e2   :  { %v3433_v51 = vadd.f32 %v3432_v47, %v3431_v63  ;;  %v3049_v59 = vpop.f32.mrf.mxu2  ;;  %v2741_v63 = vadd.f32 %v8357_v41, %v2575_v27  ;;  %v3447_v21 = vmul.f32 128.0, %v6136_v26  ;;  %vm3451_vm5 = vweird.f32 %v6136_v26 }
 0x4e3   :  { %v3493_v4 = vsel %vm3408_vm4, %v3466_v39, 0.0  ;;  %v3071_v60 = vadd.f32 %v3049_v59, %v2905_v42  ;;  %v3215_v14 = vpop.f32.mrf.mxu3  ;;  %v8358_v41 = vmov 0.0  }
 0x4e4   :  { %v3494_v19 = vadd.f32 %v3493_v4, %v3492_v16  ;;  %v2886_v15 = vpop.f32.mrf.mxu1  ;;  %v3448_v42 = vsub.f32 1.0, %v3447_v21  ;;  %3625 = vst.msk [vmem:[#allocation3 + $0x8] sm:$0x3] %vm3624_vm6, %v8358_v41  ;;  %v6131_v21 = vld [vmem:[%s8327_s3] ss:$0 sm:$0xff] }
 0x4e5   :  { %v3237_v44 = vadd.f32 %v3215_v14, %v3071_v60  ;;  %v2906_v37 = vadd.f32 %v2886_v15, %v2740_v9  ;;  %3627 = vst.msk [vmem:[#allocation3 + $0xa8] sm:$0x3] %vm3624_vm6, %v8358_v41 }
 0x4e6   :  { %v3449_v60 = vmul.f32 %v6136_v26, %v3448_v42  ;;  %3634 = vst.msk [vmem:[#allocation3] sm:$0x1] %vm3633_vm7, %v8358_v41 }
 0x4e7   :  { %v7609_v23 = vadd.f32 %v3381_v31, %v3237_v44  ;;  %v3387_v22 = vpop.f32.mrf.mxu0  ;;  %3635 = vst.msk [vmem:[#allocation3 + $0x10] sm:$0x1] %vm3633_vm7, %v8358_v41 }
 0x4e8   :  { %v3450_v44 = vadd.f32 %v6136_v26, %v3449_v60  ;;  %3636 = vst.msk [vmem:[#allocation3 + $0x20] sm:$0x1] %vm3633_vm7, %v8358_v41 }
 0x4e9   :  { %v3434_v56 = vsel %vm3408_vm4, %v7609_v23, 0.0  ;;  %v3467_v12 = vmul.f32 %v7609_v23, %v7609_v23  ;;  %3637 = vst.msk [vmem:[#allocation3 + $0x30] sm:$0x1] %vm3633_vm7, %v8358_v41 }
 0x4ea   :  { %v3435_v1 = vadd.f32 %v3434_v56, %v3433_v51  ;;  %v3052_v55 = vpop.f32.mrf.mxu2  ;;  %v3452_v57 = vsel %vm3451_vm5, %v6136_v26, %v3450_v44  ;;  %3638 = vst.msk [vmem:[#allocation3 + $0x40] sm:$0x1] %vm3633_vm7, %v8358_v41 }
 0x4eb   :  { %v3495_v8 = vsel %vm3408_vm4, %v3467_v12, 0.0  ;;  %v3072_v10 = vadd.f32 %v3052_v55, %v2906_v37  ;;  %v3218_v29 = vpop.f32.mrf.mxu3  ;;  %3639 = vst.msk [vmem:[#allocation3 + $0x50] sm:$0x1] %vm3633_vm7, %v8358_v41 }
 0x4ec   :  { %v3496_v48 = vadd.f32 %v3495_v8, %v3494_v19  ;;  %v2889_v28 = vpop.f32.mrf.mxu1  ;;  %3640 = vst.msk [vmem:[#allocation3 + $0x60] sm:$0x1] %vm3633_vm7, %v8358_v41 }
 0x4ed   :  { %v3238_v34 = vadd.f32 %v3218_v29, %v3072_v10  ;;  %v2907_v7 = vadd.f32 %v2889_v28, %v2741_v63  ;;  %3641 = vst.msk [vmem:[#allocation3 + $0x70] sm:$0x1] %vm3633_vm7, %v8358_v41 }
 0x4ee   :  { %3644 = vst.msk [vmem:[#allocation3 + $0xa0] sm:$0x1] %vm3633_vm7, %v8358_v41 }
 0x4ef   :  { %v7620_v45 = vadd.f32 %v3384_v13, %v3238_v34  ;;  %3645 = vst.msk [vmem:[#allocation3 + $0xb0] sm:$0x1] %vm3633_vm7, %v8358_v41 }
 0x4f0   :  { %3646 = vst.msk [vmem:[#allocation3 + $0xc0] sm:$0x1] %vm3633_vm7, %v8358_v41 }
 0x4f1   :  { %v3436_v11 = vsel %vm3408_vm4, %v7620_v45, 0.0  ;;  %v3468_v30 = vmul.f32 %v7620_v45, %v7620_v45  ;;  %3647 = vst.msk [vmem:[#allocation3 + $0xd0] sm:$0x1] %vm3633_vm7, %v8358_v41 }
 0x4f2   :  { %v3055_v17 = vpop.f32.mrf.mxu2  ;;  %v3437_v16 = vadd.f32 %v3436_v11, %v3435_v1  ;;  %3648 = vst.msk [vmem:[#allocation3 + $0xe0] sm:$0x1] %vm3633_vm7, %v8358_v41 }
 0x4f3   :  { %v3497_v53 = vsel %vm3408_vm4, %v3468_v30, 0.0  ;;  %v3073_v24 = vadd.f32 %v3055_v17, %v2907_v7  ;;  %v3221_v52 = vpop.f32.mrf.mxu3  ;;  %3649 = vst.msk [vmem:[#allocation3 + $0xf0] sm:$0x1] %vm3633_vm7, %v8358_v41 }
 0x4f4   :  { %v3498_v49 = vadd.f32 %v3497_v53, %v3496_v48  ;;  %3650 = vst.msk [vmem:[#allocation3 + $0x100] sm:$0x1] %vm3633_vm7, %v8358_v41 }
 0x4f5   :  { %v3239_v54 = vadd.f32 %v3221_v52, %v3073_v24  ;;  %3651 = vst.msk [vmem:[#allocation3 + $0x110] sm:$0x1] %vm3633_vm7, %v8358_v41 }
 0x4f6   :  { %3652 = vst.msk [vmem:[#allocation3 + $0x120] sm:$0x1] %vm3633_vm7, %v8358_v41 }
 0x4f7   :  { %v7627_v47 = vadd.f32 %v3387_v22, %v3239_v54  ;;  %3654 = vst.msk [vmem:[#allocation3 + $0x9] sm:$0x1] %vm3633_vm7, %v8358_v41 }
 0x4f8   :  { %3656 = vst.msk [vmem:[#allocation3 + $0x29] sm:$0x1] %vm3633_vm7, %v8358_v41 }
 0x4f9   :  { %v3438_v39 = vsel %vm3408_vm4, %v7627_v47, 0.0  ;;  %v3469_v51 = vmul.f32 %v7627_v47, %v7627_v47  ;;  %3658 = vst.msk [vmem:[#allocation3 + $0x49] sm:$0x1] %vm3633_vm7, %v8358_v41 }
 0x4fa   :  { %v3439_v59 = vadd.f32 %v3438_v39, %v3437_v16  ;;  %3660 = vst.msk [vmem:[#allocation3 + $0x69] sm:$0x1] %vm3633_vm7, %v8358_v41 }
 0x4fb   :  { %v3499_v40 = vsel %vm3408_vm4, %v3469_v51, 0.0  ;;  %3664 = vst.msk [vmem:[#allocation3 + $0xa9] sm:$0x1] %vm3633_vm7, %v8358_v41 }
 0x4fc   :  { %v3440_v61 = vrot.slane %v3439_v59, 4  ;;  %v3500_v4 = vadd.f32 %v3499_v40, %v3498_v49  ;;  %v7710_v40 = vld [vmem:[%s8328_s4] ss:$0 sm:$0xff]  ;;  %3666 = vst.msk [vmem:[#allocation3 + $0xc9] sm:$0x1] %vm3633_vm7, %v8358_v41 }
 0x4fd   :  { %3668 = vst.msk [vmem:[#allocation3 + $0xe9] sm:$0x1] %vm3633_vm7, %v8358_v41 }
 0x4fe   :  { %v3441_v14 = vadd.f32 %v3440_v61, %v3439_v59  ;;  %v3501_v31 = vrot.slane %v3500_v4, 4  ;;  %3670 = vst.msk [vmem:[#allocation3 + $0x109] sm:$0x1] %vm3633_vm7, %v8358_v41 }
 0x4ff   :  { %3672 = vst.msk [vmem:[#allocation3 + $0x129] sm:$0x1] %vm3633_vm7, %v8358_v41 }
 0x500   :  { %v3442_v19 = vrot.slane %v3441_v14, 2  ;;  %v3502_v15 = vadd.f32 %v3501_v31, %v3500_v4  ;;  %3630 = vst.msk [vmem:[#allocation3 + $0x98] sm:$0x3] %vm3624_vm6, %v8358_v41 }
 0x501   :  { %3632 = vst.msk [vmem:[#allocation3 + $0x138] sm:$0x3] %vm3624_vm6, %v8358_v41 }
 0x502   :  { %v3443_v33 = vadd.f32 %v3442_v19, %v3441_v14  ;;  %v3503_v9 = vrot.slane %v3502_v15, 2  ;;  %3642 = vst.msk [vmem:[#allocation3 + $0x80] sm:$0x1] %vm3633_vm7, %v8358_v41 }
 0x503   :  { %3643 = vst.msk [vmem:[#allocation3 + $0x90] sm:$0x1] %vm3633_vm7, %v8358_v41 }
 0x504   :  { %v3444_v46 = vrot.slane %v3443_v33, 1  ;;  %v3504_v58 = vadd.f32 %v3503_v9, %v3502_v15  ;;  %3653 = vst.msk [vmem:[#allocation3 + $0x130] sm:$0x1] %vm3633_vm7, %v8358_v41 }
 0x505   :  { %3655 = vst.msk [vmem:[#allocation3 + $0x19] sm:$0x1] %vm3633_vm7, %v8358_v41 }
 0x506   :  { %v3445_v56 = vadd.f32 %v3444_v46, %v3443_v33  ;;  %v3505_v12 = vrot.slane %v3504_v58, 1  ;;  %3657 = vst.msk [vmem:[#allocation3 + $0x39] sm:$0x1] %vm3633_vm7, %v8358_v41 }
 0x507   :  { %3659 = vst.msk [vmem:[#allocation3 + $0x59] sm:$0x1] %vm3633_vm7, %v8358_v41 }
 0x508   :  { %v7634_v37 = vmul.f32 %v3452_v57, %v3445_v56  ;;  %v3506_v1 = vadd.f32 %v3505_v12, %v3504_v58  ;;  %3661 = vst.msk [vmem:[#allocation3 + $0x79] sm:$0x1] %vm3633_vm7, %v8358_v41 }
 0x509   :  { %3662 = vst.msk [vmem:[#allocation3 + $0x89] sm:$0x1] %vm3633_vm7, %v8358_v41 }
 0x50a   :  { %v3507_v55 = vmul.f32 %v3506_v1, %v3452_v57  ;;  %v3508_v25 = vmul.f32 %v7634_v37, %v7634_v37  ;;  %v3515_v27 = vsub.f32 %v7477_v38, %v7634_v37  ;;  %v3516_v10 = vsub.f32 %v7495_v20, %v7634_v37  ;;  %3665 = vst.msk [vmem:[#allocation3 + $0xb9] sm:$0x1] %vm3633_vm7, %v8358_v41 }
 0x50b   :  { %v3517_v29 = vsub.f32 %v7516_v50, %v7634_v37  ;;  %v3518_v13 = vsub.f32 %v7530_v18, %v7634_v37  ;;  %v3519_v48 = vsub.f32 %v7550_v5, %v7634_v37  ;;  %v3520_v6 = vsub.f32 %v7564_v35, %v7634_v37  ;;  %3667 = vst.msk [vmem:[#allocation3 + $0xd9] sm:$0x1] %vm3633_vm7, %v8358_v41 }
 0x50c   :  { %v3509_v8 = vsub.f32 %v3507_v55, %v3508_v25  ;;  %v3521_v34 = vsub.f32 %v7587_v43, %v7634_v37  ;;  %v3522_v38 = vsub.f32 %v7598_v36, %v7634_v37  ;;  %v3523_v20 = vsub.f32 %v7609_v23, %v7634_v37  ;;  %3669 = vst.msk [vmem:[#allocation3 + $0xf9] sm:$0x1] %vm3633_vm7, %v8358_v41 }
 0x50d   :  { %v3524_v50 = vsub.f32 %v7620_v45, %v7634_v37  ;;  %v3525_v18 = vsub.f32 %v7627_v47, %v7634_v37  ;;  %v3510_v45 = vsub.f32 %v7453_v62, %v7634_v37  ;;  %v3511_v11 = vsub.f32 %v7451_v2, %v7634_v37  ;;  %3671 = vst.msk [vmem:[#allocation3 + $0x119] sm:$0x1] %vm3633_vm7, %v8358_v41 }
 0x50e   :  { %v3526_v28 = vadd.f32 1e-05, %v3509_v8  ;;  %v3512_v30 = vsub.f32 %v7455_v3, %v7634_v37  ;;  %v3513_v7 = vsub.f32 %v7460_v32, %v7634_v37  ;;  %v3514_v26 = vsub.f32 %v7468_v0, %v7634_v37  ;;  %3663 = vst.msk [vmem:[#allocation3 + $0x99] sm:$0x1] %vm3633_vm7, %v8358_v41 }
 0x50f   :  { %3673 = vst.msk [vmem:[#allocation3 + $0x139] sm:$0x1] %vm3633_vm7, %v8358_v41  ;;  %v6024_v41 = vld [vmem:[%s8329_s5 + $0x1e0] sm:$0xff] }
 0x510   :  { %6137 = vrsqrt.f32 %v3526_v28  ;;  %vm3533_vm9 = vweird.f32 %v3526_v28 }
 0x516   :  { %v6138_v5 = vpop.eup %6137 }
 0x517   :  { %v3528_v35 = vmul.f32 %v6138_v5, %v3526_v28  ;;  %vm3534_vm8 = vweird.f32 %v6138_v5 }
 0x518   :  { %vm3535_vm10 = vmor %vm3533_vm9, %vm3534_vm8 }
 0x519   :  { %v3529_v43 = vmul.f32 %v6138_v5, %v3528_v35 }
 0x51b   :  { %v3530_v36 = vmul.f32 0.5, %v3529_v43 }
 0x51d   :  { %v3531_v23 = vsub.f32 1.5, %v3530_v36 }
 0x51f   :  { %v3532_v63 = vmul.f32 %v6138_v5, %v3531_v23 }
 0x521   :  { %v3536_v17 = vsel %vm3535_vm10, %v6138_v5, %v3532_v63 }
 0x522   :  { %v3537_v62 = vmul.f32 %v3536_v17, %v3510_v45  ;;  %v3538_v16 = vmul.f32 %v3536_v17, %v3511_v11  ;;  %v3539_v2 = vmul.f32 %v3536_v17, %v3512_v30  ;;  %v3540_v53 = vmul.f32 %v3536_v17, %v3513_v7 }
 0x523   :  { %v3541_v3 = vmul.f32 %v3536_v17, %v3514_v26  ;;  %v3542_v32 = vmul.f32 %v3536_v17, %v3515_v27  ;;  %v3543_v24 = vmul.f32 %v3536_v17, %v3516_v10  ;;  %v3544_v52 = vmul.f32 %v3536_v17, %v3517_v29 }
 0x524   :  { %v3545_v22 = vmul.f32 %v3536_v17, %v3518_v13  ;;  %v3546_v0 = vmul.f32 %v3536_v17, %v3519_v48  ;;  %v3547_v49 = vmul.f32 %v3536_v17, %v3520_v6  ;;  %v3548_v54 = vmul.f32 %v3536_v17, %v3521_v34 }
 0x525   :  { %v3549_v47 = vmul.f32 %v3536_v17, %v3522_v38  ;;  %v3550_v39 = vmul.f32 %v3536_v17, %v3523_v20  ;;  %v3551_v42 = vmul.f32 %v3536_v17, %v3524_v50  ;;  %v3552_v51 = vmul.f32 %v3536_v17, %v3525_v18 }
 0x526   :  { %v3556_v59 = vmul.f32 %v6131_v21, %v3537_v62  ;;  %v3557_v61 = vmul.f32 %v6131_v21, %v3538_v16  ;;  %v3558_v4 = vmul.f32 %v6131_v21, %v3539_v2  ;;  %v3559_v60 = vmul.f32 %v6131_v21, %v3540_v53 }
 0x527   :  { %v3560_v14 = vmul.f32 %v6131_v21, %v3541_v3  ;;  %v3561_v19 = vmul.f32 %v6131_v21, %v3542_v32  ;;  %v3562_v44 = vmul.f32 %v6131_v21, %v3543_v24  ;;  %v3563_v9 = vmul.f32 %v6131_v21, %v3544_v52 }
 0x528   :  { %v3575_v31 = vadd.f32 %v7710_v40, %v3556_v59  ;;  %v3576_v15 = vadd.f32 %v7710_v40, %v3557_v61  ;;  %v3577_v33 = vadd.f32 %v7710_v40, %v3558_v4  ;;  %v3578_v46 = vadd.f32 %v7710_v40, %v3559_v60  ;;  %v3715_v61 = vld [vmem:[#allocation3 + $0x1] ss:$2 sm:$0xf] }
 0x529   :  { %v3564_v58 = vmul.f32 %v6131_v21, %v3545_v22  ;;  %v3579_v57 = vadd.f32 %v7710_v40, %v3560_v14  ;;  %v3565_v12 = vmul.f32 %v6131_v21, %v3546_v0  ;;  %v3580_v37 = vadd.f32 %v7710_v40, %v3561_v19  ;;  %3747 = vst [vmem:[#allocation1] ss:$2 sm:$0xff] %v3715_v61  ;;  %v5962_v61 = vld [vmem:[%s8329_s5 + $0x90] sm:$0xff] }
 0x52a   :  { %v3591_v56 = vmul.f32 0.2, %v3575_v31  ;;  %v3592_v1 = vmul.f32 0.2, %v3576_v15  ;;  %v3566_v55 = vmul.f32 %v6131_v21, %v3547_v49  ;;  %v3581_v25 = vadd.f32 %v7710_v40, %v3562_v44 }
 0x52b   :  { %v3593_v27 = vmul.f32 0.2, %v3577_v33  ;;  %v3567_v8 = vmul.f32 %v6131_v21, %v3548_v54  ;;  %v3582_v10 = vadd.f32 %v7710_v40, %v3563_v9  ;;  %v3594_v29 = vmul.f32 0.2, %v3578_v46 }
 0x52c   :  { %v3568_v13 = vmul.f32 %v6131_v21, %v3549_v47  ;;  %v3583_v48 = vadd.f32 %v7710_v40, %v3564_v58  ;;  %v3595_v6 = vmul.f32 0.2, %v3579_v57  ;;  %v3607_v34 = vmax.f32 %v3575_v31, %v3591_v56  ;;  %v3723_v31 = vld [vmem:[#allocation3 + $0xa1] ss:$2 sm:$0xf] }
 0x52d   :  { %v3569_v38 = vmul.f32 %v6131_v21, %v3550_v39  ;;  %v3584_v20 = vadd.f32 %v7710_v40, %v3565_v12  ;;  %v3596_v50 = vmul.f32 0.2, %v3580_v37  ;;  %v3608_v18 = vmax.f32 %v3576_v15, %v3592_v1  ;;  %3755 = vst [vmem:[#allocation1 + $0x20] ss:$2 sm:$0xff] %v3723_v31  ;;  %v5974_v31 = vld [vmem:[%s8329_s5 + $0xd0] sm:$0xff] }
 0x52e   :  { %v3570_v28 = vmul.f32 %v6131_v21, %v3551_v42  ;;  %v3585_v5 = vadd.f32 %v7710_v40, %v3566_v55  ;;  %v3597_v35 = vmul.f32 0.2, %v3581_v25  ;;  %v3609_v43 = vmax.f32 %v3577_v33, %v3593_v27  ;;  %3675 = vst.msk [vmem:[#allocation3 + $0x11] sm:$0xff] %vm3408_vm4, %v3607_v34  ;;  %v3691_v33 = vld [vmem:[#allocation3] ss:$2 sm:$0xf] }
 0x52f   :  { %v3571_v36 = vmul.f32 %v6131_v21, %v3552_v51  ;;  %v3586_v23 = vadd.f32 %v7710_v40, %v3567_v8  ;;  %v3598_v63 = vmul.f32 0.2, %v3582_v10  ;;  %v3610_v45 = vmax.f32 %v3578_v46, %v3594_v29  ;;  %3676 = vst.msk [vmem:[#allocation3 + $0x21] sm:$0xff] %vm3408_vm4, %v3608_v18  ;;  %v3699_v58 = vld [vmem:[#allocation3 + $0xa0] ss:$2 sm:$0xf] }
 0x530   :  { %v3587_v11 = vadd.f32 %v7710_v40, %v3568_v13  ;;  %v3599_v30 = vmul.f32 0.2, %v3583_v48  ;;  %v3611_v7 = vmax.f32 %v3579_v57, %v3595_v6  ;;  %v3588_v26 = vadd.f32 %v7710_v40, %v3569_v38  ;;  %3677 = vst.msk [vmem:[#allocation3 + $0x31] sm:$0xff] %vm3408_vm4, %v3609_v43  ;;  %v3868_v55 = vld [vmem:[#allocation3 + $0x2] ss:$2 sm:$0xf] }
 0x531   :  { %v3600_v17 = vmul.f32 0.2, %v3584_v20  ;;  %v3612_v62 = vmax.f32 %v3580_v37, %v3596_v50  ;;  %v3589_v16 = vadd.f32 %v7710_v40, %v3570_v28  ;;  %v3601_v2 = vmul.f32 0.2, %v3585_v5  ;;  %3678 = vst.msk [vmem:[#allocation3 + $0x41] sm:$0xff] %vm3408_vm4, %v3610_v45 }
 0x532   :  { %v3613_v53 = vmax.f32 %v3581_v25, %v3597_v35  ;;  %v3590_v3 = vadd.f32 %v7710_v40, %v3571_v36  ;;  %v3602_v32 = vmul.f32 0.2, %v3586_v23  ;;  %v3614_v24 = vmax.f32 %v3582_v10, %v3598_v63  ;;  %3679 = vst.msk [vmem:[#allocation3 + $0x51] sm:$0xff] %vm3408_vm4, %v3611_v7  ;;  %v3876_v34 = vld [vmem:[#allocation3 + $0xa2] ss:$2 sm:$0xf] }
 0x533   :  { %v3603_v52 = vmul.f32 0.2, %v3587_v11  ;;  %v3615_v22 = vmax.f32 %v3583_v48, %v3599_v30  ;;  %v3604_v0 = vmul.f32 0.2, %v3588_v26  ;;  %v3616_v49 = vmax.f32 %v3584_v20, %v3600_v17  ;;  %3680 = vst.msk [vmem:[#allocation3 + $0x61] sm:$0xff] %vm3408_vm4, %v3612_v62  ;;  %v3710_v30 = vld [vmem:[%s8329_s5 + $0x20] sm:$0xff] }
 0x534   :  { %v3605_v54 = vmul.f32 0.2, %v3589_v16  ;;  %v3617_v21 = vmax.f32 %v3585_v5, %v3601_v2  ;;  %3681 = vst.msk [vmem:[#allocation3 + $0x71] sm:$0xff] %vm3408_vm4, %v3613_v53  ;;  %v3606_v47 = vmul.f32 0.2, %v3590_v3  ;;  %v3618_v39 = vmax.f32 %v3586_v23, %v3602_v32  ;;  %3849 = vmatpush.msrb.mxu2 %v3710_v30  ;;  %v5964_v62 = vld [vmem:[%s8329_s5 + $0xa0] sm:$0xff] }
 0x535   :  { %3682 = vst.msk [vmem:[#allocation3 + $0x81] sm:$0xff] %vm3408_vm4, %v3614_v24  ;;  %v3619_v42 = vmax.f32 %v3587_v11, %v3603_v52  ;;  %v3620_v51 = vmax.f32 %v3588_v26, %v3604_v0  ;;  %v3961_v28 = vld [vmem:[#allocation3 + $0x3] ss:$2 sm:$0xf]  ;;  %3938 = vmatpush.msrb.mxu3 %v5964_v62  ;;  %v5948_v53 = vld [vmem:[%s8329_s5 + $0x60] sm:$0xff]  ;;  %v3709_v52 = vld [vmem:[%s8329_s5 + $0x18] sm:$0xff] }
 0x536   :  { %3683 = vst.msk [vmem:[#allocation3 + $0xb1] sm:$0xff] %vm3408_vm4, %v3615_v22  ;;  %v3621_v59 = vmax.f32 %v3589_v16, %v3605_v54  ;;  %v3622_v40 = vmax.f32 %v3590_v3, %v3606_v47  ;;  %v3717_v4 = vld [vmem:[#allocation3 + $0x21] ss:$2 sm:$0xf]  ;;  %3785 = vmatpush.msrb.mxu1 %v5948_v53  ;;  %v5976_v32 = vld [vmem:[%s8329_s5 + $0xe0] sm:$0xff]  ;;  %3850 = vmatpush.msrb.mxu2 %v3709_v52  ;;  %v5963_v0 = vld [vmem:[%s8329_s5 + $0x98] sm:$0xff] }
 0x537   :  { %3684 = vst.msk [vmem:[#allocation3 + $0xc1] sm:$0xff] %vm3408_vm4, %v3616_v49  ;;  %v3693_v46 = vld [vmem:[#allocation3 + $0x20] ss:$2 sm:$0xf]  ;;  %4031 = vmatpush.msra.mxu0 %v5976_v32  ;;  %3939 = vmatpush.msrb.mxu3 %v5963_v0  ;;  %v5947_v54 = vld [vmem:[%s8329_s5 + $0x58] sm:$0xff]  ;;  %v6010_v62 = vld [vmem:[%s8329_s5 + $0x190] sm:$0xff] }
 0x538   :  { %3685 = vst.msk [vmem:[#allocation3 + $0xd1] sm:$0xff] %vm3408_vm4, %v3617_v21  ;;  %v3719_v60 = vld [vmem:[#allocation3 + $0x41] ss:$2 sm:$0xf]  ;;  %3786 = vmatpush.msrb.mxu1 %v5947_v54  ;;  %v5984_v52 = vld [vmem:[%s8329_s5 + $0x100] sm:$0xff]  ;;  %v6023_v54 = vld [vmem:[%s8329_s5 + $0x1d8] sm:$0xff] }
 0x539   :  { %3686 = vst.msk [vmem:[#allocation3 + $0xe1] sm:$0xff] %vm3408_vm4, %v3618_v39  ;;  %v3695_v57 = vld [vmem:[#allocation3 + $0x40] ss:$2 sm:$0xf]  ;;  %3940 = vmatpush.msrb.mxu3 %v5962_v61  ;;  %v6038_v61 = vld [vmem:[%s8329_s5 + $0x230] sm:$0xff] }
 0x53a   :  { %3687 = vst.msk [vmem:[#allocation3 + $0xf1] sm:$0xff] %vm3408_vm4, %v3619_v42  ;;  %v3721_v14 = vld [vmem:[#allocation3 + $0x61] ss:$2 sm:$0xf]  ;;  %v5975_v42 = vld [vmem:[%s8329_s5 + $0xd8] sm:$0xff] }
 0x53b   :  { %3688 = vst.msk [vmem:[#allocation3 + $0x101] sm:$0xff] %vm3408_vm4, %v3620_v51  ;;  %v3697_v56 = vld [vmem:[#allocation3 + $0x60] ss:$2 sm:$0xf]  ;;  %4032 = vmatpush.msra.mxu0 %v5975_v42 }
 0x53c   :  { %3689 = vst.msk [vmem:[#allocation3 + $0x111] sm:$0xff] %vm3408_vm4, %v3621_v59  ;;  %v3870_v10 = vld [vmem:[#allocation3 + $0x22] ss:$2 sm:$0xf] }
 0x53d   :  { %3690 = vst.msk [vmem:[#allocation3 + $0x121] sm:$0xff] %vm3408_vm4, %v3622_v40  ;;  %v3872_v13 = vld [vmem:[#allocation3 + $0x42] ss:$2 sm:$0xf]  ;;  %4033 = vmatpush.msra.mxu0 %v5974_v31 }
 0x53e   :  { %3749 = vst [vmem:[#allocation1 + $0x1] ss:$2 sm:$0xff] %v3717_v4  ;;  %v3725_v19 = vld [vmem:[#allocation3 + $0xc1] ss:$2 sm:$0xf]  ;;  %v3708_v59 = vld [vmem:[%s8329_s5 + $0x10] sm:$0xff] }
 0x53f   :  { %3751 = vst [vmem:[#allocation1 + $0x10] ss:$2 sm:$0xff] %v3719_v60  ;;  %v3701_v37 = vld [vmem:[#allocation3 + $0xc0] ss:$2 sm:$0xf]  ;;  %3851 = vmatpush.msrb.mxu2 %v3708_v59  ;;  %v5946_v60 = vld [vmem:[%s8329_s5 + $0x50] sm:$0xff] }
 0x540   :  { %v3727_v15 = vld [vmem:[#allocation3 + $0xe1] ss:$2 sm:$0xf]  ;;  %3753 = vst [vmem:[#allocation1 + $0x11] ss:$2 sm:$0xff] %v3721_v14  ;;  %3787 = vmatpush.msrb.mxu1 %v5946_v60  ;;  %v6022_v59 = vld [vmem:[%s8329_s5 + $0x1d0] sm:$0xff] }
 0x541   :  { %3757 = vst [vmem:[#allocation1 + $0x21] ss:$2 sm:$0xff] %v3725_v19  ;;  %v3703_v25 = vld [vmem:[#allocation3 + $0xe0] ss:$2 sm:$0xf] }
 0x542   :  { %v3729_v44 = vld [vmem:[#allocation3 + $0x101] ss:$2 sm:$0xf]  ;;  %3759 = vst [vmem:[#allocation1 + $0x30] ss:$2 sm:$0xff] %v3727_v15 }
 0x543   :  { %3761 = vst [vmem:[#allocation1 + $0x31] ss:$2 sm:$0xff] %v3729_v44  ;;  %v3705_v8 = vld [vmem:[#allocation3 + $0x100] ss:$2 sm:$0xf] }
 0x544   :  { %v3874_v48 = vld [vmem:[#allocation3 + $0x62] ss:$2 sm:$0xf]  ;;  %v3963_v35 = vld [vmem:[#allocation3 + $0x23] ss:$2 sm:$0xf] }
 0x545   :  { %v7766_v9 = vld.sshfl [vmem:[#allocation1] sm:$0xff pattern:$0x75316420]  ;;  %v3878_v38 = vld [vmem:[#allocation3 + $0xc2] ss:$2 sm:$0xf] }
 0x546   :  { %3811 = vst [vmem:[#allocation1] ss:$2 sm:$0xff] %v3691_v33  ;;  %v3880_v50 = vld [vmem:[#allocation3 + $0xe2] ss:$2 sm:$0xf] }
 0x547   :  { %3813 = vst [vmem:[#allocation1 + $0x1] ss:$2 sm:$0xff] %v3693_v46  ;;  %v7768_v12 = vld.sshfl [vmem:[#allocation1 + $0x10] sm:$0xff pattern:$0x75316420]  ;;  %v3707_v19 = vld [vmem:[%s8329_s5 + $0x8] sm:$0xff] }
 0x548   :  { %3815 = vst [vmem:[#allocation1 + $0x10] ss:$2 sm:$0xff] %v3695_v57  ;;  %v7770_v1 = vld.sshfl [vmem:[#allocation1 + $0x20] sm:$0xff pattern:$0x75316420]  ;;  %3852 = vmatpush.msrb.mxu2 %v3707_v19  ;;  %v5961_v15 = vld [vmem:[%s8329_s5 + $0x88] sm:$0xff] }
 0x549   :  { %3817 = vst [vmem:[#allocation1 + $0x11] ss:$2 sm:$0xff] %v3697_v56  ;;  %v3882_v18 = vld [vmem:[#allocation3 + $0x102] ss:$2 sm:$0xf]  ;;  %3941 = vmatpush.msrb.mxu3 %v5961_v15  ;;  %v3706_v46 = vld [vmem:[%s8329_s5] sm:$0xff] }
 0x54a   :  { %3819 = vst [vmem:[#allocation1 + $0x20] ss:$2 sm:$0xff] %v3699_v58  ;;  %v7772_v27 = vld.sshfl [vmem:[#allocation1 + $0x30] sm:$0xff pattern:$0x75316420]  ;;  %v5945_v44 = vld [vmem:[%s8329_s5 + $0x48] sm:$0xff]  ;;  %3853 = vmatpush.msrb.mxu2 %v3706_v46 }
 0x54b   :  { %3821 = vst [vmem:[#allocation1 + $0x21] ss:$2 sm:$0xff] %v3701_v37  ;;  %v3965_v36 = vld [vmem:[#allocation3 + $0x43] ss:$2 sm:$0xf]  ;;  %3788 = vmatpush.msrb.mxu1 %v5945_v44  ;;  %v5944_v58 = vld [vmem:[%s8329_s5 + $0x40] sm:$0xff] }
 0x54c   :  { %3823 = vst [vmem:[#allocation1 + $0x30] ss:$2 sm:$0xff] %v3703_v25  ;;  %v3967_v23 = vld [vmem:[#allocation3 + $0x63] ss:$2 sm:$0xf]  ;;  %v5960_v57 = vld [vmem:[%s8329_s5 + $0x80] sm:$0xff] }
 0x54d   :  { %3825 = vst [vmem:[#allocation1 + $0x31] ss:$2 sm:$0xff] %v3705_v8  ;;  %v3969_v45 = vld [vmem:[#allocation3 + $0xa3] ss:$2 sm:$0xf]  ;;  %v5972_v56 = vld [vmem:[%s8329_s5 + $0xc0] sm:$0xff]  ;;  %3942 = vmatpush.msrb.mxu3 %v5960_v57  ;;  %3789 = vmatpush.msrb.mxu1 %v5944_v58 }
 0x54e   :  { %v7774_v29 = vld.sshfl [vmem:[#allocation1] sm:$0xff pattern:$0x75316420]  ;;  %v3971_v11 = vld [vmem:[#allocation3 + $0xc3] ss:$2 sm:$0xf]  ;;  %5952 = vmatmul.msk.f32.vlgmr.msrb.gmra.mxu1 %vm3408_vm4, %v7766_v9 }
 0x54f   :  { %3900 = vst [vmem:[#allocation1] ss:$2 sm:$0xff] %v3868_v55  ;;  %v3973_v26 = vld [vmem:[#allocation3 + $0xe3] ss:$2 sm:$0xf]  ;;  %v6003_v37 = vld [vmem:[%s8329_s5 + $0x178] sm:$0xff]  ;;  %5956 = vmatmul.msk.f32.vlgmr.msrb.gmra.mxu2 %vm3408_vm4, %v7774_v29 }
 0x550   :  { %3902 = vst [vmem:[#allocation1 + $0x1] ss:$2 sm:$0xff] %v3870_v10  ;;  %v7776_v6 = vld.sshfl [vmem:[#allocation1 + $0x10] sm:$0xff pattern:$0x75316420]  ;;  %v5973_v33 = vld [vmem:[%s8329_s5 + $0xc8] sm:$0xff]  ;;  %4213 = vmatpush.msra.mxu2 %v6003_v37 }
 0x551   :  { %3904 = vst [vmem:[#allocation1 + $0x10] ss:$2 sm:$0xff] %v3872_v13  ;;  %v3975_v17 = vld [vmem:[#allocation3 + $0x103] ss:$2 sm:$0xf]  ;;  %4034 = vmatpush.msra.mxu0 %v5973_v33  ;;  %v6015_v55 = vld [vmem:[%s8329_s5 + $0x1b8] sm:$0xff] }
 0x552   :  { %v7778_v20 = vld.sshfl [vmem:[#allocation1 + $0x20] sm:$0xff pattern:$0x75316420]  ;;  %3906 = vst [vmem:[#allocation1 + $0x11] ss:$2 sm:$0xff] %v3874_v48  ;;  %v5991_v25 = vld [vmem:[%s8329_s5 + $0x138] sm:$0xff]  ;;  %4306 = vmatpush.msra.mxu3 %v6015_v55 }
 0x553   :  { %3908 = vst [vmem:[#allocation1 + $0x20] ss:$2 sm:$0xff] %v3876_v34  ;;  %v4053_v2 = vld [vmem:[#allocation3 + $0x10] ss:$2 sm:$0xf]  ;;  %4035 = vmatpush.msra.mxu0 %v5972_v56  ;;  %v6002_v8 = vld [vmem:[%s8329_s5 + $0x170] sm:$0xff]  ;;  %4120 = vmatpush.msra.mxu1 %v5991_v25 }
 0x554   :  { %v7780_v5 = vld.sshfl [vmem:[#allocation1 + $0x30] sm:$0xff pattern:$0x75316420]  ;;  %3910 = vst [vmem:[#allocation1 + $0x21] ss:$2 sm:$0xff] %v3878_v38  ;;  %v6001_v29 = vld [vmem:[%s8329_s5 + $0x168] sm:$0xff]  ;;  %4214 = vmatpush.msra.mxu2 %v6002_v8 }
 0x555   :  { %3912 = vst [vmem:[#allocation1 + $0x30] ss:$2 sm:$0xff] %v3880_v50  ;;  %v4055_v3 = vld [vmem:[#allocation3 + $0x30] ss:$2 sm:$0xf]  ;;  %v5990_v10 = vld [vmem:[%s8329_s5 + $0x130] sm:$0xff] }
 0x556   :  { %3914 = vst [vmem:[#allocation1 + $0x31] ss:$2 sm:$0xff] %v3882_v18  ;;  %v4057_v22 = vld [vmem:[#allocation3 + $0x50] ss:$2 sm:$0xf]  ;;  %v6014_v9 = vld [vmem:[%s8329_s5 + $0x1b0] sm:$0xff]  ;;  %4121 = vmatpush.msra.mxu1 %v5990_v10  ;;  %4215 = vmatpush.msra.mxu2 %v6001_v29 }
 0x557   :  { %v7782_v43 = vld.sshfl [vmem:[#allocation1] sm:$0xff pattern:$0x75316420]  ;;  %v4059_v49 = vld [vmem:[#allocation3 + $0x70] ss:$2 sm:$0xf]  ;;  %4307 = vmatpush.msra.mxu3 %v6014_v9  ;;  %5957 = vmatmul.msk.f32.gmra.mxu2 %vm3408_vm4, %v7776_v6 }
 0x558   :  { %3993 = vst [vmem:[#allocation1] ss:$2 sm:$0xff] %v3961_v28  ;;  %v4061_v47 = vld [vmem:[#allocation3 + $0xb0] ss:$2 sm:$0xf]  ;;  %5968 = vmatmul.msk.f32.vlgmr.msrb.gmra.mxu3 %vm3408_vm4, %v7782_v43  ;;  %v5989_v48 = vld [vmem:[%s8329_s5 + $0x128] sm:$0xff]  ;;  %5953 = vmatmul.msk.f32.gmra.mxu1 %vm3408_vm4, %v7768_v12 }
 0x559   :  { %3995 = vst [vmem:[#allocation1 + $0x1] ss:$2 sm:$0xff] %v3963_v35  ;;  %v7784_v63 = vld.sshfl [vmem:[#allocation1 + $0x10] sm:$0xff pattern:$0x75316420]  ;;  %v6027_v13 = vld [vmem:[%s8329_s5 + $0x1f8] sm:$0xff]  ;;  %4122 = vmatpush.msra.mxu1 %v5989_v48 }
 0x55a   :  { %3997 = vst [vmem:[#allocation1 + $0x10] ss:$2 sm:$0xff] %v3965_v36  ;;  %v4063_v39 = vld [vmem:[#allocation3 + $0xd0] ss:$2 sm:$0xf]  ;;  %v6013_v34 = vld [vmem:[%s8329_s5 + $0x1a8] sm:$0xff]  ;;  %4399 = vmatpush.msrb.mxu0 %v6027_v13 }
 0x55b   :  { %v7789_v7 = vld.sshfl [vmem:[#allocation1 + $0x20] sm:$0xff pattern:$0x75316420]  ;;  %3999 = vst [vmem:[#allocation1 + $0x11] ss:$2 sm:$0xff] %v3967_v23  ;;  %v6026_v38 = vld [vmem:[%s8329_s5 + $0x1f0] sm:$0xff]  ;;  %4308 = vmatpush.msra.mxu3 %v6013_v34 }
 0x55c   :  { %4001 = vst [vmem:[#allocation1 + $0x20] ss:$2 sm:$0xff] %v3969_v45  ;;  %v4065_v40 = vld [vmem:[#allocation3 + $0xf0] ss:$2 sm:$0xf]  ;;  %v6000_v50 = vld [vmem:[%s8329_s5 + $0x160] sm:$0xff]  ;;  %4400 = vmatpush.msrb.mxu0 %v6026_v38 }
 0x55d   :  { %v7794_v16 = vld.sshfl [vmem:[#allocation1 + $0x30] sm:$0xff pattern:$0x75316420]  ;;  %4003 = vst [vmem:[#allocation1 + $0x21] ss:$2 sm:$0xff] %v3971_v11  ;;  %v5988_v18 = vld [vmem:[%s8329_s5 + $0x120] sm:$0xff]  ;;  %4216 = vmatpush.msra.mxu2 %v6000_v50 }
 0x55e   :  { %4005 = vst [vmem:[#allocation1 + $0x30] ss:$2 sm:$0xff] %v3973_v26  ;;  %v4067_v14 = vld [vmem:[#allocation3 + $0x110] ss:$2 sm:$0xf]  ;;  %v6012_v28 = vld [vmem:[%s8329_s5 + $0x1a0] sm:$0xff]  ;;  %4123 = vmatpush.msra.mxu1 %v5988_v18 }
 0x55f   :  { %4007 = vst [vmem:[#allocation1 + $0x31] ss:$2 sm:$0xff] %v3975_v17  ;;  %v5999_v35 = vld [vmem:[%s8329_s5 + $0x158] sm:$0xff]  ;;  %v5986_v45 = vld [vmem:[%s8329_s5 + $0x110] sm:$0xff]  ;;  %v6025_v11 = vld [vmem:[%s8329_s5 + $0x1e8] sm:$0xff]  ;;  %4309 = vmatpush.msra.mxu3 %v6012_v28  ;;  %5958 = vmatmul.msk.f32.gmra.mxu2 %vm3408_vm4, %v7778_v20 }
 0x560   :  { %v7802_v24 = vld.sshfl [vmem:[#allocation1] sm:$0xff pattern:$0x75316420]  ;;  %v4146_v43 = vld [vmem:[#allocation3 + $0x11] ss:$2 sm:$0xf]  ;;  %5969 = vmatmul.msk.f32.gmra.mxu3 %vm3408_vm4, %v7784_v63  ;;  %4217 = vmatpush.msra.mxu2 %v5999_v35 }
 0x561   :  { %4085 = vst [vmem:[#allocation1] ss:$2 sm:$0xff] %v4053_v2  ;;  %5980 = vmatmul.msk.f32.vlgmr.msra.gmra.mxu0 %vm3408_vm4, %v7802_v24  ;;  %v5987_v6 = vld [vmem:[%s8329_s5 + $0x118] sm:$0xff]  ;;  %v5998_v63 = vld [vmem:[%s8329_s5 + $0x150] sm:$0xff]  ;;  %v5985_v2 = vld [vmem:[%s8329_s5 + $0x108] sm:$0xff]  ;;  %5954 = vmatmul.msk.f32.gmra.mxu1 %vm3408_vm4, %v7770_v1 }
 0x562   :  { %4087 = vst [vmem:[#allocation1 + $0x1] ss:$2 sm:$0xff] %v4055_v3  ;;  %v7813_v21 = vld.sshfl [vmem:[#allocation1 + $0x10] sm:$0xff pattern:$0x75316420]  ;;  %v6011_v12 = vld [vmem:[%s8329_s5 + $0x198] sm:$0xff]  ;;  %4124 = vmatpush.msra.mxu1 %v5987_v6  ;;  %4401 = vmatpush.msrb.mxu0 %v6025_v11 }
 0x563   :  { %4089 = vst [vmem:[#allocation1 + $0x10] ss:$2 sm:$0xff] %v4057_v22  ;;  %v4148_v23 = vld [vmem:[#allocation3 + $0x31] ss:$2 sm:$0xf]  ;;  %4310 = vmatpush.msra.mxu3 %v6011_v12  ;;  %4218 = vmatpush.msra.mxu2 %v5998_v63  ;;  %v5997_v32 = vld [vmem:[%s8329_s5 + $0x148] sm:$0xff] }
 0x564   :  { %v7818_v51 = vld.sshfl [vmem:[#allocation1 + $0x20] sm:$0xff pattern:$0x75316420]  ;;  %4091 = vst [vmem:[#allocation1 + $0x11] ss:$2 sm:$0xff] %v4059_v49  ;;  %4125 = vmatpush.msra.mxu1 %v5986_v45  ;;  %4402 = vmatpush.msrb.mxu0 %v6024_v41  ;;  %v6009_v0 = vld [vmem:[%s8329_s5 + $0x188] sm:$0xff] }
 0x565   :  { %4093 = vst [vmem:[#allocation1 + $0x20] ss:$2 sm:$0xff] %v4061_v47  ;;  %v4150_v30 = vld [vmem:[#allocation3 + $0x51] ss:$2 sm:$0xf]  ;;  %4311 = vmatpush.msra.mxu3 %v6010_v62  ;;  %v5996_v22 = vld [vmem:[%s8329_s5 + $0x140] sm:$0xff]  ;;  %4219 = vmatpush.msra.mxu2 %v5997_v32 }
 0x566   :  { %v7826_v4 = vld.sshfl [vmem:[#allocation1 + $0x30] sm:$0xff pattern:$0x75316420]  ;;  %4095 = vst [vmem:[#allocation1 + $0x21] ss:$2 sm:$0xff] %v4063_v39  ;;  %4126 = vmatpush.msra.mxu1 %v5985_v2  ;;  %v6051_v49 = vld [vmem:[%s8329_s5 + $0x278] sm:$0xff]  ;;  %4403 = vmatpush.msrb.mxu0 %v6023_v54 }
 0x567   :  { %4097 = vst [vmem:[#allocation1 + $0x30] ss:$2 sm:$0xff] %v4065_v40  ;;  %v4152_v17 = vld [vmem:[#allocation3 + $0x71] ss:$2 sm:$0xf]  ;;  %4220 = vmatpush.msra.mxu2 %v5996_v22  ;;  %4312 = vmatpush.msra.mxu3 %v6009_v0  ;;  %v6050_v40 = vld [vmem:[%s8329_s5 + $0x270] sm:$0xff] }
 0x568   :  { %4099 = vst [vmem:[#allocation1 + $0x31] ss:$2 sm:$0xff] %v4067_v14  ;;  %v4154_v3 = vld [vmem:[#allocation3 + $0xb1] ss:$2 sm:$0xf]  ;;  %4127 = vmatpush.msra.mxu1 %v5984_v52  ;;  %5970 = vmatmul.msk.f32.gmra.mxu3 %vm3408_vm4, %v7789_v7  ;;  %v6021_v31 = vld [vmem:[%s8329_s5 + $0x1c8] sm:$0xff] }
 0x569   :  { %v7946_v36 = vld.sshfl [vmem:[#allocation1] sm:$0xff pattern:$0x75316420]  ;;  %5981 = vmatmul.msk.f32.gmra.mxu0 %vm3408_vm4, %v7813_v21  ;;  %v4156_v24 = vld [vmem:[#allocation3 + $0xd1] ss:$2 sm:$0xf]  ;;  %4585 = vmatpush.msrb.mxu2 %v6051_v49 }
 0x56a   :  { %4178 = vst [vmem:[#allocation1] ss:$2 sm:$0xff] %v4146_v43  ;;  %v4239_v20 = vld [vmem:[#allocation3 + $0x12] ss:$2 sm:$0xf]  ;;  %4404 = vmatpush.msrb.mxu0 %v6022_v59  ;;  %v6037_v44 = vld [vmem:[%s8329_s5 + $0x228] sm:$0xff]  ;;  %5959 = vmatmul.msk.f32.gmra.mxu2 %vm3408_vm4, %v7780_v5 }
 0x56b   :  { %v7966_v26 = vld.sshfl [vmem:[#allocation1 + $0x10] sm:$0xff pattern:$0x75316420]  ;;  %4180 = vst [vmem:[#allocation1 + $0x1] ss:$2 sm:$0xff] %v4148_v23  ;;  %v6008_v21 = vld [vmem:[%s8329_s5 + $0x180] sm:$0xff]  ;;  %4586 = vmatpush.msrb.mxu2 %v6050_v40  ;;  %5955 = vmatmul.msk.f32.gmra.mxu1 %vm3408_vm4, %v7772_v27 }
 0x56c   :  { %4182 = vst [vmem:[#allocation1 + $0x10] ss:$2 sm:$0xff] %v4150_v30  ;;  %v4241_v1 = vld [vmem:[#allocation3 + $0x32] ss:$2 sm:$0xf]  ;;  %4313 = vmatpush.msra.mxu3 %v6008_v21  ;;  %v6062_v58 = vld [vmem:[%s8329_s5 + $0x2b0] sm:$0xff]  ;;  %4405 = vmatpush.msrb.mxu0 %v6021_v31 }
 0x56d   :  { %v7979_v53 = vld.sshfl [vmem:[#allocation1 + $0x20] sm:$0xff pattern:$0x75316420]  ;;  %4184 = vst [vmem:[#allocation1 + $0x11] ss:$2 sm:$0xff] %v4152_v17  ;;  %v6063_v47 = vld [vmem:[%s8329_s5 + $0x2b8] sm:$0xff] }
 0x56e   :  { %4186 = vst [vmem:[#allocation1 + $0x20] ss:$2 sm:$0xff] %v4154_v3  ;;  %v6039_v39 = vld [vmem:[%s8329_s5 + $0x238] sm:$0xff]  ;;  %4678 = vmatpush.msrb.mxu3 %v6063_v47  ;;  %v6020_v46 = vld [vmem:[%s8329_s5 + $0x1c0] sm:$0xff]  ;;  %v6049_v56 = vld [vmem:[%s8329_s5 + $0x268] sm:$0xff] }
 0x56f   :  { %4188 = vst [vmem:[#allocation1 + $0x21] ss:$2 sm:$0xff] %v4156_v24  ;;  %v4243_v7 = vld [vmem:[#allocation3 + $0x52] ss:$2 sm:$0xf]  ;;  %4492 = vmatpush.msrb.mxu1 %v6039_v39  ;;  %v6061_v27 = vld [vmem:[%s8329_s5 + $0x2a8] sm:$0xff]  ;;  %4406 = vmatpush.msrb.mxu0 %v6020_v46 }
 0x570   :  { %v8027_v60 = vld.sshfl [vmem:[#allocation1 + $0x30] sm:$0xff pattern:$0x75316420]  ;;  %v4160_v19 = vld [vmem:[#allocation3 + $0x111] ss:$2 sm:$0xf]  ;;  %5971 = vmatmul.msk.f32.gmra.mxu3 %vm3408_vm4, %v7794_v16  ;;  %4587 = vmatpush.msrb.mxu2 %v6049_v56 }
 0x571   :  { %5982 = vmatmul.msk.f32.gmra.mxu0 %vm3408_vm4, %v7818_v51  ;;  %v4158_v51 = vld [vmem:[#allocation3 + $0xf1] ss:$2 sm:$0xf]  ;;  %v4245_v15 = vld [vmem:[#allocation3 + $0x72] ss:$2 sm:$0xf]  ;;  %4493 = vmatpush.msrb.mxu1 %v6038_v61 }
 0x572   :  { %v8016_v42 = vld.sshfl [vmem:[#allocation1] sm:$0xff pattern:$0x75316420]  ;;  %4190 = vst [vmem:[#allocation1 + $0x30] ss:$2 sm:$0xff] %v4158_v51  ;;  %4679 = vmatpush.msrb.mxu3 %v6062_v58  ;;  %v6075_v25 = vld [vmem:[%s8329_s5 + $0x2f8] sm:$0xff] }
 0x573   :  { %4271 = vst [vmem:[#allocation1] ss:$2 sm:$0xff] %v4239_v20  ;;  %v4247_v33 = vld [vmem:[#allocation3 + $0xb2] ss:$2 sm:$0xf]  ;;  %4494 = vmatpush.msrb.mxu1 %v6037_v44  ;;  %v6074_v13 = vld [vmem:[%s8329_s5 + $0x2f0] sm:$0xff]  ;;  %4771 = vmatpush.msra.mxu0 %v6075_v25 }
 0x574   :  { %4273 = vst [vmem:[#allocation1 + $0x1] ss:$2 sm:$0xff] %v4241_v1  ;;  %v8029_v14 = vld.sshfl [vmem:[#allocation1 + $0x10] sm:$0xff pattern:$0x75316420]  ;;  %v6036_v37 = vld [vmem:[%s8329_s5 + $0x220] sm:$0xff]  ;;  %4680 = vmatpush.msrb.mxu3 %v6061_v27  ;;  %6004 = vmatmul.msk.f32.vlgmr.msra.gmra.mxu2 %vm3408_vm4, %v8016_v42 }
 0x575   :  { %4275 = vst [vmem:[#allocation1 + $0x10] ss:$2 sm:$0xff] %v4243_v7  ;;  %v4249_v57 = vld [vmem:[#allocation3 + $0xd2] ss:$2 sm:$0xf]  ;;  %4495 = vmatpush.msrb.mxu1 %v6036_v37  ;;  %v6034_v50 = vld [vmem:[%s8329_s5 + $0x210] sm:$0xff]  ;;  %4772 = vmatpush.msra.mxu0 %v6074_v13 }
 0x576   :  { %4277 = vst [vmem:[#allocation1 + $0x11] ss:$2 sm:$0xff] %v4245_v15  ;;  %v8050_v5 = vld.sshfl [vmem:[#allocation1 + $0x20] sm:$0xff pattern:$0x75316420]  ;;  %v6035_v10 = vld [vmem:[%s8329_s5 + $0x218] sm:$0xff]  ;;  %5992 = vmatmul.msk.f32.vlgmr.msra.gmra.mxu1 %vm3408_vm4, %v7946_v36 }
 0x577   :  { %4192 = vst [vmem:[#allocation1 + $0x31] ss:$2 sm:$0xff] %v4160_v19  ;;  %v4332_v55 = vld [vmem:[#allocation3 + $0x13] ss:$2 sm:$0xf]  ;;  %4496 = vmatpush.msrb.mxu1 %v6035_v10  ;;  %v6033_v28 = vld [vmem:[%s8329_s5 + $0x208] sm:$0xff] }
 0x578   :  { %4279 = vst [vmem:[#allocation1 + $0x20] ss:$2 sm:$0xff] %v4247_v33  ;;  %v6048_v16 = vld [vmem:[%s8329_s5 + $0x260] sm:$0xff]  ;;  %v6059_v23 = vld [vmem:[%s8329_s5 + $0x298] sm:$0xff]  ;;  %v6073_v36 = vld [vmem:[%s8329_s5 + $0x2e8] sm:$0xff] }
 0x579   :  { %5983 = vmatmul.msk.f32.gmra.mxu0 %vm3408_vm4, %v7826_v4  ;;  %4281 = vst [vmem:[#allocation1 + $0x21] ss:$2 sm:$0xff] %v4249_v57  ;;  %v4334_v8 = vld [vmem:[#allocation3 + $0x33] ss:$2 sm:$0xf]  ;;  %4588 = vmatpush.msrb.mxu2 %v6048_v16  ;;  %v6046_v12 = vld [vmem:[%s8329_s5 + $0x250] sm:$0xff] }
 0x57a   :  { %v6060_v9 = vld [vmem:[%s8329_s5 + $0x2a0] sm:$0xff]  ;;  %v6047_v4 = vld [vmem:[%s8329_s5 + $0x258] sm:$0xff]  ;;  %4497 = vmatpush.msrb.mxu1 %v6034_v50  ;;  %v6058_v11 = vld [vmem:[%s8329_s5 + $0x290] sm:$0xff]  ;;  %4773 = vmatpush.msra.mxu0 %v6073_v36 }
 0x57b   :  { %v4286_v29 = vld.sshfl [vmem:[#allocation1] sm:$0xff pattern:$0x75316420]  ;;  %4681 = vmatpush.msrb.mxu3 %v6060_v9  ;;  %4589 = vmatpush.msrb.mxu2 %v6047_v4  ;;  %v4425_v17 = vld [vmem:[#allocation3 + $0x20] ss:$2 sm:$0xf] }
 0x57c   :  { %4364 = vst [vmem:[#allocation1] ss:$2 sm:$0xff] %v4332_v55  ;;  %v4336_v48 = vld [vmem:[#allocation3 + $0x53] ss:$2 sm:$0xf]  ;;  %6016 = vmatmul.msk.f32.vlgmr.msra.gmra.mxu3 %vm3408_vm4, %v4286_v29  ;;  %4498 = vmatpush.msrb.mxu1 %v6033_v28  ;;  %v6045_v62 = vld [vmem:[%s8329_s5 + $0x248] sm:$0xff] }
 0x57d   :  { %v4251_v34 = vld [vmem:[#allocation3 + $0xf2] ss:$2 sm:$0xf]  ;;  %v4287_v38 = vld.sshfl [vmem:[#allocation1 + $0x10] sm:$0xff pattern:$0x75316420]  ;;  %4682 = vmatpush.msrb.mxu3 %v6059_v23  ;;  %4590 = vmatpush.msrb.mxu2 %v6046_v12 }
 0x57e   :  { %4366 = vst [vmem:[#allocation1 + $0x1] ss:$2 sm:$0xff] %v4334_v8  ;;  %v4253_v18 = vld [vmem:[#allocation3 + $0x112] ss:$2 sm:$0xf]  ;;  %6005 = vmatmul.msk.f32.gmra.mxu2 %vm3408_vm4, %v8029_v14  ;;  %5993 = vmatmul.msk.f32.gmra.mxu1 %vm3408_vm4, %v7966_v26  ;;  %v6057_v49 = vld [vmem:[%s8329_s5 + $0x288] sm:$0xff] }
 0x57f   :  { %v4338_v35 = vld [vmem:[#allocation3 + $0x73] ss:$2 sm:$0xf]  ;;  %4368 = vst [vmem:[#allocation1 + $0x10] ss:$2 sm:$0xff] %v4336_v48  ;;  %4683 = vmatpush.msrb.mxu3 %v6058_v11  ;;  %4591 = vmatpush.msrb.mxu2 %v6045_v62  ;;  %v6070_v26 = vld [vmem:[%s8329_s5 + $0x2d0] sm:$0xff] }
 0x580   :  { %v6032_v43 = vld [vmem:[%s8329_s5 + $0x200] sm:$0xff]  ;;  %v8093_v6 = vld.sshfl [vmem:[#allocation1 + $0x30] sm:$0xff pattern:$0x75316420]  ;;  %4370 = vst [vmem:[#allocation1 + $0x11] ss:$2 sm:$0xff] %v4338_v35 }
 0x581   :  { %v4340_v45 = vld [vmem:[#allocation3 + $0xb3] ss:$2 sm:$0xf]  ;;  %4283 = vst [vmem:[#allocation1 + $0x30] ss:$2 sm:$0xff] %v4251_v34  ;;  %4499 = vmatpush.msrb.mxu1 %v6032_v43  ;;  %4684 = vmatpush.msrb.mxu3 %v6057_v49  ;;  %v6069_v19 = vld [vmem:[%s8329_s5 + $0x2c8] sm:$0xff] }
 0x582   :  { %4285 = vst [vmem:[#allocation1 + $0x31] ss:$2 sm:$0xff] %v4253_v18  ;;  %v4288_v30 = vld.sshfl [vmem:[#allocation1 + $0x20] sm:$0xff pattern:$0x75316420]  ;;  %v6071_v20 = vld [vmem:[%s8329_s5 + $0x2d8] sm:$0xff] }
 0x583   :  { %v6072_v63 = vld [vmem:[%s8329_s5 + $0x2e0] sm:$0xff]  ;;  %4372 = vst [vmem:[#allocation1 + $0x20] ss:$2 sm:$0xff] %v4340_v45  ;;  %v4427_v2 = vld [vmem:[#allocation3 + $0x40] ss:$2 sm:$0xf] }
 0x584   :  { %v4342_v41 = vld [vmem:[#allocation3 + $0xd3] ss:$2 sm:$0xf]  ;;  %4774 = vmatpush.msra.mxu0 %v6072_v63  ;;  %v4429_v24 = vld [vmem:[#allocation3 + $0x60] ss:$2 sm:$0xf]  ;;  %6017 = vmatmul.msk.f32.gmra.mxu3 %vm3408_vm4, %v4287_v38 }
 0x585   :  { %4374 = vst [vmem:[#allocation1 + $0x21] ss:$2 sm:$0xff] %v4342_v41  ;;  %v4379_v3 = vld.sshfl [vmem:[#allocation1] sm:$0xff pattern:$0x75316420]  ;;  %v6099_v1 = vld [vmem:[%s8329_s5 + $0x378] sm:$0xff] }
 0x586   :  { %v6044_v32 = vld [vmem:[%s8329_s5 + $0x240] sm:$0xff]  ;;  %6028 = vmatmul.msk.f32.vlgmr.msrb.gmra.mxu0 %vm3408_vm4, %v4379_v3  ;;  %4457 = vst [vmem:[#allocation1] ss:$2 sm:$0xff] %v4425_v17  ;;  %v4431_v52 = vld [vmem:[#allocation3 + $0x80] ss:$2 sm:$0xf]  ;;  %6006 = vmatmul.msk.f32.gmra.mxu2 %vm3408_vm4, %v8050_v5 }
 0x587   :  { %v4380_v22 = vld.sshfl [vmem:[#allocation1 + $0x10] sm:$0xff pattern:$0x75316420]  ;;  %4459 = vst [vmem:[#allocation1 + $0x1] ss:$2 sm:$0xff] %v4427_v2  ;;  %4592 = vmatpush.msrb.mxu2 %v6044_v32  ;;  %v6056_v54 = vld [vmem:[%s8329_s5 + $0x280] sm:$0xff]  ;;  %4775 = vmatpush.msra.mxu0 %v6071_v20 }
 0x588   :  { %v4344_v0 = vld [vmem:[#allocation3 + $0xf3] ss:$2 sm:$0xf]  ;;  %4461 = vst [vmem:[#allocation1 + $0x10] ss:$2 sm:$0xff] %v4429_v24  ;;  %4685 = vmatpush.msrb.mxu3 %v6056_v54  ;;  %5994 = vmatmul.msk.f32.gmra.mxu1 %vm3408_vm4, %v7979_v53  ;;  %v6098_v46 = vld [vmem:[%s8329_s5 + $0x370] sm:$0xff] }
 0x589   :  { %v8132_v21 = vld.sshfl [vmem:[#allocation1 + $0x30] sm:$0xff pattern:$0x75316420]  ;;  %4463 = vst [vmem:[#allocation1 + $0x11] ss:$2 sm:$0xff] %v4431_v52  ;;  %4776 = vmatpush.msra.mxu0 %v6070_v26  ;;  %4957 = vmatpush.msra.mxu2 %v6099_v1  ;;  %v6111_v44 = vld [vmem:[%s8329_s5 + $0x3b8] sm:$0xff] }
 0x58a   :  { %v4346_v47 = vld [vmem:[#allocation3 + $0x113] ss:$2 sm:$0xf]  ;;  %4376 = vst [vmem:[#allocation1 + $0x30] ss:$2 sm:$0xff] %v4344_v0  ;;  %5050 = vmatpush.msra.mxu3 %v6111_v44  ;;  %v6086_v58 = vld [vmem:[%s8329_s5 + $0x330] sm:$0xff] }
 0x58b   :  { %4378 = vst [vmem:[#allocation1 + $0x31] ss:$2 sm:$0xff] %v4346_v47  ;;  %v4518_v7 = vld [vmem:[#allocation3 + $0x21] ss:$2 sm:$0xf]  ;;  %4777 = vmatpush.msra.mxu0 %v6069_v19  ;;  %v6087_v53 = vld [vmem:[%s8329_s5 + $0x338] sm:$0xff]  ;;  %4958 = vmatpush.msra.mxu2 %v6098_v46 }
 0x58c   :  { %v4381_v39 = vld.sshfl [vmem:[#allocation1 + $0x20] sm:$0xff pattern:$0x75316420]  ;;  %v4433_v42 = vld [vmem:[#allocation3 + $0xc0] ss:$2 sm:$0xf]  ;;  %6018 = vmatmul.msk.f32.gmra.mxu3 %vm3408_vm4, %v4288_v30  ;;  %4864 = vmatpush.msra.mxu1 %v6087_v53 }
 0x58d   :  { %v4520_v59 = vld [vmem:[#allocation3 + $0x41] ss:$2 sm:$0xf]  ;;  %v4435_v40 = vld [vmem:[#allocation3 + $0xe0] ss:$2 sm:$0xf] }
 0x58e   :  { %4465 = vst [vmem:[#allocation1 + $0x20] ss:$2 sm:$0xff] %v4433_v42  ;;  %6029 = vmatmul.msk.f32.gmra.mxu0 %vm3408_vm4, %v4380_v22  ;;  %v8141_v61 = vld.sshfl [vmem:[#allocation1] sm:$0xff pattern:$0x75316420]  ;;  %v6110_v56 = vld [vmem:[%s8329_s5 + $0x3b0] sm:$0xff]  ;;  %4865 = vmatpush.msra.mxu1 %v6086_v58 }
 0x58f   :  { %4467 = vst [vmem:[#allocation1 + $0x21] ss:$2 sm:$0xff] %v4435_v40  ;;  %v4522_v51 = vld [vmem:[#allocation3 + $0x61] ss:$2 sm:$0xf]  ;;  %v6068_v57 = vld [vmem:[%s8329_s5 + $0x2c0] sm:$0xff]  ;;  %5051 = vmatpush.msra.mxu3 %v6110_v56  ;;  %6007 = vmatmul.msk.f32.gmra.mxu2 %vm3408_vm4, %v8093_v6 }
 0x590   :  { %4550 = vst [vmem:[#allocation1] ss:$2 sm:$0xff] %v4518_v7  ;;  %v4439_v14 = vld [vmem:[#allocation3 + $0x120] ss:$2 sm:$0xf]  ;;  %4778 = vmatpush.msra.mxu0 %v6068_v57  ;;  %v6084_v16 = vld [vmem:[%s8329_s5 + $0x320] sm:$0xff]  ;;  %5995 = vmatmul.msk.f32.gmra.mxu1 %vm3408_vm4, %v8027_v60 }
 0x591   :  { %v8147_v31 = vld.sshfl [vmem:[#allocation1 + $0x10] sm:$0xff pattern:$0x75316420]  ;;  %4552 = vst [vmem:[#allocation1 + $0x1] ss:$2 sm:$0xff] %v4520_v59  ;;  %v6085_v27 = vld [vmem:[%s8329_s5 + $0x328] sm:$0xff] }
 0x592   :  { %v4524_v15 = vld [vmem:[#allocation3 + $0x81] ss:$2 sm:$0xf]  ;;  %4554 = vst [vmem:[#allocation1 + $0x10] ss:$2 sm:$0xff] %v4522_v51  ;;  %4866 = vmatpush.msra.mxu1 %v6085_v27  ;;  %v6123_v4 = vld [vmem:[%s8329_s5 + $0x3f8] sm:$0xff] }
 0x593   :  { %v4382_v33 = vld.sshfl [vmem:[#allocation1 + $0x30] sm:$0xff pattern:$0x75316420]  ;;  %4556 = vst [vmem:[#allocation1 + $0x11] ss:$2 sm:$0xff] %v4524_v15  ;;  %v6097_v55 = vld [vmem:[%s8329_s5 + $0x368] sm:$0xff]  ;;  %5143 = vmatpush.msrb.mxu0 %v6123_v4 }
 0x594   :  { %4471 = vst [vmem:[#allocation1 + $0x31] ss:$2 sm:$0xff] %v4439_v14  ;;  %v4611_v37 = vld [vmem:[#allocation3 + $0x22] ss:$2 sm:$0xf]  ;;  %4959 = vmatpush.msra.mxu2 %v6097_v55  ;;  %6019 = vmatmul.msk.f32.gmra.mxu3 %vm3408_vm4, %v8132_v21  ;;  %v6083_v60 = vld [vmem:[%s8329_s5 + $0x318] sm:$0xff] }
 0x595   :  { %v4613_v25 = vld [vmem:[#allocation3 + $0x42] ss:$2 sm:$0xf]  ;;  %v4526_v9 = vld [vmem:[#allocation3 + $0xc1] ss:$2 sm:$0xf]  ;;  %4867 = vmatpush.msra.mxu1 %v6084_v16 }
 0x596   :  { %v8171_v5 = vld.sshfl [vmem:[#allocation1 + $0x20] sm:$0xff pattern:$0x75316420]  ;;  %6030 = vmatmul.msk.f32.gmra.mxu0 %vm3408_vm4, %v4381_v39  ;;  %v4437_v8 = vld [vmem:[#allocation3 + $0x100] ss:$2 sm:$0xf] }
 0x597   :  { %4469 = vst [vmem:[#allocation1 + $0x30] ss:$2 sm:$0xff] %v4437_v8  ;;  %v6109_v29 = vld [vmem:[%s8329_s5 + $0x3a8] sm:$0xff]  ;;  %4868 = vmatpush.msra.mxu1 %v6083_v60  ;;  %v6096_v38 = vld [vmem:[%s8329_s5 + $0x360] sm:$0xff]  ;;  %v6082_v18 = vld [vmem:[%s8329_s5 + $0x310] sm:$0xff] }
 0x598   :  { %v4565_v10 = vld.sshfl [vmem:[#allocation1] sm:$0xff pattern:$0x75316420]  ;;  %v4528_v48 = vld [vmem:[#allocation3 + $0xe1] ss:$2 sm:$0xf]  ;;  %5052 = vmatpush.msra.mxu3 %v6109_v29  ;;  %4960 = vmatpush.msra.mxu2 %v6096_v38 }
 0x599   :  { %4643 = vst [vmem:[#allocation1] ss:$2 sm:$0xff] %v4611_v37  ;;  %v4615_v34 = vld [vmem:[#allocation3 + $0x62] ss:$2 sm:$0xf]  ;;  %4869 = vmatpush.msra.mxu1 %v6082_v18  ;;  %v6108_v35 = vld [vmem:[%s8329_s5 + $0x3a0] sm:$0xff]  ;;  %6052 = vmatmul.msk.f32.vlgmr.msrb.gmra.mxu2 %vm3408_vm4, %v4565_v10 }
 0x59a   :  { %v4566_v13 = vld.sshfl [vmem:[#allocation1 + $0x10] sm:$0xff pattern:$0x75316420]  ;;  %4645 = vst [vmem:[#allocation1 + $0x1] ss:$2 sm:$0xff] %v4613_v25  ;;  %5053 = vmatpush.msra.mxu3 %v6108_v35  ;;  %v6081_v36 = vld [vmem:[%s8329_s5 + $0x308] sm:$0xff]  ;;  %6040 = vmatmul.msk.f32.vlgmr.msrb.gmra.mxu1 %vm3408_vm4, %v8141_v61 }
 0x59b   :  { %4558 = vst [vmem:[#allocation1 + $0x20] ss:$2 sm:$0xff] %v4526_v9  ;;  %v4617_v50 = vld [vmem:[#allocation3 + $0x82] ss:$2 sm:$0xf]  ;;  %v6095_v12 = vld [vmem:[%s8329_s5 + $0x358] sm:$0xff]  ;;  %4870 = vmatpush.msra.mxu1 %v6081_v36 }
 0x59c   :  { %4560 = vst [vmem:[#allocation1 + $0x21] ss:$2 sm:$0xff] %v4528_v48  ;;  %v4532_v28 = vld [vmem:[#allocation3 + $0x121] ss:$2 sm:$0xf]  ;;  %v6122_v45 = vld [vmem:[%s8329_s5 + $0x3f0] sm:$0xff]  ;;  %4961 = vmatpush.msra.mxu2 %v6095_v12 }
 0x59d   :  { %4647 = vst [vmem:[#allocation1 + $0x10] ss:$2 sm:$0xff] %v4615_v34  ;;  %v4704_v6 = vld [vmem:[#allocation3 + $0x23] ss:$2 sm:$0xf]  ;;  %5144 = vmatpush.msrb.mxu0 %v6122_v45  ;;  %v6080_v30 = vld [vmem:[%s8329_s5 + $0x300] sm:$0xff] }
 0x59e   :  { %4649 = vst [vmem:[#allocation1 + $0x11] ss:$2 sm:$0xff] %v4617_v50  ;;  %6031 = vmatmul.msk.f32.gmra.mxu0 %vm3408_vm4, %v4382_v33  ;;  %v8208_v43 = vld.sshfl [vmem:[#allocation1 + $0x30] sm:$0xff pattern:$0x75316420]  ;;  %v6107_v63 = vld [vmem:[%s8329_s5 + $0x398] sm:$0xff]  ;;  %4871 = vmatpush.msra.mxu1 %v6080_v30 }
 0x59f   :  { %4564 = vst [vmem:[#allocation1 + $0x31] ss:$2 sm:$0xff] %v4532_v28  ;;  %v4706_v23 = vld [vmem:[#allocation3 + $0x43] ss:$2 sm:$0xf]  ;;  %5054 = vmatpush.msra.mxu3 %v6107_v63  ;;  %v6120_v22 = vld [vmem:[%s8329_s5 + $0x3e0] sm:$0xff] }
 0x5a0   :  { %v4530_v17 = vld [vmem:[#allocation3 + $0x101] ss:$2 sm:$0xf]  ;;  %v6094_v2 = vld [vmem:[%s8329_s5 + $0x350] sm:$0xff]  ;;  %v6092_v54 = vld [vmem:[%s8329_s5 + $0x340] sm:$0xff] }
 0x5a1   :  { %v4658_v11 = vld.sshfl [vmem:[#allocation1] sm:$0xff pattern:$0x75316420]  ;;  %v6121_v62 = vld [vmem:[%s8329_s5 + $0x3e8] sm:$0xff]  ;;  %4562 = vst [vmem:[#allocation1 + $0x30] ss:$2 sm:$0xff] %v4530_v17  ;;  %4962 = vmatpush.msra.mxu2 %v6094_v2 }
 0x5a2   :  { %6064 = vmatmul.msk.f32.vlgmr.msrb.gmra.mxu3 %vm3408_vm4, %v4658_v11  ;;  %4736 = vst [vmem:[#allocation1] ss:$2 sm:$0xff] %v4704_v6  ;;  %5145 = vmatpush.msrb.mxu0 %v6121_v62  ;;  %v6106_v3 = vld [vmem:[%s8329_s5 + $0x390] sm:$0xff]  ;;  %v6093_v49 = vld [vmem:[%s8329_s5 + $0x348] sm:$0xff]  ;;  %v6119_v59 = vld [vmem:[%s8329_s5 + $0x3d8] sm:$0xff] }
 0x5a3   :  { %v4567_v41 = vld.sshfl [vmem:[#allocation1 + $0x20] sm:$0xff pattern:$0x75316420]  ;;  %4738 = vst [vmem:[#allocation1 + $0x1] ss:$2 sm:$0xff] %v4706_v23  ;;  %5055 = vmatpush.msra.mxu3 %v6106_v3  ;;  %6053 = vmatmul.msk.f32.gmra.mxu2 %vm3408_vm4, %v4566_v13  ;;  %v6105_v1 = vld [vmem:[%s8329_s5 + $0x388] sm:$0xff] }
 0x5a4   :  { %v4619_v24 = vld [vmem:[#allocation3 + $0xc2] ss:$2 sm:$0xf]  ;;  %v4708_v0 = vld [vmem:[#allocation3 + $0x63] ss:$2 sm:$0xf]  ;;  %5146 = vmatpush.msrb.mxu0 %v6120_v22  ;;  %6041 = vmatmul.msk.f32.gmra.mxu1 %vm3408_vm4, %v8147_v31 }
 0x5a5   :  { %v4659_v32 = vld.sshfl [vmem:[#allocation1 + $0x10] sm:$0xff pattern:$0x75316420]  ;;  %4651 = vst [vmem:[#allocation1 + $0x20] ss:$2 sm:$0xff] %v4619_v24  ;;  %4963 = vmatpush.msra.mxu2 %v6093_v49  ;;  %5056 = vmatpush.msra.mxu3 %v6105_v1  ;;  %v6104_v61 = vld [vmem:[%s8329_s5 + $0x380] sm:$0xff] }
 0x5a6   :  { %v4621_v52 = vld [vmem:[#allocation3 + $0xe2] ss:$2 sm:$0xf]  ;;  %v4710_v20 = vld [vmem:[#allocation3 + $0x83] ss:$2 sm:$0xf]  ;;  %5147 = vmatpush.msrb.mxu0 %v6119_v59 }
 0x5a7   :  { %4653 = vst [vmem:[#allocation1 + $0x21] ss:$2 sm:$0xff] %v4621_v52  ;;  %v4625_v21 = vld [vmem:[#allocation3 + $0x122] ss:$2 sm:$0xf]  ;;  %4964 = vmatpush.msra.mxu2 %v6092_v54  ;;  %5057 = vmatpush.msra.mxu3 %v6104_v61  ;;  %v6116_v53 = vld [vmem:[%s8329_s5 + $0x3c0] sm:$0xff] }
 0x5a8   :  { %4740 = vst [vmem:[#allocation1 + $0x10] ss:$2 sm:$0xff] %v4708_v0  ;;  %v4797_v26 = vld [vmem:[#allocation3 + $0x30] ss:$2 sm:$0xf]  ;;  %v6118_v14 = vld [vmem:[%s8329_s5 + $0x3d0] sm:$0xff] }
 0x5a9   :  { %4742 = vst [vmem:[#allocation1 + $0x11] ss:$2 sm:$0xff] %v4710_v20  ;;  %v4799_v39 = vld [vmem:[#allocation3 + $0x50] ss:$2 sm:$0xf]  ;;  %5148 = vmatpush.msrb.mxu0 %v6118_v14  ;;  %v6117_v33 = vld [vmem:[%s8329_s5 + $0x3c8] sm:$0xff] }
 0x5aa   :  { %6065 = vmatmul.msk.f32.gmra.mxu3 %vm3408_vm4, %v4659_v32  ;;  %v4751_v47 = vld.sshfl [vmem:[#allocation1] sm:$0xff pattern:$0x75316420]  ;;  %v4568_v7 = vld.sshfl [vmem:[#allocation1 + $0x30] sm:$0xff pattern:$0x75316420] }
 0x5ab   :  { %6076 = vmatmul.msk.f32.vlgmr.msra.gmra.mxu0 %vm3408_vm4, %v4751_v47  ;;  %4829 = vst [vmem:[#allocation1] ss:$2 sm:$0xff] %v4797_v26  ;;  %v4623_v42 = vld [vmem:[#allocation3 + $0x102] ss:$2 sm:$0xf]  ;;  %6054 = vmatmul.msk.f32.gmra.mxu2 %vm3408_vm4, %v4567_v41 }
 0x5ac   :  { %4657 = vst [vmem:[#allocation1 + $0x31] ss:$2 sm:$0xff] %v4625_v21  ;;  %v4712_v40 = vld [vmem:[#allocation3 + $0xc3] ss:$2 sm:$0xf]  ;;  %6042 = vmatmul.msk.f32.gmra.mxu1 %vm3408_vm4, %v8171_v5  ;;  %5149 = vmatpush.msrb.mxu0 %v6117_v33 }
 0x5ad   :  { %4831 = vst [vmem:[#allocation1 + $0x1] ss:$2 sm:$0xff] %v4799_v39  ;;  %v4714_v51 = vld [vmem:[#allocation3 + $0xe3] ss:$2 sm:$0xf] }
 0x5ae   :  { %v4660_v31 = vld.sshfl [vmem:[#allocation1 + $0x20] sm:$0xff pattern:$0x75316420]  ;;  %4655 = vst [vmem:[#allocation1 + $0x30] ss:$2 sm:$0xff] %v4623_v42  ;;  %5150 = vmatpush.msrb.mxu0 %v6116_v53 }
 0x5af   :  { %4744 = vst [vmem:[#allocation1 + $0x20] ss:$2 sm:$0xff] %v4712_v40  ;;  %v4801_v19 = vld [vmem:[#allocation3 + $0x70] ss:$2 sm:$0xf] }
 0x5b0   :  { %v4752_v15 = vld.sshfl [vmem:[#allocation1 + $0x10] sm:$0xff pattern:$0x75316420]  ;;  %4746 = vst [vmem:[#allocation1 + $0x21] ss:$2 sm:$0xff] %v4714_v51 }
 0x5b1   :  { %v4803_v44 = vld [vmem:[#allocation3 + $0x90] ss:$2 sm:$0xf]  ;;  %4833 = vst [vmem:[#allocation1 + $0x10] ss:$2 sm:$0xff] %v4801_v19 }
 0x5b2   :  { %6066 = vmatmul.msk.f32.gmra.mxu3 %vm3408_vm4, %v4660_v31  ;;  %4835 = vst [vmem:[#allocation1 + $0x11] ss:$2 sm:$0xff] %v4803_v44  ;;  %v4718_v46 = vld [vmem:[#allocation3 + $0x123] ss:$2 sm:$0xf] }
 0x5b3   :  { %6077 = vmatmul.msk.f32.gmra.mxu0 %vm3408_vm4, %v4752_v15  ;;  %v4890_v58 = vld [vmem:[#allocation3 + $0x31] ss:$2 sm:$0xf]  ;;  %v4716_v37 = vld [vmem:[#allocation3 + $0x103] ss:$2 sm:$0xf]  ;;  %6055 = vmatmul.msk.f32.gmra.mxu2 %vm3408_vm4, %v4568_v7 }
 0x5b4   :  { %v4844_v57 = vld.sshfl [vmem:[#allocation1] sm:$0xff pattern:$0x75316420]  ;;  %v4892_v56 = vld [vmem:[#allocation3 + $0x51] ss:$2 sm:$0xf]  ;;  %6043 = vmatmul.msk.f32.gmra.mxu1 %vm3408_vm4, %v8208_v43 }
 0x5b5   :  { %v4661_v5 = vld.sshfl [vmem:[#allocation1 + $0x30] sm:$0xff pattern:$0x75316420]  ;;  %4922 = vst [vmem:[#allocation1] ss:$2 sm:$0xff] %v4890_v58 }
 0x5b6   :  { %4750 = vst [vmem:[#allocation1 + $0x31] ss:$2 sm:$0xff] %v4718_v46  ;;  %v4805_v27 = vld [vmem:[#allocation3 + $0xd0] ss:$2 sm:$0xf] }
 0x5b7   :  { %v4753_v55 = vld.sshfl [vmem:[#allocation1 + $0x20] sm:$0xff pattern:$0x75316420]  ;;  %4924 = vst [vmem:[#allocation1 + $0x1] ss:$2 sm:$0xff] %v4892_v56 }
 0x5b8   :  { %v4807_v25 = vld [vmem:[#allocation3 + $0xf0] ss:$2 sm:$0xf]  ;;  %4748 = vst [vmem:[#allocation1 + $0x30] ss:$2 sm:$0xff] %v4716_v37 }
 0x5b9   :  { %v4894_v16 = vld [vmem:[#allocation3 + $0x71] ss:$2 sm:$0xf]  ;;  %v4845_v8 = vld.sshfl [vmem:[#allocation1 + $0x10] sm:$0xff pattern:$0x75316420] }
 0x5ba   :  { %4837 = vst [vmem:[#allocation1 + $0x20] ss:$2 sm:$0xff] %v4805_v27  ;;  %6067 = vmatmul.msk.f32.gmra.mxu3 %vm3408_vm4, %v4661_v5  ;;  %v4896_v10 = vld [vmem:[#allocation3 + $0x91] ss:$2 sm:$0xf] }
 0x5bb   :  { %4839 = vst [vmem:[#allocation1 + $0x21] ss:$2 sm:$0xff] %v4807_v25  ;;  %6078 = vmatmul.msk.f32.gmra.mxu0 %vm3408_vm4, %v4753_v55  ;;  %v4983_v9 = vld [vmem:[#allocation3 + $0x32] ss:$2 sm:$0xf] }
 0x5bc   :  { %4926 = vst [vmem:[#allocation1 + $0x10] ss:$2 sm:$0xff] %v4894_v16  ;;  %v4985_v29 = vld [vmem:[#allocation3 + $0x52] ss:$2 sm:$0xf]  ;;  %6088 = vmatmul.msk.f32.vlgmr.msra.gmra.mxu1 %vm3408_vm4, %v4844_v57 }
 0x5bd   :  { %4928 = vst [vmem:[#allocation1 + $0x11] ss:$2 sm:$0xff] %v4896_v10  ;;  %v4809_v4 = vld [vmem:[#allocation3 + $0x110] ss:$2 sm:$0xf] }
 0x5be   :  { %v4937_v13 = vld.sshfl [vmem:[#allocation1] sm:$0xff pattern:$0x75316420]  ;;  %v4811_v48 = vld [vmem:[#allocation3 + $0x130] ss:$2 sm:$0xf] }
 0x5bf   :  { %v4754_v60 = vld.sshfl [vmem:[#allocation1 + $0x30] sm:$0xff pattern:$0x75316420]  ;;  %5015 = vst [vmem:[#allocation1] ss:$2 sm:$0xff] %v4983_v9  ;;  %6100 = vmatmul.msk.f32.vlgmr.msra.gmra.mxu2 %vm3408_vm4, %v4937_v13 }
 0x5c0   :  { %5017 = vst [vmem:[#allocation1 + $0x1] ss:$2 sm:$0xff] %v4985_v29  ;;  %v4898_v34 = vld [vmem:[#allocation3 + $0xd1] ss:$2 sm:$0xf] }
 0x5c1   :  { %4841 = vst [vmem:[#allocation1 + $0x30] ss:$2 sm:$0xff] %v4809_v4  ;;  %v4900_v50 = vld [vmem:[#allocation3 + $0xf1] ss:$2 sm:$0xf] }
 0x5c2   :  { %v4846_v38 = vld.sshfl [vmem:[#allocation1 + $0x20] sm:$0xff pattern:$0x75316420]  ;;  %4843 = vst [vmem:[#allocation1 + $0x31] ss:$2 sm:$0xff] %v4811_v48 }
 0x5c3   :  { %v4987_v18 = vld [vmem:[#allocation3 + $0x72] ss:$2 sm:$0xf]  ;;  %6079 = vmatmul.msk.f32.gmra.mxu0 %vm3408_vm4, %v4754_v60  ;;  %4930 = vst [vmem:[#allocation1 + $0x20] ss:$2 sm:$0xff] %v4898_v34 }
 0x5c4   :  { %v4938_v28 = vld.sshfl [vmem:[#allocation1 + $0x10] sm:$0xff pattern:$0x75316420]  ;;  %4932 = vst [vmem:[#allocation1 + $0x21] ss:$2 sm:$0xff] %v4900_v50  ;;  %6089 = vmatmul.msk.f32.gmra.mxu1 %vm3408_vm4, %v4845_v8 }
 0x5c5   :  { %v4989_v35 = vld [vmem:[#allocation3 + $0x92] ss:$2 sm:$0xf]  ;;  %5019 = vst [vmem:[#allocation1 + $0x10] ss:$2 sm:$0xff] %v4987_v18 }
 0x5c6   :  { %v5076_v43 = vld [vmem:[#allocation3 + $0x33] ss:$2 sm:$0xf]  ;;  %5021 = vst [vmem:[#allocation1 + $0x11] ss:$2 sm:$0xff] %v4989_v35 }
 0x5c7   :  { %v5078_v6 = vld [vmem:[#allocation3 + $0x53] ss:$2 sm:$0xf]  ;;  %6101 = vmatmul.msk.f32.gmra.mxu2 %vm3408_vm4, %v4938_v28  ;;  %v4991_v11 = vld [vmem:[#allocation3 + $0xd2] ss:$2 sm:$0xf] }
 0x5c8   :  { %v5030_v23 = vld.sshfl [vmem:[#allocation1] sm:$0xff pattern:$0x75316420]  ;;  %v4902_v45 = vld [vmem:[#allocation3 + $0x111] ss:$2 sm:$0xf] }
 0x5c9   :  { %6112 = vmatmul.msk.f32.vlgmr.msra.gmra.mxu3 %vm3408_vm4, %v5030_v23  ;;  %5108 = vst [vmem:[#allocation1] ss:$2 sm:$0xff] %v5076_v43  ;;  %v4904_v36 = vld [vmem:[#allocation3 + $0x131] ss:$2 sm:$0xf] }
 0x5ca   :  { %v4847_v12 = vld.sshfl [vmem:[#allocation1 + $0x30] sm:$0xff pattern:$0x75316420]  ;;  %5110 = vst [vmem:[#allocation1 + $0x1] ss:$2 sm:$0xff] %v5078_v6 }
 0x5cb   :  { %4934 = vst [vmem:[#allocation1 + $0x30] ss:$2 sm:$0xff] %v4902_v45  ;;  %v4939_v30 = vld.sshfl [vmem:[#allocation1 + $0x20] sm:$0xff pattern:$0x75316420]  ;;  %v3791_v26 = vpop.f32.mrf.mxu1 }
 0x5cc   :  { %4936 = vst [vmem:[#allocation1 + $0x31] ss:$2 sm:$0xff] %v4904_v36  ;;  %v4993_v63 = vld [vmem:[#allocation3 + $0xf2] ss:$2 sm:$0xf]  ;;  %6090 = vmatmul.msk.f32.gmra.mxu1 %vm3408_vm4, %v4846_v38 }
 0x5cd   :  { %5023 = vst [vmem:[#allocation1 + $0x20] ss:$2 sm:$0xff] %v4991_v11  ;;  %v5031_v17 = vld.sshfl [vmem:[#allocation1 + $0x10] sm:$0xff pattern:$0x75316420] }
 0x5ce   :  { %5025 = vst [vmem:[#allocation1 + $0x21] ss:$2 sm:$0xff] %v4993_v63  ;;  %v5080_v62 = vld [vmem:[#allocation3 + $0x73] ss:$2 sm:$0xf] }
 0x5cf   :  { %v5082_v41 = vld [vmem:[#allocation3 + $0x93] ss:$2 sm:$0xf]  ;;  %5112 = vst [vmem:[#allocation1 + $0x10] ss:$2 sm:$0xff] %v5080_v62  ;;  %6102 = vmatmul.msk.f32.gmra.mxu2 %vm3408_vm4, %v4939_v30 }
 0x5d0   :  { %5114 = vst [vmem:[#allocation1 + $0x11] ss:$2 sm:$0xff] %v5082_v41  ;;  %v4997_v3 = vld [vmem:[#allocation3 + $0x132] ss:$2 sm:$0xf] }
 0x5d1   :  { %6113 = vmatmul.msk.f32.gmra.mxu3 %vm3408_vm4, %v5031_v17  ;;  %v5123_v2 = vld.sshfl [vmem:[#allocation1] sm:$0xff pattern:$0x75316420] }
 0x5d2   :  { %6124 = vmatmul.msk.f32.vlgmr.msrb.gmra.mxu0 %vm3408_vm4, %v5123_v2  ;;  %v4995_v24 = vld [vmem:[#allocation3 + $0x112] ss:$2 sm:$0xf]  ;;  %v5084_v52 = vld [vmem:[#allocation3 + $0xd3] ss:$2 sm:$0xf]  ;;  %v3855_v39 = vpop.f32.mrf.mxu2 }
 0x5d3   :  { %v4940_v32 = vld.sshfl [vmem:[#allocation1 + $0x30] sm:$0xff pattern:$0x75316420]  ;;  %v5086_v0 = vld [vmem:[#allocation3 + $0xf3] ss:$2 sm:$0xf]  ;;  %v3856_v7 = vadd.f32 %v3855_v39, %v3791_v26 }
 0x5d4   :  { %5027 = vst [vmem:[#allocation1 + $0x30] ss:$2 sm:$0xff] %v4995_v24  ;;  %6091 = vmatmul.msk.f32.gmra.mxu1 %vm3408_vm4, %v4847_v12  ;;  %v5090_v20 = vld [vmem:[#allocation3 + $0x133] ss:$2 sm:$0xf] }
 0x5d5   :  { %v5032_v22 = vld.sshfl [vmem:[#allocation1 + $0x20] sm:$0xff pattern:$0x75316420]  ;;  %5029 = vst [vmem:[#allocation1 + $0x31] ss:$2 sm:$0xff] %v4997_v3  ;;  %v3794_v59 = vpop.f32.mrf.mxu1 }
 0x5d6   :  { %5116 = vst [vmem:[#allocation1 + $0x20] ss:$2 sm:$0xff] %v5084_v52  ;;  %v5088_v21 = vld [vmem:[#allocation3 + $0x113] ss:$2 sm:$0xf] }
 0x5d7   :  { %5118 = vst [vmem:[#allocation1 + $0x21] ss:$2 sm:$0xff] %v5086_v0  ;;  %6103 = vmatmul.msk.f32.gmra.mxu2 %vm3408_vm4, %v4940_v32  ;;  %v5124_v49 = vld.sshfl [vmem:[#allocation1 + $0x10] sm:$0xff pattern:$0x75316420] }
 0x5d9   :  { %6114 = vmatmul.msk.f32.gmra.mxu3 %vm3408_vm4, %v5032_v22 }
 0x5da   :  { %6125 = vmatmul.msk.f32.gmra.mxu0 %vm3408_vm4, %v5124_v49  ;;  %v3858_v31 = vpop.f32.mrf.mxu2 }
 0x5db   :  { %v3944_v42 = vpop.f32.mrf.mxu3  ;;  %v3859_v19 = vadd.f32 %v3858_v31, %v3794_v59 }
 0x5dc   :  { %v5033_v54 = vld.sshfl [vmem:[#allocation1 + $0x30] sm:$0xff pattern:$0x75316420]  ;;  %v3956_v40 = vadd.f32 %v3944_v42, %v3856_v7 }
 0x5dd   :  { %5120 = vst [vmem:[#allocation1 + $0x30] ss:$2 sm:$0xff] %v5088_v21 }
 0x5de   :  { %5122 = vst [vmem:[#allocation1 + $0x31] ss:$2 sm:$0xff] %v5090_v20  ;;  %v5125_v1 = vld.sshfl [vmem:[#allocation1 + $0x20] sm:$0xff pattern:$0x75316420]  ;;  %v4037_v47 = vpop.f32.mrf.mxu0  ;;  %v3797_v44 = vpop.f32.mrf.mxu1 }
 0x5df   :  { %v4049_v51 = vadd.f32 %v4037_v47, %v3956_v40 }
 0x5e1   :  { %6115 = vmatmul.msk.f32.gmra.mxu3 %vm3408_vm4, %v5033_v54 }
 0x5e2   :  { %6126 = vmatmul.msk.f32.gmra.mxu0 %vm3408_vm4, %v5125_v1  ;;  %v3861_v58 = vpop.f32.mrf.mxu2 }
 0x5e3   :  { %v3947_v15 = vpop.f32.mrf.mxu3  ;;  %v3862_v57 = vadd.f32 %v3861_v58, %v3797_v44 }
 0x5e4   :  { %v3957_v33 = vadd.f32 %v3947_v15, %v3859_v19 }
 0x5e5   :  { %v5126_v61 = vld.sshfl [vmem:[#allocation1 + $0x30] sm:$0xff pattern:$0x75316420] }
 0x5e6   :  { %v4040_v14 = vpop.f32.mrf.mxu0 }
 0x5e7   :  { %v4050_v53 = vadd.f32 %v4040_v14, %v3957_v33 }
 0x5e8   :  { %v3800_v5 = vpop.f32.mrf.mxu1 }
 0x5ea   :  { %6127 = vmatmul.msk.f32.gmra.mxu0 %vm3408_vm4, %v5126_v61 }
 0x5eb   :  { %v3950_v56 = vpop.f32.mrf.mxu3 }
 0x5ec   :  { %v3958_v37 = vadd.f32 %v3950_v56, %v3862_v57 }
 0x5ed   :  { %v3864_v25 = vpop.f32.mrf.mxu2 }
 0x5ee   :  { %v4043_v46 = vpop.f32.mrf.mxu0  ;;  %v3865_v16 = vadd.f32 %v3864_v25, %v3800_v5 }
 0x5ef   :  { %v4051_v27 = vadd.f32 %v4043_v46, %v3958_v37 }
 0x5f3   :  { %v3953_v8 = vpop.f32.mrf.mxu3  ;;  %v4129_v10 = vpop.f32.mrf.mxu1 }
 0x5f4   :  { %v3959_v9 = vadd.f32 %v3953_v8, %v3865_v16  ;;  %v4141_v29 = vadd.f32 %v4129_v10, %v4049_v51 }
 0x5f6   :  { %v4046_v55 = vpop.f32.mrf.mxu0 }
 0x5f7   :  { %v4052_v13 = vadd.f32 %v4046_v55, %v3959_v9  ;;  %v4222_v4 = vpop.f32.mrf.mxu2 }
 0x5f8   :  { %v4234_v48 = vadd.f32 %v4222_v4, %v4141_v29 }
 0x5fb   :  { %v4132_v38 = vpop.f32.mrf.mxu1 }
 0x5fc   :  { %v4142_v26 = vadd.f32 %v4132_v38, %v4050_v53 }
 0x5ff   :  { %v4315_v34 = vpop.f32.mrf.mxu3 }
 0x600   :  { %v4327_v50 = vadd.f32 %v4315_v34, %v4234_v48 }
 0x601   :  { %v4225_v28 = vpop.f32.mrf.mxu2 }
 0x602   :  { %v4235_v1 = vadd.f32 %v4225_v28, %v4142_v26 }
 0x603   :  { %v4408_v60 = vpop.f32.mrf.mxu0 }
 0x604   :  { %v4420_v18 = vadd.f32 %v4408_v60, %v4327_v50 }
 0x605   :  { %v4135_v6 = vpop.f32.mrf.mxu1 }
 0x606   :  { %v4143_v40 = vadd.f32 %v4135_v6, %v4051_v27 }
 0x607   :  { %v4318_v43 = vpop.f32.mrf.mxu3 }
 0x608   :  { %v4328_v39 = vadd.f32 %v4318_v43, %v4235_v1 }
 0x609   :  { %v4228_v23 = vpop.f32.mrf.mxu2 }
 0x60a   :  { %v4236_v31 = vadd.f32 %v4228_v23, %v4143_v40 }
 0x60b   :  { %v4411_v35 = vpop.f32.mrf.mxu0 }
 0x60c   :  { %v4421_v61 = vadd.f32 %v4411_v35, %v4328_v39 }
 0x60d   :  { %v4138_v12 = vpop.f32.mrf.mxu1 }
 0x60e   :  { %v4144_v5 = vadd.f32 %v4138_v12, %v4052_v13 }
 0x60f   :  { %v4321_v36 = vpop.f32.mrf.mxu3 }
 0x610   :  { %v4329_v44 = vadd.f32 %v4321_v36, %v4236_v31 }
 0x612   :  { %v4231_v11 = vpop.f32.mrf.mxu2 }
 0x613   :  { %v4414_v45 = vpop.f32.mrf.mxu0  ;;  %v4237_v25 = vadd.f32 %v4231_v11, %v4144_v5 }
 0x614   :  { %v4422_v37 = vadd.f32 %v4414_v45, %v4329_v44 }
 0x617   :  { %v4324_v30 = vpop.f32.mrf.mxu3  ;;  %v4501_v63 = vpop.f32.mrf.mxu1 }
 0x618   :  { %v4513_v42 = vadd.f32 %v4501_v63, %v4420_v18  ;;  %v4330_v9 = vadd.f32 %v4324_v30, %v4237_v25 }
 0x61b   :  { %v4417_v17 = vpop.f32.mrf.mxu0 }
 0x61c   :  { %v4594_v62 = vpop.f32.mrf.mxu2  ;;  %v4423_v18 = vadd.f32 %v4417_v17, %v4330_v9 }
 0x61d   :  { %v4606_v14 = vadd.f32 %v4594_v62, %v4513_v42 }
 0x621   :  { %v4504_v2 = vpop.f32.mrf.mxu1 }
 0x622   :  { %v4514_v19 = vadd.f32 %v4504_v2, %v4421_v61 }
 0x625   :  { %v4687_v41 = vpop.f32.mrf.mxu3 }
 0x626   :  { %v4597_v32 = vpop.f32.mrf.mxu2  ;;  %v4699_v15 = vadd.f32 %v4687_v41, %v4606_v14 }
 0x627   :  { %v4607_v33 = vadd.f32 %v4597_v32, %v4514_v19 }
 0x628   :  { %v4780_v3 = vpop.f32.mrf.mxu0 }
 0x629   :  { %v4507_v52 = vpop.f32.mrf.mxu1  ;;  %v4792_v57 = vadd.f32 %v4780_v3, %v4699_v15  ;;  %v6147_v3 = vmov 32.0  }
 0x62a   :  { %v4515_v16 = vadd.f32 %v4507_v52, %v4422_v37  ;;  %6139 = vrcp.f32 %v6147_v3 }
 0x62d   :  { %v4690_v24 = vpop.f32.mrf.mxu3 }
 0x62e   :  { %v4600_v0 = vpop.f32.mrf.mxu2  ;;  %v4700_v58 = vadd.f32 %v4690_v24, %v4607_v33 }
 0x62f   :  { %v4608_v29 = vadd.f32 %v4600_v0, %v4515_v16 }
 0x630   :  { %v4783_v22 = vpop.f32.mrf.mxu0 }
 0x631   :  { %v4510_v49 = vpop.f32.mrf.mxu1  ;;  %v4793_v8 = vadd.f32 %v4783_v22, %v4700_v58 }
 0x632   :  { %v4516_v43 = vadd.f32 %v4510_v49, %v4423_v18 }
 0x635   :  { %v4693_v20 = vpop.f32.mrf.mxu3 }
 0x636   :  { %v4603_v21 = vpop.f32.mrf.mxu2  ;;  %v4701_v60 = vadd.f32 %v4693_v20, %v4608_v29 }
 0x637   :  { %v4609_v36 = vadd.f32 %v4603_v21, %v4516_v43 }
 0x638   :  { %v4786_v54 = vpop.f32.mrf.mxu0 }
 0x639   :  { %v4873_v47 = vpop.f32.mrf.mxu1  ;;  %v4794_v6 = vadd.f32 %v4786_v54, %v4701_v60  ;;  %v6140_v54 = vpop.eup %6139 }
 0x63a   :  { %v4885_v55 = vadd.f32 %v4873_v47, %v4792_v57  ;;  %vm5184_vm11 = vweird.f32 %v6140_v54 }
 0x63d   :  { %v4696_v7 = vpop.f32.mrf.mxu3 }
 0x63e   :  { %v4702_v17 = vadd.f32 %v4696_v7, %v4609_v36  ;;  %v5180_v7 = vmul.f32 32.0, %v6140_v54 }
 0x640   :  { %v4789_v51 = vpop.f32.mrf.mxu0  ;;  %v5181_v61 = vsub.f32 1.0, %v5180_v7 }
 0x641   :  { %v4876_v46 = vpop.f32.mrf.mxu1  ;;  %v4795_v52 = vadd.f32 %v4789_v51, %v4702_v17 }
 0x642   :  { %v4966_v59 = vpop.f32.mrf.mxu2  ;;  %v4886_v4 = vadd.f32 %v4876_v46, %v4793_v8  ;;  %v5182_v51 = vmul.f32 %v6140_v54, %v5181_v61 }
 0x643   :  { %v4978_v10 = vadd.f32 %v4966_v59, %v4885_v55 }
 0x644   :  { %v5183_v57 = vadd.f32 %v6140_v54, %v5182_v51 }
 0x646   :  { %v5185_v55 = vsel %vm5184_vm11, %v6140_v54, %v5183_v57  ;;  %v5245_v54 = vld [vmem:[%s8332_s8 + $0x8] sm:$0xff] }
 0x649   :  { %v4879_v38 = vpop.f32.mrf.mxu1 }
 0x64a   :  { %v4969_v56 = vpop.f32.mrf.mxu2  ;;  %v4887_v12 = vadd.f32 %v4879_v38, %v4794_v6 }
 0x64b   :  { %v4979_v34 = vadd.f32 %v4969_v56, %v4886_v4 }
 0x64c   :  { %v5059_v53 = vpop.f32.mrf.mxu3 }
 0x64d   :  { %v5071_v48 = vadd.f32 %v5059_v53, %v4978_v10 }
 0x64f   :  { %v5152_v27 = vpop.f32.mrf.mxu0 }
 0x650   :  { %v8297_v35 = vadd.f32 %v5152_v27, %v5071_v48 }
 0x651   :  { %v4882_v24 = vpop.f32.mrf.mxu1 }
 0x652   :  { %v4972_v13 = vpop.f32.mrf.mxu2  ;;  %v5187_v11 = vmul.f32 %v8297_v35, %v8297_v35  ;;  %v4888_v20 = vadd.f32 %v4882_v24, %v4795_v52 }
 0x653   :  { %v4980_v62 = vadd.f32 %v4972_v13, %v4887_v12 }
 0x654   :  { %v5062_v50 = vpop.f32.mrf.mxu3 }
 0x655   :  { %v5072_v28 = vadd.f32 %v5062_v50, %v4979_v34 }
 0x657   :  { %v5155_v23 = vpop.f32.mrf.mxu0 }
 0x658   :  { %v8299_v45 = vadd.f32 %v5155_v23, %v5072_v28 }
 0x65a   :  { %v5170_v30 = vadd.f32 %v8299_v45, %v8297_v35  ;;  %v5188_v63 = vmul.f32 %v8299_v45, %v8299_v45  ;;  %v4975_v0 = vpop.f32.mrf.mxu2 }
 0x65b   :  { %v4981_v1 = vadd.f32 %v4975_v0, %v4888_v20  ;;  %v5244_v20 = vld [vmem:[%s8332_s8] sm:$0xff] }
 0x65c   :  { %v5191_v41 = vadd.f32 %v5188_v63, %v5187_v11  ;;  %v5065_v2 = vpop.f32.mrf.mxu3 }
 0x65d   :  { %v5073_v32 = vadd.f32 %v5065_v2, %v4980_v62 }
 0x65f   :  { %v5158_v22 = vpop.f32.mrf.mxu0 }
 0x660   :  { %v5166_v49 = vadd.f32 %v5158_v22, %v5073_v32 }
 0x662   :  { %v5171_v21 = vadd.f32 %v5170_v30, %v5166_v49  ;;  %v5189_v26 = vmul.f32 %v5166_v49, %v5166_v49  ;;  %v6134_v30 = vld [vmem:[%s8331_s7] ss:$0 sm:$0xff] }
 0x664   :  { %v5192_v47 = vadd.f32 %v5191_v41, %v5189_v26  ;;  %v5068_v39 = vpop.f32.mrf.mxu3 }
 0x665   :  { %v5074_v42 = vadd.f32 %v5068_v39, %v4981_v1 }
 0x667   :  { %v5161_v59 = vpop.f32.mrf.mxu0 }
 0x668   :  { %v5167_v40 = vadd.f32 %v5161_v59, %v5074_v42 }
 0x66a   :  { %v5172_v14 = vadd.f32 %v5171_v21, %v5167_v40  ;;  %v5190_v31 = vmul.f32 %v5167_v40, %v5167_v40 }
 0x66c   :  { %v5173_v19 = vrot.slane %v5172_v14, 4  ;;  %v5193_v15 = vadd.f32 %v5192_v47, %v5190_v31 }
 0x66e   :  { %v5174_v44 = vadd.f32 %v5173_v19, %v5172_v14  ;;  %v5194_v33 = vrot.slane %v5193_v15, 4 }
 0x670   :  { %v5175_v46 = vrot.slane %v5174_v44, 2  ;;  %v5195_v58 = vadd.f32 %v5194_v33, %v5193_v15 }
 0x672   :  { %v5176_v56 = vadd.f32 %v5175_v46, %v5174_v44  ;;  %v5196_v53 = vrot.slane %v5195_v58, 2 }
 0x674   :  { %v5177_v5 = vrot.slane %v5176_v56, 1  ;;  %v5197_v37 = vadd.f32 %v5196_v53, %v5195_v58 }
 0x676   :  { %v5178_v25 = vadd.f32 %v5177_v5, %v5176_v56  ;;  %v5198_v16 = vrot.slane %v5197_v37, 1 }
 0x678   :  { %v5186_v8 = vmul.f32 %v5185_v55, %v5178_v25  ;;  %v5199_v27 = vadd.f32 %v5198_v16, %v5197_v37 }
 0x67a   :  { %v5200_v10 = vmul.f32 %v5199_v27, %v5185_v55  ;;  %v5201_v9 = vmul.f32 %v5186_v8, %v5186_v8  ;;  %v5203_v29 = vsub.f32 %v8297_v35, %v5186_v8  ;;  %v5204_v4 = vsub.f32 %v8299_v45, %v5186_v8  ;;  %v6133_v35 = vld [vmem:[%s8330_s6] ss:$0 sm:$0xff] }
 0x67b   :  { %v5205_v48 = vsub.f32 %v5166_v49, %v5186_v8  ;;  %v5206_v60 = vsub.f32 %v5167_v40, %v5186_v8 }
 0x67c   :  { %v5202_v34 = vsub.f32 %v5200_v10, %v5201_v9 }
 0x67e   :  { %v5207_v38 = vadd.f32 1e-05, %v5202_v34 }
 0x680   :  { %6141 = vrsqrt.f32 %v5207_v38  ;;  %vm5214_vm13 = vweird.f32 %v5207_v38 }
 0x686   :  { %v6142_v50 = vpop.eup %6141 }
 0x687   :  { %v5209_v18 = vmul.f32 %v6142_v50, %v5207_v38  ;;  %vm5215_vm12 = vweird.f32 %v6142_v50 }
 0x688   :  { %vm5216_vm14 = vmor %vm5214_vm13, %vm5215_vm12 }
 0x689   :  { %v5210_v28 = vmul.f32 %v6142_v50, %v5209_v18 }
 0x68b   :  { %v5211_v13 = vmul.f32 0.5, %v5210_v28 }
 0x68d   :  { %v5212_v43 = vsub.f32 1.5, %v5211_v13 }
 0x68f   :  { %v5213_v6 = vmul.f32 %v6142_v50, %v5212_v43 }
 0x691   :  { %v5217_v23 = vsel %vm5216_vm14, %v6142_v50, %v5213_v6 }
 0x692   :  { %v5218_v45 = vmul.f32 %v5217_v23, %v5203_v29  ;;  %v5219_v36 = vmul.f32 %v5217_v23, %v5204_v4  ;;  %v5220_v12 = vmul.f32 %v5217_v23, %v5205_v48  ;;  %v5221_v11 = vmul.f32 %v5217_v23, %v5206_v60 }
 0x694   :  { %v5225_v63 = vmul.f32 %v6133_v35, %v5218_v45  ;;  %v5226_v17 = vmul.f32 %v6133_v35, %v5219_v36  ;;  %v5227_v62 = vmul.f32 %v6133_v35, %v5220_v12  ;;  %v5228_v41 = vmul.f32 %v6133_v35, %v5221_v11 }
 0x696   :  { %v5235_v2 = vadd.f32 %v6134_v30, %v5228_v41  ;;  %v5232_v3 = vadd.f32 %v6134_v30, %v5225_v63  ;;  %v5233_v32 = vadd.f32 %v6134_v30, %v5226_v17  ;;  %v5234_v24 = vadd.f32 %v6134_v30, %v5227_v62 }
 0x698   :  { %v5239_v52 = vmul.f32 0.2, %v5235_v2  ;;  %v5236_v22 = vmul.f32 0.2, %v5232_v3  ;;  %v5237_v0 = vmul.f32 0.2, %v5233_v32 }
 0x699   :  { %v5238_v49 = vmul.f32 0.2, %v5234_v24 }
 0x69a   :  { %v5243_v21 = vmax.f32 %v5235_v2, %v5239_v52  ;;  %v5240_v26 = vmax.f32 %v5232_v3, %v5236_v22  ;;  %v5241_v1 = vmax.f32 %v5233_v32, %v5237_v0 }
 0x69b   :  { %v5242_v47 = vmax.f32 %v5234_v24, %v5238_v49 }
 0x69c   :  { %v5246_v39 = vmul.f32 %v5244_v20, %v5240_v26  ;;  %v5247_v42 = vmul.f32 %v5245_v54, %v5241_v1  ;;  %v5249_v7 = vmul.f32 %v5245_v54, %v5243_v21 }
 0x69d   :  { %v5248_v59 = vmul.f32 %v5244_v20, %v5242_v47 }
 0x69e   :  { %v5250_v40 = vadd.f32 %v5247_v42, %v5246_v39 }
 0x69f   :  { %v5257_v61 = vadd.f32 %v5249_v7, %v5248_v59 }
 0x6a0   :  { %v5251_v14 = vrot.slane %v5250_v40, 4 }
 0x6a1   :  { %v5258_v31 = vrot.slane %v5257_v61, 4 }
 0x6a2   :  { %v5252_v19 = vadd.f32 %v5251_v14, %v5250_v40 }
 0x6a3   :  { %v5259_v15 = vadd.f32 %v5258_v31, %v5257_v61 }
 0x6a4   :  { %v5253_v51 = vrot.slane %v5252_v19, 2 }
 0x6a5   :  { %v5260_v44 = vrot.slane %v5259_v15, 2 }
 0x6a6   :  { %v5254_v33 = vadd.f32 %v5253_v51, %v5252_v19 }
 0x6a7   :  { %v5261_v46 = vadd.f32 %v5260_v44, %v5259_v15 }
 0x6a8   :  { %v5255_v58 = vrot.slane %v5254_v33, 1 }
 0x6a9   :  { %v5262_v57 = vrot.slane %v5261_v46, 1 }
 0x6aa   :  { %v5256_v56 = vadd.f32 %v5255_v58, %v5254_v33 }
 0x6ab   :  { %v5263_v53 = vadd.f32 %v5262_v57, %v5261_v46 }
 0x6ad   :  { %v5267_v5 = vsel %vm5266_vm15, %v5263_v53, %v5256_v56 }
 0x6ae   :  { %v5270_v37 = vsel %vm5269_vm0, %v5267_v5, 0.0 }
 0x6af   :  { %5271 = vadd.xlane.f32.xlu0 %v5270_v37 }
 0x722   :  { %v5272_v55 = vpop.xlane.xlu0 %5271 }
 0x723   :  { %v5273_v25 = vmul.f32 0.5, %v5272_v55 }
 0x725   :  { %6143 = vtanh.f32 %v5273_v25 }
 0x72b   :  { %v6144_v16 = vpop.eup %6143 }
 0x72c   :  { %v5275_v8 = vadd.f32 1.0, %v6144_v16 }
 0x72e   :  { %v5276_v27 = vmul.f32 0.5, %v5275_v8 }
 0x730   :  { %5277 = vst [vmem:[%s8333_s9] sm:$0x3] %v5276_v27 }

</bundles_post_ra>
